<compile_context>
chip_gen: v7x
topology: tpu7x:2x2x1
jax: 0.10.0
libtpu: 0.0.40
codegen_flags: <defaults>
</compile_context>

<pallas_src>
import jax
import jax.numpy as jnp
from jax.experimental import pallas as pl
from jax.experimental.pallas import tpu as pltpu

SEQUENCE_MAX_LEN = 100
EMBED_DIM = 200
NUM_CLASSES = 2
K = SEQUENCE_MAX_LEN * EMBED_DIM  # 20000 flattened feature dim


def _round_up(x: int, m: int) -> int:
    return ((x + m - 1) // m) * m


SEQ_PAD = _round_up(SEQUENCE_MAX_LEN, 8)  # 104: sublane-aligned sequence length


def _dmscd_kernel(ids_ref, emb_ref, w_ref, b_ref, o_ref):
    # ids_ref: [BT*Lp, 1] int32   flattened (batch-tile x padded-seq) token ids
    # emb_ref: [V, D]     bf16    embedding table (padding_idx row is zero)
    # w_ref:   [2, Lp, D] f32     fc weight, lane-dense, zero-padded along Lp
    # b_ref:   [1, 2]     f32     fc bias
    # o_ref:   [BT, 2]    f32     logits for this batch tile
    ids = ids_ref[...]                                       # [R, 1] int32
    R = ids.shape[0]
    V, D = emb_ref.shape
    Lp = w_ref.shape[1]
    BT = R // Lp                                             # static Python int

    # Fused embedding gather: one-hot(ids) @ table on the MXU.  The one-hot is
    # exact in bf16, so x is exactly the (bf16-rounded) gathered rows,
    # accumulated in f32.  Out-of-range ids produce an all-zero row (benign).
    v_iota = jax.lax.broadcasted_iota(jnp.int32, (R, V), 1)  # [R, V]
    onehot = (ids == v_iota).astype(emb_ref.dtype)           # [R, V]
    x = jnp.dot(onehot, emb_ref[...],
                preferred_element_type=jnp.float32)          # [R, D] f32

    # Classifier on the VPU (only 2 output columns -> MXU would be ~1% used).
    # Lp is a multiple of 8, so this regroup is sublane-tile aligned.
    x3 = x.reshape(BT, Lp, D)                                # [BT, Lp, D]
    w = w_ref[...]                                           # [2, Lp, D]
    # One pass over x: multiply by both class weights at once, reduce lanes (D)
    # first, then sublanes (Lp).
    prod = x3[:, None, :, :] * w[None, :, :, :]              # [BT, 2, Lp, D]
    part = jnp.sum(prod, axis=3)                             # [BT, 2, Lp]
    out = jnp.sum(part, axis=2) + b_ref[...]                 # [BT, 2]
    o_ref[...] = out.astype(o_ref.dtype)


def prepare_params(emb_table, fc_weight, fc_bias):
    """One-time kernel layout prep (done at init, NOT per forward call)."""
    w3 = fc_weight.reshape(NUM_CLASSES, SEQUENCE_MAX_LEN, EMBED_DIM)
    # Zero-pad the sequence axis to a multiple of 8: padded positions then
    # contribute exactly 0 to the logits regardless of what id they carry.
    w3p = jnp.pad(w3, ((0, 0), (0, SEQ_PAD - SEQUENCE_MAX_LEN), (0, 0)))
    b2 = fc_bias.reshape(1, NUM_CLASSES)
    # bf16 table: halves VMEM/HBM footprint, ~3x MXU rate for the gather
    # matmul; gathered values are rounded to bf16 (~0.4% rel error).  Keep it
    # f32 instead if exact nn.Embedding numerics are required.
    emb_bf16 = emb_table.astype(jnp.bfloat16)
    return emb_bf16, w3p, b2


def dmscd_forward(token_ids, emb_table, fc_w3p, fc_bias2, *, batch_tile=32):
    """Forward pass of DMSCDModel.

    token_ids:  [B, 100] int
    emb_table:  [V, 200] bf16 (or f32 for exact semantics); padding row is zero
    fc_w3p:     [2, SEQ_PAD, 200] f32 (pre-laid-out, zero-padded fc weight)
    fc_bias2:   [1, 2] f32
    returns:    [B, 2] f32
    """
    B, L = token_ids.shape
    assert L == SEQUENCE_MAX_LEN
    V, D = emb_table.shape
    NC, Lp, Dw = fc_w3p.shape
    assert (NC, Lp, Dw) == (NUM_CLASSES, SEQ_PAD, EMBED_DIM) and D == EMBED_DIM

    # Batch tiling: BT rows per grid step; pad batch up to a multiple of BT.
    if B <= batch_tile:
        BT = B
    else:
        BT = max((batch_tile // 8) * 8, 8)     # keep output blocks sublane-aligned
    B_pad = ((B + BT - 1) // BT) * BT
    n_tiles = B_pad // BT

    ids = token_ids.astype(jnp.int32)
    # Pad value 0 is a valid row; pad positions/rows are nulled by the
    # zero-padded weights / sliced off below.
    ids = jnp.pad(ids, ((0, B_pad - B), (0, Lp - L)))
    ids_flat = ids.reshape(B_pad * Lp, 1)      # layout plumbing only

    # VMEM budget (lane/sublane-padded sizes), with headroom; clamp to
    # [32 MiB, 64 MiB] (64 MiB = v7x physical ceiling).
    Dp = _round_up(D, 128)
    Vp = _round_up(V, 128)
    Vs = _round_up(V, 8)
    R = BT * Lp
    est = (2 * R * 128 * 4                              # ids (x2 buf, lane-padded)
           + Vs * Dp * emb_table.dtype.itemsize         # table (single buffer)
           + NUM_CLASSES * Lp * Dp * 4                  # fc weight (single buffer)
           + 8 * 128 * 4                                # bias
           + 2 * _round_up(BT, 8) * 128 * 4             # out (x2 buf)
           + R * Vp * 2                                 # one-hot
           + 2 * R * Dp * 4                             # x + aligned regroup
           + 2 * BT * NUM_CLASSES * Lp * Dp * 4)        # classifier temporaries
    vmem_limit = min(max(int(est * 1.5), 32 * 1024 * 1024), 64 * 1024 * 1024)

    flops = 2 * B_pad * Lp * V * D + 2 * B_pad * Lp * D * NUM_CLASSES
    bytes_accessed = (4 * B_pad * Lp
                      + V * D * emb_table.dtype.itemsize
                      + 4 * NUM_CLASSES * Lp * D
                      + 4 * NUM_CLASSES
                      + 4 * B_pad * NUM_CLASSES)

    out = pl.pallas_call(
        _dmscd_kernel,
        out_shape=jax.ShapeDtypeStruct((B_pad, NUM_CLASSES), jnp.float32),
        grid=(n_tiles,),
        in_specs=[
            pl.BlockSpec((BT * Lp, 1), lambda b: (b, 0)),               # token ids
            pl.BlockSpec((V, D), lambda b: (0, 0),
                         pipeline_mode=pl.Buffered(1)),                 # emb table
            pl.BlockSpec((NUM_CLASSES, Lp, D), lambda b: (0, 0, 0),
                         pipeline_mode=pl.Buffered(1)),                 # fc weight
            pl.BlockSpec((1, NUM_CLASSES), lambda b: (0, 0),
                         pipeline_mode=pl.Buffered(1)),                 # fc bias
        ],
        out_specs=pl.BlockSpec((BT, NUM_CLASSES), lambda b: (b, 0)),
        compiler_params=pltpu.CompilerParams(
            dimension_semantics=("parallel",),
            vmem_limit_bytes=vmem_limit),
        cost_estimate=pl.CostEstimate(
            flops=flops, transcendentals=0, bytes_accessed=bytes_accessed),
    )(ids_flat, emb_table, fc_w3p, fc_bias2)
    return out[:B]


def init_params(num_embeddings, padding_idx, key):
    k_emb, k_w, k_b = jax.random.split(key, 3)
    emb_table = jax.random.normal(k_emb, (num_embeddings, EMBED_DIM), jnp.float32)
    # nn.Embedding zeroes the padding_idx row.
    emb_table = emb_table.at[padding_idx].set(0.0)
    # nn.Linear(K, 2): weight [2, K], bias [2] — uniform-ish init.
    bound = 1.0 / jnp.sqrt(K)
    fc_weight = jax.random.uniform(k_w, (NUM_CLASSES, K), jnp.float32, -bound, bound)
    fc_bias = jax.random.uniform(k_b, (NUM_CLASSES,), jnp.float32, -bound, bound)
    return emb_table, fc_weight, fc_bias


if __name__ == "__main__":
    num_embeddings = 64
    padding_idx = 0
    batch = 20

    key = jax.random.PRNGKey(0)
    k_params, k_ids = jax.random.split(key)
    emb_table, fc_weight, fc_bias = init_params(num_embeddings, padding_idx, k_params)
    emb_k, w3p_k, b2_k = prepare_params(emb_table, fc_weight, fc_bias)

    token_ids = jax.random.randint(
        k_ids, (batch, SEQUENCE_MAX_LEN), 0, num_embeddings, dtype=jnp.int32)

    # batch_tile=8 keeps the demo tiny while still exercising the multi-step
    # grid and the batch-padding path (20 rows -> 24 padded rows, 3 grid steps).
    out = jax.block_until_ready(
        dmscd_forward(token_ids, emb_k, w3p_k, b2_k, batch_tile=8))
    assert out.shape == (batch, NUM_CLASSES)

    # Reference matching the kernel's numerics (bf16-rounded table, f32 linear).
    emb_rounded = emb_table.astype(jnp.bfloat16).astype(jnp.float32)
    x_bf = jnp.take(emb_rounded, token_ids, axis=0).reshape(batch, -1)
    ref_bf = jnp.matmul(x_bf, fc_weight.T,
                        precision=jax.lax.Precision.HIGHEST) + fc_bias
    assert jnp.allclose(out, ref_bf, atol=1e-3, rtol=1e-3), (out, ref_bf)

    # Reference with the original f32 module semantics (bf16 table rounding
    # contributes only ~0.1-0.5% relative error here).
    x_f32 = jnp.take(emb_table, token_ids, axis=0).reshape(batch, -1)
    ref_f32 = jnp.matmul(x_f32, fc_weight.T,
                         precision=jax.lax.Precision.HIGHEST) + fc_bias
    assert jnp.allclose(out, ref_f32, atol=2e-2, rtol=2e-2), (out, ref_f32)

    print("KERNEL_OK")
</pallas_src>

<mosaic_0001>
module attributes {stable_mosaic.version = 11 : i64} {
  func.func @_dmscd_kernel(%arg0: i32, %arg1: memref<832x1xi32, #tpu.memory_space<vmem>>, %arg2: memref<64x200xbf16, #tpu.memory_space<vmem>>, %arg3: memref<2x104x200xf32, #tpu.memory_space<vmem>>, %arg4: memref<1x2xf32, #tpu.memory_space<vmem>>, %arg5: memref<8x2xf32, #tpu.memory_space<vmem>>) attributes {dimension_semantics = [#tpu.dimension_semantics<parallel>], iteration_bounds = array<i64: 3>, scalar_prefetch = 0 : i64, scratch_operands = 0 : i64, tpu.core_type = #tpu.core_type<tc>, window_params = [{transform_indices = @transform_0, window_bounds = array<i64: 832, 1>}, {pipeline_mode = #tpu.pipeline_mode<synchronous>, transform_indices = @transform_1, window_bounds = array<i64: 64, 200>}, {pipeline_mode = #tpu.pipeline_mode<synchronous>, transform_indices = @transform_2, window_bounds = array<i64: 2, 104, 200>}, {pipeline_mode = #tpu.pipeline_mode<synchronous>, transform_indices = @transform_3, window_bounds = array<i64: 1, 2>}, {transform_indices = @transform_4, window_bounds = array<i64: 8, 2>}]} {
    %c0 = arith.constant 0 : index
    %c0_0 = arith.constant 0 : index
    %0 = vector.load %arg1[%c0, %c0_0] : memref<832x1xi32, #tpu.memory_space<vmem>>, vector<832x1xi32>
    %1 = tpu.iota {dimensions = array<i32: 1>} : vector<832x64xi32>
    %2 = vector.broadcast %0 : vector<832x1xi32> to vector<832x64xi32>
    %3 = arith.cmpi eq, %2, %1 : vector<832x64xi32>
    %4 = arith.extui %3 : vector<832x64xi1> to vector<832x64xi32>
    %5 = arith.sitofp %4 : vector<832x64xi32> to vector<832x64xf32>
    %6 = arith.truncf %5 : vector<832x64xf32> to vector<832x64xbf16>
    %c0_1 = arith.constant 0 : index
    %c0_2 = arith.constant 0 : index
    %7 = vector.load %arg2[%c0_1, %c0_2] : memref<64x200xbf16, #tpu.memory_space<vmem>>, vector<64x200xbf16>
    %cst = arith.constant dense<0.000000e+00> : vector<832x200xf32>
    %8 = tpu.matmul %6, %7, %cst {dimension_numbers = #tpu.dot_dimension_numbers<[1], [0], [0], [1], [0, 0, 1, 1], [], []>} : vector<832x64xbf16>, vector<64x200xbf16>, vector<832x200xf32> -> vector<832x200xf32>
    %9 = vector.shape_cast %8 : vector<832x200xf32> to vector<8x104x200xf32>
    %c0_3 = arith.constant 0 : index
    %c0_4 = arith.constant 0 : index
    %c0_5 = arith.constant 0 : index
    %10 = vector.load %arg3[%c0_3, %c0_4, %c0_5] : memref<2x104x200xf32, #tpu.memory_space<vmem>>, vector<2x104x200xf32>
    %11 = vector.shape_cast %9 : vector<8x104x200xf32> to vector<8x1x104x200xf32>
    %12 = vector.shape_cast %10 : vector<2x104x200xf32> to vector<1x2x104x200xf32>
    %13 = vector.broadcast %11 : vector<8x1x104x200xf32> to vector<8x2x104x200xf32>
    %14 = vector.broadcast %12 : vector<1x2x104x200xf32> to vector<8x2x104x200xf32>
    %15 = arith.mulf %13, %14 : vector<8x2x104x200xf32>
    %cst_6 = arith.constant dense<0.000000e+00> : vector<8x2x104xf32>
    %16 = vector.multi_reduction <add>, %15, %cst_6 [3] : vector<8x2x104x200xf32> to vector<8x2x104xf32>
    %cst_7 = arith.constant dense<0.000000e+00> : vector<8x2xf32>
    %17 = vector.multi_reduction <add>, %16, %cst_7 [2] : vector<8x2x104xf32> to vector<8x2xf32>
    %c0_8 = arith.constant 0 : index
    %c0_9 = arith.constant 0 : index
    %18 = vector.load %arg4[%c0_8, %c0_9] : memref<1x2xf32, #tpu.memory_space<vmem>>, vector<1x2xf32>
    %19 = vector.broadcast %18 : vector<1x2xf32> to vector<8x2xf32>
    %20 = arith.addf %17, %19 : vector<8x2xf32>
    %c0_10 = arith.constant 0 : index
    %c0_11 = arith.constant 0 : index
    %21 = vector.load %arg5[%c0_10, %c0_11] : memref<8x2xf32, #tpu.memory_space<vmem>>, vector<8x2xf32>
    tpu.vector_store %arg5[%c0_10, %c0_11], %20 {strides = array<i32>} : memref<8x2xf32, #tpu.memory_space<vmem>>, vector<8x2xf32>,
    return
  }
  func.func @transform_0(%arg0: i32) -> (i32, i32) {
    %c0_i32 = arith.constant 0 : i32
    %c0_i32_0 = arith.constant 0 : i32
    return %arg0, %c0_i32 : i32, i32
  }
  func.func @transform_1(%arg0: i32) -> (i32, i32) {
    %c0_i32 = arith.constant 0 : i32
    %c0_i32_0 = arith.constant 0 : i32
    %c0_i32_1 = arith.constant 0 : i32
    return %c0_i32, %c0_i32_0 : i32, i32
  }
  func.func @transform_2(%arg0: i32) -> (i32, i32, i32) {
    %c0_i32 = arith.constant 0 : i32
    %c0_i32_0 = arith.constant 0 : i32
    %c0_i32_1 = arith.constant 0 : i32
    %c0_i32_2 = arith.constant 0 : i32
    return %c0_i32, %c0_i32_0, %c0_i32_1 : i32, i32, i32
  }
  func.func @transform_3(%arg0: i32) -> (i32, i32) {
    %c0_i32 = arith.constant 0 : i32
    %c0_i32_0 = arith.constant 0 : i32
    %c0_i32_1 = arith.constant 0 : i32
    return %c0_i32, %c0_i32_0 : i32, i32
  }
  func.func @transform_4(%arg0: i32) -> (i32, i32) {
    %c0_i32 = arith.constant 0 : i32
    %c0_i32_0 = arith.constant 0 : i32
    return %arg0, %c0_i32 : i32, i32
  }
}

</mosaic_0001>

<bundles_post_ra>
// kernel: tpu_custom_call.1
= control target key start
LH: loop header
LB: loop body
LE: loop exit
PB: predicated region body
PF: predicated region fallthrough
CT: control target
= control target key end

     0   :  { %s4788_s15 = smov 0   ;;  %s8268_s0 = inlined_call_operand.vmem [shape: s32[2496,1], index: 0, kind: input, shape index: {}]   ;;  %s8269_s1 = inlined_call_operand.vmem [shape: bf16[64,200], index: 1, kind: input, shape index: {}]   ;;  %s8270_s2 = inlined_call_operand.vmem [shape: f32[2,104,200], index: 2, kind: input, shape index: {}]   ;;  %s8271_s3 = inlined_call_operand.vmem [shape: f32[1,2], index: 3, kind: input, shape index: {}]   ;;  %s8272_s4 = inlined_call_operand.vmem [shape: f32[24,2], index: 4, kind: output, shape index: {}]  }
   0x1 LB: > { %s4794_s16 = sadd.s32 4294967295, %s4759_s15   ;;  %p4493_p0 = scmp.ge.s32.totalorder %s4759_s15, 1  ;;  %s4759_s15 = sphi %s4788_s15, %s14_s15  }
   0x2   : > { %p163_p1 = scmp.lt.s32.totalorder %s4759_s15, 4 }
   0x4   : > { %p164_p2 = pnand %p4493_p0, %p163_p1 }
   0x6   : > { %167 = sbr.rel (%p164_p2) target bundleno = 1333 (0x535), region = 36 }
   0xd   : > { %s188_s17 = smul.u32 104, %s4794_s16  ;;  %v4683_v0 = vld [vmem:[%s8269_s1 + $0x4] ss:$8 sps:$4 sm:$0xff]   ;;  %v8276_v1 = vmov 0   ;;  %v4685_v2 = vld [vmem:[%s8269_s1] ss:$8 sps:$4 sm:$0xff]  }
   0xe   : > { %4682 = vset.pattern.permute.xlu1 %v8276_v1  ;;  %4681 = vset.pattern.permute.xlu0 %v8276_v1  ;;  %v4686_v3 = vld [vmem:[%s8269_s1 + $0x14] ss:$8 sps:$4 sm:$0xff]   ;;  %v4688_v4 = vld [vmem:[%s8269_s1 + $0x10] ss:$8 sps:$4 sm:$0xff]   ;;  %v4689_v5 = vld [vmem:[%s8269_s1 + $0x24] ss:$8 sps:$4 sm:$0xff]  }
   0xf   : > { %p189_p3 = scmp.lt.s32.totalorder %s188_s17, 311  ;;  %1186 = vmatprep.subr.bf16.mxu0 %v4683_v0  ;;  %1218 = vmatprep.mubr.bf16.mxu0 %v8276_v1  ;;  %v4691_v20 = vld [vmem:[%s8269_s1 + $0x20] ss:$8 sps:$4 sm:$0xff]   ;;  %v4692_v21 = vld [vmem:[%s8269_s1 + $0x34] ss:$8 sps:$4 sm:$0xff]   ;;  %vm1029_vm2 = vcmask 523264  }
  0x10   : > { %1187 = vmatpush1.bf16.msra.mxu0 %v4685_v2  ;;  %4663 = vmatprep.subr.bf16.mxu1 %v4683_v0  ;;  %v4694_v22 = vld [vmem:[%s8269_s1 + $0x30] ss:$8 sps:$4 sm:$0xff]   ;;  %p194_p4 = scmp.lt.s32.totalorder %s4794_s16, 2 }
  0x11   : > { %s8968_s17 = smov (!%p189_p3, %s188_s17), 311  ;;  %1188 = vmatprep.subr.bf16.mxu0 %v4686_v3  ;;  %4667 = vmatpush1.bf16.msra.mxu1 %v4685_v2 }
  0x12   : > { %4664 = vmatprep.subr.bf16.mxu1 %v4686_v3  ;;  %1478 = vmatprep.mubr.bf16.mxu1 %v8276_v1  ;;  %s4494_s26 = sshll.u32 %s8968_s17, 3  ;;  %s8970_s16 = smov (!%p194_p4, %s4794_s16), 2 }
  0x13   : > { %s4818_s29 = scalar_lea.vmem %s8268_s0, %s4494_s26  ;;  %s4495_s20 = sshll.u32 %s8970_s16, 3 }
  0x14   : > { %1189 = vmatpush1.bf16.msra.mxu0 %v4688_v4  ;;  %v201_v6 = vld [vmem:[%s4818_s29 + $0x10] sm:$0xff]  ;;  %v199_v7 = vld [vmem:[%s4818_s29] sm:$0xff]  ;;  %v202_v8 = vld [vmem:[%s4818_s29 + $0x18] sm:$0xff]  ;;  %s197_s23 = scalar_lea.vmem %s8272_s4, %s4495_s20 }
  0x15   : > { %4668 = vmatpush1.bf16.msra.mxu1 %v4688_v4  ;;  %312 = vperm.xlu1 %4682, %v201_v6   ;;  %v200_v9 = vld [vmem:[%s4818_s29 + $0x8] sm:$0xff]  ;;  %v203_v11 = vld [vmem:[%s4818_s29 + $0x20] sm:$0xff]  ;;  %v206_v12 = vld [vmem:[%s4818_s29 + $0x38] sm:$0xff] }
  0x16   : > { %306 = vperm.xlu0 %4681, %v199_v7   ;;  %1190 = vmatprep.subr.bf16.mxu0 %v4689_v5  ;;  %v204_v10 = vld [vmem:[%s4818_s29 + $0x28] sm:$0xff]  ;;  %v205_v13 = vld [vmem:[%s4818_s29 + $0x30] sm:$0xff]  ;;  %v207_v15 = vld [vmem:[%s4818_s29 + $0x40] sm:$0xff] }
  0x17   : > { %4665 = vmatprep.subr.bf16.mxu1 %v4689_v5  ;;  %v208_v14 = vld [vmem:[%s4818_s29 + $0x48] sm:$0xff]  ;;  %v210_v16 = vld [vmem:[%s4818_s29 + $0x58] sm:$0xff]  ;;  %v209_v17 = vld [vmem:[%s4818_s29 + $0x50] sm:$0xff] }
  0x18   : > { %v212_v18 = vld [vmem:[%s4818_s29 + $0x68] sm:$0xff]  ;;  %v211_v19 = vld [vmem:[%s4818_s29 + $0x60] sm:$0xff]  ;;  %1191 = vmatpush1.bf16.msra.mxu0 %v4691_v20  ;;  %v214_v23 = vld [vmem:[%s4818_s29 + $0x78] sm:$0xff] }
  0x19   : > { %315 = vperm.xlu1 %4682, %v202_v8   ;;  %4669 = vmatpush1.bf16.msra.mxu1 %v4691_v20  ;;  %v213_v24 = vld [vmem:[%s4818_s29 + $0x70] sm:$0xff]  ;;  %v216_v25 = vld [vmem:[%s4818_s29 + $0x88] sm:$0xff]  ;;  %v215_v26 = vld [vmem:[%s4818_s29 + $0x80] sm:$0xff]  ;;  %v8274_v20 = vmov 0.0  }
  0x1a   : > { %309 = vperm.xlu0 %4681, %v200_v9   ;;  %1192 = vmatprep.subr.bf16.mxu0 %v4692_v21  ;;  %v218_v27 = vld [vmem:[%s4818_s29 + $0x98] sm:$0xff]  ;;  %v217_v28 = vld [vmem:[%s4818_s29 + $0x90] sm:$0xff]  ;;  %v220_v29 = vld [vmem:[%s4818_s29 + $0xa8] sm:$0xff] }
  0x1b   : > { %4666 = vmatprep.subr.bf16.mxu1 %v4692_v21  ;;  %v219_v30 = vld [vmem:[%s4818_s29 + $0xa0] sm:$0xff]  ;;  %v222_v31 = vld [vmem:[%s4818_s29 + $0xb8] sm:$0xff]  ;;  %v221_v32 = vld [vmem:[%s4818_s29 + $0xb0] sm:$0xff] }
  0x1c   : > { %1193 = vmatpush1.bf16.msra.mxu0 %v4694_v22  ;;  %v224_v33 = vld [vmem:[%s4818_s29 + $0xc8] sm:$0xff]  ;;  %v223_v34 = vld [vmem:[%s4818_s29 + $0xc0] sm:$0xff]  ;;  %v226_v35 = vld [vmem:[%s4818_s29 + $0xd8] sm:$0xff] }
  0x1d   : > { %321 = vperm.xlu1 %4682, %v204_v10   ;;  %4670 = vmatpush1.bf16.msra.mxu1 %v4694_v22  ;;  %v225_v36 = vld [vmem:[%s4818_s29 + $0xd0] sm:$0xff]  ;;  %v228_v37 = vld [vmem:[%s4818_s29 + $0xe8] sm:$0xff]  ;;  %v227_v38 = vld [vmem:[%s4818_s29 + $0xe0] sm:$0xff]  ;;  %v8273_v10 = vlaneseq }
  0x1e   : > { %318 = vperm.xlu0 %4681, %v203_v11   ;;  %v230_v39 = vld [vmem:[%s4818_s29 + $0xf8] sm:$0xff]  ;;  %v229_v40 = vld [vmem:[%s4818_s29 + $0xf0] sm:$0xff]  ;;  %v232_v41 = vld [vmem:[%s4818_s29 + $0x108] sm:$0xff] }
  0x1f   : > { %v231_v42 = vld [vmem:[%s4818_s29 + $0x100] sm:$0xff]  ;;  %v234_v43 = vld [vmem:[%s4818_s29 + $0x118] sm:$0xff]  ;;  %v233_v44 = vld [vmem:[%s4818_s29 + $0x110] sm:$0xff] }
  0x20   : > { %v236_v45 = vld [vmem:[%s4818_s29 + $0x128] sm:$0xff]  ;;  %v235_v46 = vld [vmem:[%s4818_s29 + $0x120] sm:$0xff]  ;;  %v238_v47 = vld [vmem:[%s4818_s29 + $0x138] sm:$0xff] }
  0x21   : > { %327 = vperm.xlu1 %4682, %v206_v12   ;;  %v237_v48 = vld [vmem:[%s4818_s29 + $0x130] sm:$0xff]  ;;  %v240_v49 = vld [vmem:[%s4818_s29 + $0x148] sm:$0xff]  ;;  %v239_v50 = vld [vmem:[%s4818_s29 + $0x140] sm:$0xff] }
  0x22   : > { %324 = vperm.xlu0 %4681, %v205_v13   ;;  %v242_v51 = vld [vmem:[%s4818_s29 + $0x158] sm:$0xff]  ;;  %v241_v52 = vld [vmem:[%s4818_s29 + $0x150] sm:$0xff]  ;;  %v244_v53 = vld [vmem:[%s4818_s29 + $0x168] sm:$0xff]  ;;  %v4899_v13 = vand.u32 127, %v8273_v10 }
  0x23   : > { %v243_v54 = vld [vmem:[%s4818_s29 + $0x160] sm:$0xff]  ;;  %v246_v55 = vld [vmem:[%s4818_s29 + $0x178] sm:$0xff]  ;;  %v245_v56 = vld [vmem:[%s4818_s29 + $0x170] sm:$0xff] }
  0x24   : > { %v248_v57 = vld [vmem:[%s4818_s29 + $0x188] sm:$0xff]  ;;  %v247_v58 = vld [vmem:[%s4818_s29 + $0x180] sm:$0xff]  ;;  %v254_v61 = vld [vmem:[%s4818_s29 + $0x1b8] sm:$0xff]  ;;  %8406 = vst [vmem:[#allocation2_spill] sm:$0xff] %v4899_v13 }
  0x25   : > { %333 = vperm.xlu1 %4682, %v208_v14   ;;  %v252_v59 = vld [vmem:[%s4818_s29 + $0x1a8] sm:$0xff]  ;;  %v251_v60 = vld [vmem:[%s4818_s29 + $0x1a0] sm:$0xff]  ;;  %v253_v62 = vld [vmem:[%s4818_s29 + $0x1b0] sm:$0xff] }
  0x26   : > { %330 = vperm.xlu0 %4681, %v207_v15   ;;  %v256_v63 = vld [vmem:[%s4818_s29 + $0x1c8] sm:$0xff]  ;;  %v255_v0 = vld [vmem:[%s4818_s29 + $0x1c0] sm:$0xff]  ;;  %v258_v2 = vld [vmem:[%s4818_s29 + $0x1d8] sm:$0xff] }
  0x27   : > { %v257_v3 = vld [vmem:[%s4818_s29 + $0x1d0] sm:$0xff]  ;;  %v260_v4 = vld [vmem:[%s4818_s29 + $0x1e8] sm:$0xff]  ;;  %v259_v5 = vld [vmem:[%s4818_s29 + $0x1e0] sm:$0xff] }
  0x28   : > { %v262_v6 = vld [vmem:[%s4818_s29 + $0x1f8] sm:$0xff]  ;;  %v261_v7 = vld [vmem:[%s4818_s29 + $0x1f0] sm:$0xff]  ;;  %v264_v8 = vld [vmem:[%s4818_s29 + $0x208] sm:$0xff] }
  0x29   : > { %339 = vperm.xlu1 %4682, %v210_v16   ;;  %v263_v9 = vld [vmem:[%s4818_s29 + $0x200] sm:$0xff]  ;;  %v266_v11 = vld [vmem:[%s4818_s29 + $0x218] sm:$0xff]  ;;  %v265_v12 = vld [vmem:[%s4818_s29 + $0x210] sm:$0xff] }
  0x2a   : > { %336 = vperm.xlu0 %4681, %v209_v17   ;;  %v268_v16 = vld [vmem:[%s4818_s29 + $0x228] sm:$0xff]  ;;  %v267_v17 = vld [vmem:[%s4818_s29 + $0x220] sm:$0xff]  ;;  %v5645_v10 = vld [vmem:[%s8270_s2 + $0x70] sm:$0xff] }
  0x2d   : > { %345 = vperm.xlu1 %4682, %v212_v18  }
  0x2e   : > { %342 = vperm.xlu0 %4681, %v211_v19  }
  0x31   : > { %351 = vperm.xlu1 %4682, %v214_v23   ;;  %v270_v23 = vld [vmem:[%s4818_s29 + $0x238] sm:$0xff] }
  0x32   : > { %348 = vperm.xlu0 %4681, %v213_v24   ;;  %v269_v24 = vld [vmem:[%s4818_s29 + $0x230] sm:$0xff] }
  0x35   : > { %357 = vperm.xlu1 %4682, %v216_v25  }
  0x36   : > { %354 = vperm.xlu0 %4681, %v215_v26  }
  0x39   : > { %363 = vperm.xlu1 %4682, %v218_v27  }
  0x3a   : > { %360 = vperm.xlu0 %4681, %v217_v28   ;;  %v272_v28 = vld [vmem:[%s4818_s29 + $0x248] sm:$0xff] }
  0x3d   : > { %369 = vperm.xlu1 %4682, %v220_v29   ;;  %v271_v29 = vld [vmem:[%s4818_s29 + $0x240] sm:$0xff] }
  0x3e   : > { %366 = vperm.xlu0 %4681, %v219_v30  }
  0x41   : > { %375 = vperm.xlu1 %4682, %v222_v31  }
  0x42   : > { %372 = vperm.xlu0 %4681, %v221_v32  }
  0x45   : > { %381 = vperm.xlu1 %4682, %v224_v33   ;;  %v274_v33 = vld [vmem:[%s4818_s29 + $0x258] sm:$0xff] }
  0x46   : > { %378 = vperm.xlu0 %4681, %v223_v34   ;;  %v273_v34 = vld [vmem:[%s4818_s29 + $0x250] sm:$0xff] }
  0x49   : > { %387 = vperm.xlu1 %4682, %v226_v35  }
  0x4a   : > { %384 = vperm.xlu0 %4681, %v225_v36  }
  0x4d   : > { %393 = vperm.xlu1 %4682, %v228_v37  }
  0x4e   : > { %390 = vperm.xlu0 %4681, %v227_v38  }
  0x51   : > { %399 = vperm.xlu1 %4682, %v230_v39   ;;  %v276_v39 = vld [vmem:[%s4818_s29 + $0x268] sm:$0xff] }
  0x52   : > { %396 = vperm.xlu0 %4681, %v229_v40   ;;  %v275_v40 = vld [vmem:[%s4818_s29 + $0x260] sm:$0xff] }
  0x55   : > { %405 = vperm.xlu1 %4682, %v232_v41  }
  0x56   : > { %402 = vperm.xlu0 %4681, %v231_v42  }
  0x59   : > { %411 = vperm.xlu1 %4682, %v234_v43  }
  0x5a   : > { %408 = vperm.xlu0 %4681, %v233_v44  }
  0x5d   : > { %417 = vperm.xlu1 %4682, %v236_v45   ;;  %v278_v45 = vld [vmem:[%s4818_s29 + $0x278] sm:$0xff] }
  0x5e   : > { %414 = vperm.xlu0 %4681, %v235_v46   ;;  %v277_v46 = vld [vmem:[%s4818_s29 + $0x270] sm:$0xff] }
  0x61   : > { %423 = vperm.xlu1 %4682, %v238_v47  }
  0x62   : > { %420 = vperm.xlu0 %4681, %v237_v48  }
  0x65   : > { %429 = vperm.xlu1 %4682, %v240_v49  }
  0x66   : > { %426 = vperm.xlu0 %4681, %v239_v50   ;;  %v280_v50 = vld [vmem:[%s4818_s29 + $0x288] sm:$0xff] }
  0x69   : > { %435 = vperm.xlu1 %4682, %v242_v51   ;;  %v279_v51 = vld [vmem:[%s4818_s29 + $0x280] sm:$0xff] }
  0x6a   : > { %432 = vperm.xlu0 %4681, %v241_v52  }
  0x6d   : > { %441 = vperm.xlu1 %4682, %v244_v53  }
  0x6e   : > { %438 = vperm.xlu0 %4681, %v243_v54  }
  0x71   : > { %447 = vperm.xlu1 %4682, %v246_v55  }
  0x72   : > { %444 = vperm.xlu0 %4681, %v245_v56   ;;  %v282_v56 = vld [vmem:[%s4818_s29 + $0x298] sm:$0xff] }
  0x75   : > { %453 = vperm.xlu1 %4682, %v248_v57   ;;  %v281_v57 = vld [vmem:[%s4818_s29 + $0x290] sm:$0xff] }
  0x76   : > { %450 = vperm.xlu0 %4681, %v247_v58  }
  0x79   : > { %465 = vperm.xlu1 %4682, %v252_v59  }
  0x7a   : > { %462 = vperm.xlu0 %4681, %v251_v60  }
  0x7d   : > { %471 = vperm.xlu1 %4682, %v254_v61   ;;  %v284_v61 = vld [vmem:[%s4818_s29 + $0x2a8] sm:$0xff] }
  0x7e   : > { %468 = vperm.xlu0 %4681, %v253_v62   ;;  %v283_v62 = vld [vmem:[%s4818_s29 + $0x2a0] sm:$0xff] }
  0x81   : > { %477 = vperm.xlu1 %4682, %v256_v63  }
  0x82   : > { %474 = vperm.xlu0 %4681, %v255_v0  }
  0x85   : > { %483 = vperm.xlu1 %4682, %v258_v2  }
  0x86   : > { %480 = vperm.xlu0 %4681, %v257_v3  }
  0x89   : > { %489 = vperm.xlu1 %4682, %v260_v4   ;;  %v286_v4 = vld [vmem:[%s4818_s29 + $0x2b8] sm:$0xff] }
  0x8a   : > { %486 = vperm.xlu0 %4681, %v259_v5   ;;  %v285_v5 = vld [vmem:[%s4818_s29 + $0x2b0] sm:$0xff] }
  0x8d   : > { %495 = vperm.xlu1 %4682, %v262_v6  }
  0x8e   : > { %492 = vperm.xlu0 %4681, %v261_v7  }
  0x91   : > { %501 = vperm.xlu1 %4682, %v264_v8  }
  0x92   : > { %498 = vperm.xlu0 %4681, %v263_v9   ;;  %v288_v9 = vld [vmem:[%s4818_s29 + $0x2c8] sm:$0xff] }
  0x94   : > { %v313_v14 = vpop.permute.xlu1 %312 }
  0x95   : > { %v307_v15 = vpop.permute.xlu0 %306  ;;  %507 = vperm.xlu1 %4682, %v266_v11   ;;  %vm619_vm4 = vcmp.eq.s32.totalorder %v313_v14, %v4899_v13  ;;  %v287_v11 = vld [vmem:[%s4818_s29 + $0x2c0] sm:$0xff] }
  0x96   : > { %504 = vperm.xlu0 %4681, %v265_v12   ;;  %vm617_vm0 = vcmp.eq.s32.totalorder %v307_v15, %v4899_v13  ;;  %v4498_v35 = vsel %vm619_vm4, 1.0, %v8274_v20 }
  0x97   : > { %v4496_v21 = vsel %vm617_vm0, 1.0, %v8274_v20 }
  0x98   : > { %v316_v18 = vpop.permute.xlu1 %315 }
  0x99   : > { %v310_v19 = vpop.permute.xlu0 %309  ;;  %513 = vperm.xlu1 %4682, %v268_v16   ;;  %vm620_vm3 = vcmp.eq.s32.totalorder %v316_v18, %v4899_v13  ;;  %v289_v18 = vld [vmem:[%s4818_s29 + $0x2d0] sm:$0xff] }
  0x9a   : > { %vm618_vm1 = vcmp.eq.s32.totalorder %v310_v19, %v4899_v13  ;;  %510 = vperm.xlu0 %4681, %v267_v17   ;;  %v4499_v32 = vsel %vm620_vm3, 1.0, %v8274_v20  ;;  %v290_v17 = vld [vmem:[%s4818_s29 + $0x2d8] sm:$0xff] }
  0x9b   : > { %v4497_v22 = vsel %vm618_vm1, 1.0, %v8274_v20  ;;  %v930_v36 = vpack.c.bf16 %v4499_v32, %v4498_v35  ;;  %v295_v35 = vld [vmem:[%s4818_s29 + $0x300] sm:$0xff] }
  0x9c   : > { %v929_v25 = vpack.c.bf16 %v4497_v22, %v4496_v21  ;;  %v322_v26 = vpop.permute.xlu1 %321 }
  0x9d   : > { %v319_v27 = vpop.permute.xlu0 %318  ;;  %519 = vperm.xlu1 %4682, %v270_v23   ;;  %vm622_vm5 = vcmp.eq.s32.totalorder %v322_v26, %v4899_v13  ;;  %v292_v23 = vld [vmem:[%s4818_s29 + $0x2e8] sm:$0xff] }
  0x9e   : > { %516 = vperm.xlu0 %4681, %v269_v24   ;;  %4608 = vmatmul.mubr.msk.bf16.vlgmr.msra.gmra.mrb[0].mxu0 %vm1029_vm2, %v929_v25  ;;  %vm621_vm6 = vcmp.eq.s32.totalorder %v319_v27, %v4899_v13  ;;  %v4501_v43 = vsel %vm622_vm5, 1.0, %v8274_v20  ;;  %v291_v24 = vld [vmem:[%s4818_s29 + $0x2e0] sm:$0xff] }
  0x9f   : > { %1228 = vmatprep.mubr.bf16.mxu0 %v8276_v1  ;;  %v4500_v44 = vsel %vm621_vm6, 1.0, %v8274_v20 }
  0xa0   : > { %v328_v30 = vpop.permute.xlu1 %327  ;;  %v931_v47 = vpack.c.bf16 %v4501_v43, %v4500_v44 }
  0xa1   : > { %v325_v31 = vpop.permute.xlu0 %324  ;;  %525 = vperm.xlu1 %4682, %v272_v28   ;;  %vm624_vm7 = vcmp.eq.s32.totalorder %v328_v30, %v4899_v13  ;;  %v293_v30 = vld [vmem:[%s4818_s29 + $0x2f0] sm:$0xff] }
  0xa2   : > { %522 = vperm.xlu0 %4681, %v271_v29   ;;  %vm623_vm8 = vcmp.eq.s32.totalorder %v325_v31, %v4899_v13  ;;  %v4503_v54 = vsel %vm624_vm7, 1.0, %v8274_v20  ;;  %v294_v29 = vld [vmem:[%s4818_s29 + $0x2f8] sm:$0xff] }
  0xa3   : > { %v4502_v55 = vsel %vm623_vm8, 1.0, %v8274_v20 }
  0xa4   : > { %v334_v37 = vpop.permute.xlu1 %333  ;;  %v932_v58 = vpack.c.bf16 %v4503_v54, %v4502_v55 }
  0xa5   : > { %v331_v38 = vpop.permute.xlu0 %330  ;;  %531 = vperm.xlu1 %4682, %v274_v33   ;;  %vm626_vm9 = vcmp.eq.s32.totalorder %v334_v37, %v4899_v13 }
  0xa6   : > { %528 = vperm.xlu0 %4681, %v273_v34   ;;  %4609 = vmatmul.mubr.msk.bf16.gmra.mrb[4].mxu0 %vm1029_vm2, %v930_v36  ;;  %vm625_vm10 = vcmp.eq.s32.totalorder %v331_v38, %v4899_v13  ;;  %v4505_v2 = vsel %vm626_vm9, 1.0, %v8274_v20  ;;  %v296_v34 = vld [vmem:[%s4818_s29 + $0x308] sm:$0xff] }
  0xa7   : > { %1238 = vmatprep.mubr.bf16.mxu0 %v8276_v1  ;;  %v4504_v3 = vsel %vm625_vm10, 1.0, %v8274_v20 }
  0xa8   : > { %v340_v41 = vpop.permute.xlu1 %339  ;;  %v933_v6 = vpack.c.bf16 %v4505_v2, %v4504_v3 }
  0xa9   : > { %v337_v42 = vpop.permute.xlu0 %336  ;;  %537 = vperm.xlu1 %4682, %v276_v39   ;;  %vm628_vm11 = vcmp.eq.s32.totalorder %v340_v41, %v4899_v13  ;;  %v297_v41 = vld [vmem:[%s4818_s29 + $0x310] sm:$0xff] }
  0xaa   : > { %534 = vperm.xlu0 %4681, %v275_v40   ;;  %vm627_vm12 = vcmp.eq.s32.totalorder %v337_v42, %v4899_v13  ;;  %v4507_v15 = vsel %vm628_vm11, 1.0, %v8274_v20  ;;  %v298_v40 = vld [vmem:[%s4818_s29 + $0x318] sm:$0xff] }
  0xab   : > { %v4506_v16 = vsel %vm627_vm12, 1.0, %v8274_v20 }
  0xac   : > { %v4929_v48 = vpop.permute.xlu1 %345  ;;  %v934_v19 = vpack.c.bf16 %v4507_v15, %v4506_v16 }
  0xad   : > { %v4931_v49 = vpop.permute.xlu0 %342  ;;  %543 = vperm.xlu1 %4682, %v278_v45   ;;  %vm630_vm13 = vcmp.eq.s32.totalorder %v4929_v48, %v4899_v13  ;;  %v300_v45 = vld [vmem:[%s4818_s29 + $0x328] sm:$0xff] }
  0xae   : > { %540 = vperm.xlu0 %4681, %v277_v46   ;;  %4610 = vmatmul.mubr.msk.bf16.gmra.mrb[8].mxu0 %vm1029_vm2, %v931_v47  ;;  %vm629_vm14 = vcmp.eq.s32.totalorder %v4931_v49, %v4899_v13  ;;  %v4509_v27 = vsel %vm630_vm13, 1.0, %v8274_v20  ;;  %v299_v46 = vld [vmem:[%s4818_s29 + $0x320] sm:$0xff] }
  0xaf   : > { %1248 = vmatprep.mubr.bf16.mxu0 %v8276_v1  ;;  %v4508_v28 = vsel %vm629_vm14, 1.0, %v8274_v20 }
  0xb0   : > { %v4939_v52 = vpop.permute.xlu1 %351  ;;  %v935_v31 = vpack.c.bf16 %v4509_v27, %v4508_v28 }
  0xb1   : > { %v4941_v53 = vpop.permute.xlu0 %348  ;;  %549 = vperm.xlu1 %4682, %v280_v50   ;;  %vm632_vm15 = vcmp.eq.s32.totalorder %v4939_v52, %v4899_v13  ;;  %v249_v52 = vld [vmem:[%s4818_s29 + $0x190] sm:$0xff] }
  0xb2   : > { %546 = vperm.xlu0 %4681, %v279_v51   ;;  %vm631_vm0 = vcmp.eq.s32.totalorder %v4941_v53, %v4899_v13  ;;  %v4511_v38 = vsel %vm632_vm15, 1.0, %v8274_v20  ;;  %v250_v51 = vld [vmem:[%s4818_s29 + $0x198] sm:$0xff] }
  0xb3   : > { %v4510_v39 = vsel %vm631_vm0, 1.0, %v8274_v20 }
  0xb4   : > { %v4947_v59 = vpop.permute.xlu1 %357  ;;  %v936_v42 = vpack.c.bf16 %v4511_v38, %v4510_v39 }
  0xb5   : > { %v4949_v60 = vpop.permute.xlu0 %354  ;;  %555 = vperm.xlu1 %4682, %v282_v56   ;;  %vm634_vm1 = vcmp.eq.s32.totalorder %v4947_v59, %v4899_v13  ;;  %v302_v56 = vld [vmem:[%s4818_s29 + $0x338] sm:$0xff] }
  0xb6   : > { %552 = vperm.xlu0 %4681, %v281_v57   ;;  %4611 = vmatmul.mubr.msk.bf16.gmra.mrb[12].mxu0 %vm1029_vm2, %v932_v58  ;;  %vm633_vm3 = vcmp.eq.s32.totalorder %v4949_v60, %v4899_v13  ;;  %v4513_v49 = vsel %vm634_vm1, 1.0, %v8274_v20  ;;  %v301_v57 = vld [vmem:[%s4818_s29 + $0x330] sm:$0xff] }
  0xb7   : > { %1258 = vmatprep.mubr.bf16.mxu0 %v8276_v1  ;;  %v4512_v50 = vsel %vm633_vm3, 1.0, %v8274_v20 }
  0xb8   : > { %v4957_v63 = vpop.permute.xlu1 %363  ;;  %v937_v53 = vpack.c.bf16 %v4513_v49, %v4512_v50 }
  0xb9   : > { %v4959_v0 = vpop.permute.xlu0 %360  ;;  %561 = vperm.xlu1 %4682, %v284_v61   ;;  %vm636_vm4 = vcmp.eq.s32.totalorder %v4957_v63, %v4899_v13 }
  0xba   : > { %558 = vperm.xlu0 %4681, %v283_v62   ;;  %vm635_vm5 = vcmp.eq.s32.totalorder %v4959_v0, %v4899_v13  ;;  %v4515_v60 = vsel %vm636_vm4, 1.0, %v8274_v20 }
  0xbb   : > { %v4514_v61 = vsel %vm635_vm5, 1.0, %v8274_v20 }
  0xbc   : > { %v4965_v7 = vpop.permute.xlu1 %369  ;;  %v938_v62 = vpack.c.bf16 %v4515_v60, %v4514_v61 }
  0xbd   : > { %v4967_v8 = vpop.permute.xlu0 %366  ;;  %567 = vperm.xlu1 %4682, %v286_v4   ;;  %vm638_vm6 = vcmp.eq.s32.totalorder %v4965_v7, %v4899_v13 }
  0xbe   : > { %564 = vperm.xlu0 %4681, %v285_v5   ;;  %4612 = vmatmul.mubr.msk.bf16.gmra.mrb[16].mxu0 %vm1029_vm2, %v933_v6  ;;  %vm637_vm7 = vcmp.eq.s32.totalorder %v4967_v8, %v4899_v13  ;;  %v4517_v4 = vsel %vm638_vm6, 1.0, %v8274_v20 }
  0xbf   : > { %1268 = vmatprep.mubr.bf16.mxu0 %v8276_v1  ;;  %v4516_v5 = vsel %vm637_vm7, 1.0, %v8274_v20 }
  0xc0   : > { %v4975_v12 = vpop.permute.xlu1 %375  ;;  %v939_v6 = vpack.c.bf16 %v4517_v4, %v4516_v5 }
  0xc1   : > { %v4977_v14 = vpop.permute.xlu0 %372  ;;  %573 = vperm.xlu1 %4682, %v288_v9   ;;  %vm640_vm8 = vcmp.eq.s32.totalorder %v4975_v12, %v4899_v13 }
  0xc2   : > { %570 = vperm.xlu0 %4681, %v287_v11   ;;  %vm639_vm9 = vcmp.eq.s32.totalorder %v4977_v14, %v4899_v13  ;;  %v4519_v15 = vsel %vm640_vm8, 1.0, %v8274_v20 }
  0xc3   : > { %v4518_v16 = vsel %vm639_vm9, 1.0, %v8274_v20 }
  0xc4   : > { %v4983_v21 = vpop.permute.xlu1 %381 }
  0xc5   : > { %v4985_v22 = vpop.permute.xlu0 %378  ;;  %579 = vperm.xlu1 %4682, %v290_v17   ;;  %v940_v17 = vpack.c.bf16 %v4519_v15, %v4518_v16  ;;  %vm642_vm10 = vcmp.eq.s32.totalorder %v4983_v21, %v4899_v13 }
  0xc6   : > { %576 = vperm.xlu0 %4681, %v289_v18   ;;  %4613 = vmatmul.mubr.msk.bf16.gmra.mrb[20].mxu0 %vm1029_vm2, %v934_v19  ;;  %vm641_vm11 = vcmp.eq.s32.totalorder %v4985_v22, %v4899_v13 }
  0xc7   : > { %1278 = vmatprep.mubr.bf16.mxu0 %v8276_v1 }
  0xc8   : > { %v4995_v25 = vpop.permute.xlu1 %387 }
  0xc9   : > { %v4997_v26 = vpop.permute.xlu0 %384  ;;  %585 = vperm.xlu1 %4682, %v292_v23   ;;  %v4521_v23 = vsel %vm642_vm10, 1.0, %v8274_v20  ;;  %vm644_vm0 = vcmp.eq.s32.totalorder %v4995_v25, %v4899_v13 }
  0xca   : > { %582 = vperm.xlu0 %4681, %v291_v24   ;;  %v4520_v24 = vsel %vm641_vm11, 1.0, %v8274_v20  ;;  %vm643_vm1 = vcmp.eq.s32.totalorder %v4997_v26, %v4899_v13  ;;  %v4523_v39 = vsel %vm644_vm0, 1.0, %v8274_v20 }
  0xcb   : > { %v941_v22 = vpack.c.bf16 %v4521_v23, %v4520_v24 }
  0xcc   : > { %v5003_v32 = vpop.permute.xlu1 %393 }
  0xcd   : > { %v5005_v33 = vpop.permute.xlu0 %390  ;;  %591 = vperm.xlu1 %4682, %v294_v29   ;;  %vm646_vm5 = vcmp.eq.s32.totalorder %v5003_v32, %v4899_v13 }
  0xce   : > { %588 = vperm.xlu0 %4681, %v293_v30   ;;  %4614 = vmatmul.mubr.msk.bf16.gmra.mrb[24].mxu0 %vm1029_vm2, %v935_v31  ;;  %vm645_vm6 = vcmp.eq.s32.totalorder %v5005_v33, %v4899_v13 }
  0xcf   : > { %1288 = vmatprep.mubr.bf16.mxu0 %v8276_v1 }
  0xd0   : > { %v5015_v36 = vpop.permute.xlu1 %399 }
  0xd1   : > { %v5017_v37 = vpop.permute.xlu0 %396  ;;  %597 = vperm.xlu1 %4682, %v296_v34   ;;  %vm648_vm9 = vcmp.eq.s32.totalorder %v5015_v36, %v4899_v13 }
  0xd2   : > { %594 = vperm.xlu0 %4681, %v295_v35   ;;  %vm647_vm10 = vcmp.eq.s32.totalorder %v5017_v37, %v4899_v13  ;;  %v4527_v4 = vsel %vm648_vm9, 1.0, %v8274_v20 }
  0xd3   : > { %v4526_v5 = vsel %vm647_vm10, 1.0, %v8274_v20 }
  0xd4   : > { %v5023_v43 = vpop.permute.xlu1 %405 }
  0xd5   : > { %v5025_v44 = vpop.permute.xlu0 %402  ;;  %603 = vperm.xlu1 %4682, %v298_v40   ;;  %v4522_v40 = vsel %vm643_vm1, 1.0, %v8274_v20 }
  0xd6   : > { %600 = vperm.xlu0 %4681, %v297_v41   ;;  %4615 = vmatmul.mubr.msk.bf16.gmra.mrb[28].mxu0 %vm1029_vm2, %v936_v42  ;;  %v942_v41 = vpack.c.bf16 %v4523_v39, %v4522_v40 }
  0xd7   : > { %1298 = vmatprep.mubr.bf16.mxu0 %v8276_v1 }
  0xd8   : > { %v5035_v47 = vpop.permute.xlu1 %411 }
  0xd9   : > { %v5037_v48 = vpop.permute.xlu0 %408  ;;  %609 = vperm.xlu1 %4682, %v300_v45   ;;  %vm652_vm1 = vcmp.eq.s32.totalorder %v5035_v47, %v4899_v13 }
  0xda   : > { %606 = vperm.xlu0 %4681, %v299_v46  }
  0xdc   : > { %v5043_v54 = vpop.permute.xlu1 %417 }
  0xdd   : > { %v5045_v55 = vpop.permute.xlu0 %414  ;;  %459 = vperm.xlu1 %4682, %v250_v51   ;;  %v4525_v51 = vsel %vm646_vm5, 1.0, %v8274_v20 }
  0xde   : > { %456 = vperm.xlu0 %4681, %v249_v52   ;;  %4616 = vmatmul.mubr.msk.bf16.gmra.mrb[32].mxu0 %vm1029_vm2, %v937_v53  ;;  %v4524_v52 = vsel %vm645_vm6, 1.0, %v8274_v20  ;;  %vm654_vm6 = vcmp.eq.s32.totalorder %v5043_v54, %v4899_v13 }
  0xdf   : > { %1308 = vmatprep.mubr.bf16.mxu0 %v8276_v1  ;;  %v943_v53 = vpack.c.bf16 %v4525_v51, %v4524_v52 }
  0xe0   : > { %v5055_v58 = vpop.permute.xlu1 %423 }
  0xe1   : > { %v5057_v59 = vpop.permute.xlu0 %420  ;;  %615 = vperm.xlu1 %4682, %v302_v56   ;;  %vm656_vm10 = vcmp.eq.s32.totalorder %v5055_v58, %v4899_v13 }
  0xe2   : > { %612 = vperm.xlu0 %4681, %v301_v57  }
  0xe4   : > { %v5061_v63 = vpop.permute.xlu1 %429 }
  0xe5   : > { %v5063_v0 = vpop.permute.xlu0 %426 }
  0xe6   : > { %4617 = vmatmul.mubr.msk.bf16.gmra.mrb[36].mxu0 %vm1029_vm2, %v938_v62 }
  0xe7   : > { %1318 = vmatprep.mubr.bf16.mxu0 %v8276_v1 }
  0xe8   : > { %v5071_v2 = vpop.permute.xlu1 %435 }
  0xe9   : > { %v5073_v3 = vpop.permute.xlu0 %432 }
  0xec   : > { %v5077_v9 = vpop.permute.xlu1 %441 }
  0xed   : > { %v5079_v11 = vpop.permute.xlu0 %438 }
  0xee   : > { %4618 = vmatmul.mubr.msk.bf16.gmra.mrb[40].mxu0 %vm1029_vm2, %v939_v6  ;;  %v944_v6 = vpack.c.bf16 %v4527_v4, %v4526_v5 }
  0xef   : > { %1328 = vmatprep.mubr.bf16.mxu0 %v8276_v1 }
  0xf0   : > { %v5087_v7 = vpop.permute.xlu1 %447 }
  0xf1   : > { %v5089_v8 = vpop.permute.xlu0 %444 }
  0xf4   : > { %v5093_v18 = vpop.permute.xlu1 %453 }
  0xf5   : > { %v5095_v19 = vpop.permute.xlu0 %450 }
  0xf6   : > { %4619 = vmatmul.mubr.msk.bf16.gmra.mrb[44].mxu0 %vm1029_vm2, %v940_v17 }
  0xf7   : > { %1338 = vmatprep.mubr.bf16.mxu0 %v8276_v1 }
  0xf8   : > { %v466_v12 = vpop.permute.xlu1 %465 }
  0xf9   : > { %v463_v14 = vpop.permute.xlu0 %462  ;;  %vm670_vm12 = vcmp.eq.s32.totalorder %v466_v12, %v4899_v13 }
  0xfa   : > { %vm669_vm13 = vcmp.eq.s32.totalorder %v463_v14, %v4899_v13  ;;  %v4549_v27 = vsel %vm670_vm12, 1.0, %v8274_v20 }
  0xfb   : > { %v4548_v21 = vsel %vm669_vm13, 1.0, %v8274_v20  ;;  %vm650_vm13 = vcmp.eq.s32.totalorder %v5023_v43, %v4899_v13 }
  0xfc   : > { %v955_v28 = vpack.c.bf16 %v4549_v27, %v4548_v21  ;;  %v472_v29 = vpop.permute.xlu1 %471  ;;  %v4529_v23 = vsel %vm650_vm13, 1.0, %v8274_v20 }
  0xfd   : > { %v469_v30 = vpop.permute.xlu0 %468  ;;  %vm672_vm14 = vcmp.eq.s32.totalorder %v472_v29, %v4899_v13 }
  0xfe   : > { %vm671_vm15 = vcmp.eq.s32.totalorder %v469_v30, %v4899_v13  ;;  %4634 = vmatmul.mubr.msk.bf16.vlgmr.msra.gmra.mrb[0].mxu1 %vm1029_vm2, %v955_v28  ;;  %4620 = vmatmul.mubr.msk.bf16.gmra.mrb[48].mxu0 %vm1029_vm2, %v941_v22  ;;  %v4551_v31 = vsel %vm672_vm14, 1.0, %v8274_v20  ;;  %vm649_vm14 = vcmp.eq.s32.totalorder %v5025_v44, %v4899_v13 }
  0xff   : > { %1488 = vmatprep.mubr.bf16.mxu1 %v8276_v1  ;;  %1348 = vmatprep.mubr.bf16.mxu0 %v8276_v1  ;;  %v4550_v34 = vsel %vm671_vm15, 1.0, %v8274_v20  ;;  %v4528_v43 = vsel %vm649_vm14, 1.0, %v8274_v20  ;;  %vm658_vm14 = vcmp.eq.s32.totalorder %v5061_v63, %v4899_v13 }
 0x100   : > { %v478_v35 = vpop.permute.xlu1 %477  ;;  %v956_v25 = vpack.c.bf16 %v4551_v31, %v4550_v34  ;;  %v945_v44 = vpack.c.bf16 %v4529_v23, %v4528_v43  ;;  %v4531_v31 = vsel %vm652_vm1, 1.0, %v8274_v20  ;;  %v4537_v4 = vsel %vm658_vm14, 1.0, %v8274_v20 }
 0x101   : > { %v475_v38 = vpop.permute.xlu0 %474  ;;  %vm674_vm3 = vcmp.eq.s32.totalorder %v478_v35, %v4899_v13 }
 0x102   : > { %vm673_vm4 = vcmp.eq.s32.totalorder %v475_v38, %v4899_v13  ;;  %v4553_v45 = vsel %vm674_vm3, 1.0, %v8274_v20  ;;  %vm651_vm3 = vcmp.eq.s32.totalorder %v5037_v48, %v4899_v13 }
 0x103   : > { %v4552_v46 = vsel %vm673_vm4, 1.0, %v8274_v20  ;;  %v4530_v47 = vsel %vm651_vm3, 1.0, %v8274_v20  ;;  %vm660_vm3 = vcmp.eq.s32.totalorder %v5071_v2, %v4899_v13 }
 0x104   : > { %v484_v42 = vpop.permute.xlu1 %483  ;;  %v957_v32 = vpack.c.bf16 %v4553_v45, %v4552_v46  ;;  %v946_v48 = vpack.c.bf16 %v4531_v31, %v4530_v47 }
 0x105   : > { %v481_v26 = vpop.permute.xlu0 %480  ;;  %vm676_vm7 = vcmp.eq.s32.totalorder %v484_v42, %v4899_v13  ;;  %v4533_v42 = vsel %vm654_vm6, 1.0, %v8274_v20 }
 0x106   : > { %4635 = vmatmul.mubr.msk.bf16.gmra.mrb[4].mxu1 %vm1029_vm2, %v956_v25  ;;  %4621 = vmatmul.mubr.msk.bf16.gmra.mrb[52].mxu0 %vm1029_vm2, %v942_v41  ;;  %vm675_vm8 = vcmp.eq.s32.totalorder %v481_v26, %v4899_v13  ;;  %v4555_v57 = vsel %vm676_vm7, 1.0, %v8274_v20  ;;  %vm653_vm7 = vcmp.eq.s32.totalorder %v5045_v55, %v4899_v13 }
 0x107   : > { %1498 = vmatprep.mubr.bf16.mxu1 %v8276_v1  ;;  %1358 = vmatprep.mubr.bf16.mxu0 %v8276_v1  ;;  %v4554_v60 = vsel %vm675_vm8, 1.0, %v8274_v20  ;;  %v4532_v54 = vsel %vm653_vm7, 1.0, %v8274_v20  ;;  %vm662_vm7 = vcmp.eq.s32.totalorder %v5077_v9, %v4899_v13 }
 0x108   : > { %v490_v49 = vpop.permute.xlu1 %489  ;;  %v958_v36 = vpack.c.bf16 %v4555_v57, %v4554_v60  ;;  %v947_v55 = vpack.c.bf16 %v4533_v42, %v4532_v54 }
 0x109   : > { %v487_v50 = vpop.permute.xlu0 %486  ;;  %vm678_vm11 = vcmp.eq.s32.totalorder %v490_v49, %v4899_v13 }
 0x10a   : > { %vm677_vm12 = vcmp.eq.s32.totalorder %v487_v50, %v4899_v13  ;;  %v4557_v16 = vsel %vm678_vm11, 1.0, %v8274_v20  ;;  %vm655_vm11 = vcmp.eq.s32.totalorder %v5057_v59, %v4899_v13 }
 0x10b   : > { %v4556_v17 = vsel %vm677_vm12, 1.0, %v8274_v20  ;;  %v4534_v58 = vsel %vm655_vm11, 1.0, %v8274_v20  ;;  %vm664_vm11 = vcmp.eq.s32.totalorder %v5087_v7, %v4899_v13 }
 0x10c   : > { %v496_v56 = vpop.permute.xlu1 %495  ;;  %v959_v24 = vpack.c.bf16 %v4557_v16, %v4556_v17 }
 0x10d   : > { %v493_v33 = vpop.permute.xlu0 %492  ;;  %vm680_vm15 = vcmp.eq.s32.totalorder %v496_v56, %v4899_v13 }
 0x10e   : > { %4636 = vmatmul.mubr.msk.bf16.gmra.mrb[8].mxu1 %vm1029_vm2, %v957_v32  ;;  %4622 = vmatmul.mubr.msk.bf16.gmra.mrb[56].mxu0 %vm1029_vm2, %v943_v53  ;;  %vm679_vm0 = vcmp.eq.s32.totalorder %v493_v33, %v4899_v13  ;;  %v4559_v28 = vsel %vm680_vm15, 1.0, %v8274_v20  ;;  %v4535_v32 = vsel %vm656_vm10, 1.0, %v8274_v20  ;;  %vm657_vm15 = vcmp.eq.s32.totalorder %v5063_v0, %v4899_v13 }
 0x10f   : > { %1508 = vmatprep.mubr.bf16.mxu1 %v8276_v1  ;;  %1368 = vmatprep.mubr.bf16.mxu0 %v8276_v1  ;;  %v4558_v22 = vsel %vm679_vm0, 1.0, %v8274_v20  ;;  %v948_v59 = vpack.c.bf16 %v4535_v32, %v4534_v58  ;;  %v4536_v63 = vsel %vm657_vm15, 1.0, %v8274_v20  ;;  %vm666_vm15 = vcmp.eq.s32.totalorder %v5093_v18, %v4899_v13 }
 0x110   : > { %v502_v61 = vpop.permute.xlu1 %501  ;;  %v960_v34 = vpack.c.bf16 %v4559_v28, %v4558_v22  ;;  %v949_v0 = vpack.c.bf16 %v4537_v4, %v4536_v63  ;;  %v4541_v28 = vsel %vm662_vm7, 1.0, %v8274_v20  ;;  %v5395_v63 = vld [vmem:[%s8270_s2 + $0x8] sm:$0xff] }
 0x111   : > { %v499_v62 = vpop.permute.xlu0 %498  ;;  %vm682_vm4 = vcmp.eq.s32.totalorder %v502_v61, %v4899_v13 }
 0x112   : > { %vm681_vm5 = vcmp.eq.s32.totalorder %v499_v62, %v4899_v13  ;;  %v4561_v39 = vsel %vm682_vm4, 1.0, %v8274_v20  ;;  %vm659_vm4 = vcmp.eq.s32.totalorder %v5073_v3, %v4899_v13 }
 0x113   : > { %v4560_v40 = vsel %vm681_vm5, 1.0, %v8274_v20  ;;  %v4538_v2 = vsel %vm659_vm4, 1.0, %v8274_v20 }
 0x114   : > { %v5151_v15 = vpop.permute.xlu1 %507  ;;  %v961_v26 = vpack.c.bf16 %v4561_v39, %v4560_v40 }
 0x115   : > { %v5153_v37 = vpop.permute.xlu0 %504  ;;  %vm684_vm8 = vcmp.eq.s32.totalorder %v5151_v15, %v4899_v13 }
 0x116   : > { %4637 = vmatmul.mubr.msk.bf16.gmra.mrb[12].mxu1 %vm1029_vm2, %v958_v36  ;;  %4623 = vmatmul.mubr.msk.bf16.gmra.mrb[60].mxu0 %vm1029_vm2, %v944_v6  ;;  %vm683_vm9 = vcmp.eq.s32.totalorder %v5153_v37, %v4899_v13  ;;  %v4563_v49 = vsel %vm684_vm8, 1.0, %v8274_v20  ;;  %vm661_vm8 = vcmp.eq.s32.totalorder %v5079_v11, %v4899_v13 }
 0x117   : > { %1518 = vmatprep.mubr.bf16.mxu1 %v8276_v1  ;;  %1378 = vmatprep.mubr.bf16.mxu0 %v8276_v1  ;;  %v4562_v50 = vsel %vm683_vm9, 1.0, %v8274_v20  ;;  %v4540_v9 = vsel %vm661_vm8, 1.0, %v8274_v20 }
 0x118   : > { %v5167_v12 = vpop.permute.xlu1 %513  ;;  %v962_v53 = vpack.c.bf16 %v4563_v49, %v4562_v50  ;;  %v951_v11 = vpack.c.bf16 %v4541_v28, %v4540_v9  ;;  %v5432_v28 = vld [vmem:[%s8270_s2 + $0xe0] sm:$0xff] }
 0x119   : > { %v5169_v14 = vpop.permute.xlu0 %510  ;;  %vm686_vm12 = vcmp.eq.s32.totalorder %v5167_v12, %v4899_v13  ;;  %v4539_v12 = vsel %vm660_vm3, 1.0, %v8274_v20 }
 0x11a   : > { %vm685_vm13 = vcmp.eq.s32.totalorder %v5169_v14, %v4899_v13  ;;  %v4565_v57 = vsel %vm686_vm12, 1.0, %v8274_v20  ;;  %v950_v3 = vpack.c.bf16 %v4539_v12, %v4538_v2  ;;  %vm663_vm12 = vcmp.eq.s32.totalorder %v5089_v8, %v4899_v13  ;;  %v5420_v12 = vld [vmem:[%s8270_s2 + $0xe8] sm:$0xff] }
 0x11b   : > { %v4564_v60 = vsel %vm685_vm13, 1.0, %v8274_v20  ;;  %v4542_v7 = vsel %vm663_vm12, 1.0, %v8274_v20 }
 0x11c   : > { %v5173_v27 = vpop.permute.xlu1 %519  ;;  %v963_v5 = vpack.c.bf16 %v4565_v57, %v4564_v60 }
 0x11d   : > { %v5175_v21 = vpop.permute.xlu0 %516  ;;  %vm688_vm0 = vcmp.eq.s32.totalorder %v5173_v27, %v4899_v13 }
 0x11e   : > { %4638 = vmatmul.mubr.msk.bf16.gmra.mrb[16].mxu1 %vm1029_vm2, %v959_v24  ;;  %4624 = vmatmul.mubr.msk.bf16.gmra.mrb[64].mxu0 %vm1029_vm2, %v945_v44  ;;  %vm687_vm1 = vcmp.eq.s32.totalorder %v5175_v21, %v4899_v13  ;;  %v4567_v15 = vsel %vm688_vm0, 1.0, %v8274_v20  ;;  %vm665_vm0 = vcmp.eq.s32.totalorder %v5095_v19, %v4899_v13 }
 0x11f   : > { %1528 = vmatprep.mubr.bf16.mxu1 %v8276_v1  ;;  %1388 = vmatprep.mubr.bf16.mxu0 %v8276_v1  ;;  %v4566_v37 = vsel %vm687_vm1, 1.0, %v8274_v20  ;;  %v4544_v18 = vsel %vm665_vm0, 1.0, %v8274_v20 }
 0x120   : > { %v5189_v29 = vpop.permute.xlu1 %525  ;;  %v964_v14 = vpack.c.bf16 %v4567_v15, %v4566_v37  ;;  %v5415_v37 = vld [vmem:[%s8270_s2 + $0x18] sm:$0xff] }
 0x121   : > { %v5191_v30 = vpop.permute.xlu0 %522  ;;  %vm690_vm5 = vcmp.eq.s32.totalorder %v5189_v29, %v4899_v13 }
 0x122   : > { %vm689_vm6 = vcmp.eq.s32.totalorder %v5191_v30, %v4899_v13  ;;  %v4569_v24 = vsel %vm690_vm5, 1.0, %v8274_v20 }
 0x123   : > { %v4568_v44 = vsel %vm689_vm6, 1.0, %v8274_v20 }
 0x124   : > { %v5195_v35 = vpop.permute.xlu1 %531  ;;  %v965_v22 = vpack.c.bf16 %v4569_v24, %v4568_v44  ;;  %v5427_v44 = vld [vmem:[%s8270_s2 + $0x10] sm:$0xff] }
 0x125   : > { %v5197_v38 = vpop.permute.xlu0 %528  ;;  %vm692_vm9 = vcmp.eq.s32.totalorder %v5195_v35, %v4899_v13  ;;  %v4543_v35 = vsel %vm664_vm11, 1.0, %v8274_v20 }
 0x126   : > { %4639 = vmatmul.mubr.msk.bf16.gmra.mrb[20].mxu1 %vm1029_vm2, %v960_v34  ;;  %4625 = vmatmul.mubr.msk.bf16.gmra.mrb[68].mxu0 %vm1029_vm2, %v946_v48  ;;  %vm691_vm10 = vcmp.eq.s32.totalorder %v5197_v38, %v4899_v13  ;;  %v4571_v31 = vsel %vm692_vm9, 1.0, %v8274_v20  ;;  %v952_v8 = vpack.c.bf16 %v4543_v35, %v4542_v7 }
 0x127   : > { %1538 = vmatprep.mubr.bf16.mxu1 %v8276_v1  ;;  %1398 = vmatprep.mubr.bf16.mxu0 %v8276_v1  ;;  %v4570_v47 = vsel %vm691_vm10, 1.0, %v8274_v20  ;;  %vm2207_vm10 = vcmask 588800  }
 0x128   : > { %v5211_v25 = vpop.permute.xlu1 %537  ;;  %v966_v38 = vpack.c.bf16 %v4571_v31, %v4570_v47 }
 0x129   : > { %v5213_v41 = vpop.permute.xlu0 %534  ;;  %vm694_vm13 = vcmp.eq.s32.totalorder %v5211_v25, %v4899_v13 }
 0x12a   : > { %vm693_vm14 = vcmp.eq.s32.totalorder %v5213_v41, %v4899_v13  ;;  %v4573_v42 = vsel %vm694_vm13, 1.0, %v8274_v20 }
 0x12b   : > { %v4572_v25 = vsel %vm693_vm14, 1.0, %v8274_v20 }
 0x12c   : > { %v5217_v45 = vpop.permute.xlu1 %543 }
 0x12d   : > { %v5219_v46 = vpop.permute.xlu0 %540  ;;  %vm696_vm1 = vcmp.eq.s32.totalorder %v5217_v45, %v4899_v13 }
 0x12e   : > { %4640 = vmatmul.mubr.msk.bf16.gmra.mrb[24].mxu1 %vm1029_vm2, %v961_v26  ;;  %4626 = vmatmul.mubr.msk.bf16.gmra.mrb[72].mxu0 %vm1029_vm2, %v947_v55  ;;  %v4545_v26 = vsel %vm666_vm15, 1.0, %v8274_v20  ;;  %v967_v55 = vpack.c.bf16 %v4573_v42, %v4572_v25  ;;  %vm695_vm3 = vcmp.eq.s32.totalorder %v5219_v46, %v4899_v13  ;;  %v4575_v32 = vsel %vm696_vm1, 1.0, %v8274_v20 }
 0x12f   : > { %1548 = vmatprep.mubr.bf16.mxu1 %v8276_v1  ;;  %1408 = vmatprep.mubr.bf16.mxu0 %v8276_v1  ;;  %v953_v19 = vpack.c.bf16 %v4545_v26, %v4544_v18  ;;  %v4574_v58 = vsel %vm695_vm3, 1.0, %v8274_v20 }
 0x130   : > { %v5235_v51 = vpop.permute.xlu1 %549 }
 0x131   : > { %v5237_v52 = vpop.permute.xlu0 %546  ;;  %vm698_vm6 = vcmp.eq.s32.totalorder %v5235_v51, %v4899_v13 }
 0x132   : > { %vm697_vm7 = vcmp.eq.s32.totalorder %v5237_v52, %v4899_v13  ;;  %v4577_v57 = vsel %vm698_vm6, 1.0, %v8274_v20 }
 0x133   : > { %v4576_v60 = vsel %vm697_vm7, 1.0, %v8274_v20 }
 0x134   : > { %v5241_v56 = vpop.permute.xlu1 %555  ;;  %v969_v4 = vpack.c.bf16 %v4577_v57, %v4576_v60 }
 0x135   : > { %v5243_v33 = vpop.permute.xlu0 %552  ;;  %vm700_vm8 = vcmp.eq.s32.totalorder %v5241_v56, %v4899_v13  ;;  %v5400_v56 = vld [vmem:[%s8270_s2 + $0xd8] sm:$0xff] }
 0x136   : > { %4641 = vmatmul.mubr.msk.bf16.gmra.mrb[28].mxu1 %vm1029_vm2, %v962_v53  ;;  %4627 = vmatmul.mubr.msk.bf16.gmra.mrb[76].mxu0 %vm1029_vm2, %v948_v59  ;;  %v968_v53 = vpack.c.bf16 %v4575_v32, %v4574_v58  ;;  %vm699_vm9 = vcmp.eq.s32.totalorder %v5243_v33, %v4899_v13  ;;  %v4579_v51 = vsel %vm700_vm8, 1.0, %v8274_v20  ;;  %v5405_v33 = vld [vmem:[%s8270_s2] sm:$0xff] }
 0x137   : > { %1558 = vmatprep.mubr.bf16.mxu1 %v8276_v1  ;;  %1418 = vmatprep.mubr.bf16.mxu0 %v8276_v1  ;;  %v4578_v52 = vsel %vm699_vm9, 1.0, %v8274_v20 }
 0x138   : > { %v5259_v61 = vpop.permute.xlu1 %561  ;;  %v970_v2 = vpack.c.bf16 %v4579_v51, %v4578_v52  ;;  %v5497_v52 = vld [vmem:[%s8270_s2 + $0x30] sm:$0xff] }
 0x139   : > { %v5261_v62 = vpop.permute.xlu0 %558  ;;  %vm702_vm11 = vcmp.eq.s32.totalorder %v5259_v61, %v4899_v13 }
 0x13a   : > { %vm701_vm12 = vcmp.eq.s32.totalorder %v5261_v62, %v4899_v13  ;;  %v5475_v62 = vld [vmem:[%s8270_s2 + $0x20] sm:$0xff] }
 0x13c   : > { %v5265_v36 = vpop.permute.xlu1 %567 }
 0x13d   : > { %v5267_v6 = vpop.permute.xlu0 %564  ;;  %vm704_vm13 = vcmp.eq.s32.totalorder %v5265_v36, %v4899_v13 }
 0x13e   : > { %4642 = vmatmul.mubr.msk.bf16.gmra.mrb[32].mxu1 %vm1029_vm2, %v963_v5  ;;  %4628 = vmatmul.mubr.msk.bf16.gmra.mrb[80].mxu0 %vm1029_vm2, %v949_v0  ;;  %v5410_v0 = vld [vmem:[%s8270_s2 + $0xd0] sm:$0xff]  ;;  %vm703_vm14 = vcmp.eq.s32.totalorder %v5267_v6, %v4899_v13  ;;  %v5549_v6 = vld [vmem:[%s8270_s2 + $0x40] sm:$0xff] }
 0x13f   : > { %1568 = vmatprep.mubr.bf16.mxu1 %v8276_v1  ;;  %1428 = vmatprep.mubr.bf16.mxu0 %v8276_v1 }
 0x140   : > { %v5283_v16 = vpop.permute.xlu1 %573 }
 0x141   : > { %v5285_v17 = vpop.permute.xlu0 %570  ;;  %vm706_vm15 = vcmp.eq.s32.totalorder %v5283_v16, %v4899_v13 }
 0x142   : > { %vm705_vm0 = vcmp.eq.s32.totalorder %v5285_v17, %v4899_v13  ;;  %v5623_v17 = vld [vmem:[%s8270_s2 + $0x60] sm:$0xff] }
 0x144   : > { %v5289_v23 = vpop.permute.xlu1 %579 }
 0x145   : > { %v5291_v43 = vpop.permute.xlu0 %576  ;;  %vm708_vm1 = vcmp.eq.s32.totalorder %v5289_v23, %v4899_v13 }
 0x146   : > { %4643 = vmatmul.mubr.msk.bf16.gmra.mrb[36].mxu1 %vm1029_vm2, %v964_v14  ;;  %4629 = vmatmul.mubr.msk.bf16.gmra.mrb[84].mxu0 %vm1029_vm2, %v950_v3  ;;  %vm707_vm3 = vcmp.eq.s32.totalorder %v5291_v43, %v4899_v13  ;;  %v5697_v43 = vld [vmem:[%s8270_s2 + $0x80] sm:$0xff] }
 0x147   : > { %1578 = vmatprep.mubr.bf16.mxu1 %v8276_v1  ;;  %1438 = vmatprep.mubr.bf16.mxu0 %v8276_v1  ;;  %8426 = vst [vmem:[#allocation20_spill] sm:$0xff] %v5697_v43 }
 0x148   : > { %v5307_v27 = vpop.permute.xlu1 %585 }
 0x149   : > { %v5309_v21 = vpop.permute.xlu0 %582 }
 0x14c   : > { %v5313_v29 = vpop.permute.xlu1 %591 }
 0x14d   : > { %v5315_v30 = vpop.permute.xlu0 %588  ;;  %vm712_vm6 = vcmp.eq.s32.totalorder %v5313_v29, %v4899_v13 }
 0x14e   : > { %4644 = vmatmul.mubr.msk.bf16.gmra.mrb[40].mxu1 %vm1029_vm2, %v965_v22  ;;  %4630 = vmatmul.mubr.msk.bf16.gmra.mrb[88].mxu0 %vm1029_vm2, %v951_v11  ;;  %vm711_vm7 = vcmp.eq.s32.totalorder %v5315_v30, %v4899_v13  ;;  %v5845_v30 = vld [vmem:[%s8270_s2 + $0xc0] sm:$0xff] }
 0x14f   : > { %1588 = vmatprep.mubr.bf16.mxu1 %v8276_v1  ;;  %1448 = vmatprep.mubr.bf16.mxu0 %v8276_v1  ;;  %8448 = vst [vmem:[#allocation42_spill] sm:$0xff] %v5845_v30 }
 0x150   : > { %v5331_v34 = vpop.permute.xlu1 %597 }
 0x151   : > { %v5333_v48 = vpop.permute.xlu0 %594  ;;  %vm714_vm8 = vcmp.eq.s32.totalorder %v5331_v34, %v4899_v13 }
 0x152   : > { %vm713_vm9 = vcmp.eq.s32.totalorder %v5333_v48, %v4899_v13 }
 0x154   : > { %v5337_v39 = vpop.permute.xlu1 %603 }
 0x155   : > { %v5339_v40 = vpop.permute.xlu0 %600 }
 0x156   : > { %4645 = vmatmul.mubr.msk.bf16.gmra.mrb[44].mxu1 %vm1029_vm2, %v966_v38  ;;  %4631 = vmatmul.mubr.msk.bf16.gmra.mrb[92].mxu0 %vm1029_vm2, %v952_v8 }
 0x157   : > { %1598 = vmatprep.mubr.bf16.mxu1 %v8276_v1  ;;  %1458 = vmatprep.mubr.bf16.mxu0 %v8276_v1 }
 0x158   : > { %v5355_v54 = vpop.permute.xlu1 %609 }
 0x159   : > { %v5357_v41 = vpop.permute.xlu0 %606 }
 0x15c   : > { %v460_v49 = vpop.permute.xlu1 %459 }
 0x15d   : > { %v457_v50 = vpop.permute.xlu0 %456  ;;  %vm668_vm4 = vcmp.eq.s32.totalorder %v460_v49, %v4899_v13  ;;  %v5461_v49 = vld [vmem:[%s8270_s2 + $0x28] sm:$0xff] }
 0x15e   : > { %4646 = vmatmul.mubr.msk.bf16.gmra.mrb[48].mxu1 %vm1029_vm2, %v967_v55  ;;  %vm667_vm5 = vcmp.eq.s32.totalorder %v457_v50, %v4899_v13  ;;  %4632 = vmatmul.mubr.msk.bf16.gmra.mrb[96].mxu0 %vm1029_vm2, %v953_v19  ;;  %v4547_v45 = vsel %vm668_vm4, 1.0, %v8274_v20  ;;  %v4581_v55 = vsel %vm702_vm11, 1.0, %v8274_v20  ;;  %v4580_v19 = vsel %vm701_vm12, 1.0, %v8274_v20  ;;  %v5466_v50 = vld [vmem:[%s8270_s2 + $0xf8] sm:$0xff] }
 0x15f   : > { %1608 = vmatprep.mubr.bf16.mxu1 %v8276_v1  ;;  %1468 = vmatprep.mubr.bf16.mxu0 %v8276_v1  ;;  %v4546_v46 = vsel %vm667_vm5, 1.0, %v8274_v20  ;;  %v971_v57 = vpack.c.bf16 %v4581_v55, %v4580_v19  ;;  %v5554_v19 = vld [vmem:[%s8270_s2 + $0x110] sm:$0xff]  ;;  %vm710_vm4 = vcmp.eq.s32.totalorder %v5307_v27, %v4899_v13  ;;  %vm709_vm5 = vcmp.eq.s32.totalorder %v5309_v21, %v4899_v13  ;;  %v5771_v21 = vld [vmem:[%s8270_s2 + $0xa0] sm:$0xff] }
 0x160   : > { %v954_v59 = vpack.c.bf16 %v4547_v45, %v4546_v46  ;;  %v5480_v45 = vld [vmem:[%s8270_s2 + $0xf0] sm:$0xff]  ;;  %8436 = vst [vmem:[#allocation30_spill] sm:$0xff] %v5771_v21  ;;  %vm716_vm11 = vcmp.eq.s32.totalorder %v5337_v39, %v4899_v13  ;;  %vm715_vm12 = vcmp.eq.s32.totalorder %v5339_v40, %v4899_v13 }
 0x166   : > { %4647 = vmatmul.mubr.msk.bf16.gmra.mrb[52].mxu1 %vm1029_vm2, %v968_v53  ;;  %4633 = vmatmul.mubr.msk.bf16.gmra.mrb[100].mxu0 %vm1029_vm2, %v954_v59  ;;  %v5485_v53 = vld [vmem:[%s8270_s2 + $0x38] sm:$0xff]  ;;  %v5490_v59 = vld [vmem:[%s8270_s2 + $0x108] sm:$0xff] }
 0x167   : > { %1618 = vmatprep.mubr.bf16.mxu1 %v8276_v1 }
 0x16e   : > { %4648 = vmatmul.mubr.msk.bf16.gmra.mrb[56].mxu1 %vm1029_vm2, %v969_v4 }
 0x16f   : > { %1628 = vmatprep.mubr.bf16.mxu1 %v8276_v1 }
 0x171   : > { %v1220_v5 = vpop.f32.mrb[0].mxu0 }
 0x172   : > { %v1222_v15 = vpop.f32.mrb[1].mxu0  ;;  %v1791_v9 = vmul.f32 %v5405_v33, %v1220_v5  ;;  %v1817_v22 = vmul.f32 %v5410_v0, %v1220_v5  ;;  %v5502_v5 = vld [vmem:[%s8270_s2 + $0x100] sm:$0xff] }
 0x173   : > { %v1792_v14 = vmul.f32 %v5395_v63, %v1222_v15  ;;  %v1818_v3 = vmul.f32 %v5400_v56, %v1222_v15  ;;  %v1224_v24 = vpop.f32.mrb[2].mxu0 }
 0x174   : > { %v1226_v11 = vpop.f32.mrb[3].mxu0  ;;  %v1793_v38 = vmul.f32 %v5427_v44, %v1224_v24  ;;  %v1819_v8 = vmul.f32 %v5432_v28, %v1224_v24 }
 0x175   : > { %v2208_v31 = vsel %vm2207_vm10, %v1792_v14, 0.0  ;;  %v2260_v47 = vsel %vm2207_vm10, %v1818_v3, 0.0  ;;  %v1794_v35 = vmul.f32 %v5415_v37, %v1226_v11  ;;  %v1820_v7 = vmul.f32 %v5420_v12, %v1226_v11 }
 0x176   : > { %4649 = vmatmul.mubr.msk.bf16.gmra.mrb[60].mxu1 %vm1029_vm2, %v970_v2  ;;  %v2209_v42 = vadd.f32 %v2208_v31, %v1791_v9  ;;  %v2261_v25 = vadd.f32 %v2260_v47, %v1817_v22 }
 0x177   : > { %1638 = vmatprep.mubr.bf16.mxu1 %v8276_v1  ;;  %v2212_v26 = vsel %vm2207_vm10, %v1794_v35, 0.0  ;;  %v2264_v18 = vsel %vm2207_vm10, %v1820_v7, 0.0 }
 0x178   : > { %2210 = vadd.xlane.f32.xlu0 %v2209_v42  ;;  %v5468_v32 = vadd.f32 %v2212_v26, %v1793_v38  ;;  %v5470_v61 = vadd.f32 %v2264_v18, %v1819_v8  ;;  %v4583_v8 = vsel %vm704_vm13, 1.0, %v8274_v20  ;;  %v4582_v42 = vsel %vm703_vm14, 1.0, %v8274_v20  ;;  %v5540_v26 = vld [vmem:[%s8270_s2 + $0x118] sm:$0xff] }
 0x179   : > { %v1230_v58 = vpop.f32.mrb[4].mxu0  ;;  %vm718_vm13 = vcmp.eq.s32.totalorder %v5355_v54, %v4899_v13  ;;  %vm717_vm14 = vcmp.eq.s32.totalorder %v5357_v41, %v4899_v13 }
 0x17a   : > { %8407 = vst [vmem:[#allocation3_spill] sm:$0xff] %v5468_v32  ;;  %8408 = vst [vmem:[#allocation4_spill] sm:$0xff] %v5470_v61  ;;  %v1232_v46 = vpop.f32.mrb[5].mxu0  ;;  %v1795_v15 = vmul.f32 %v5475_v62, %v1230_v58  ;;  %v1821_v2 = vmul.f32 %v5480_v45, %v1230_v58 }
 0x17b   : > { %v1796_v60 = vmul.f32 %v5461_v49, %v1232_v46  ;;  %v1822_v4 = vmul.f32 %v5466_v50, %v1232_v46  ;;  %v1234_v51 = vpop.f32.mrb[6].mxu0  ;;  %v5559_v46 = vld [vmem:[%s8270_s2 + $0x58] sm:$0xff] }
 0x17c   : > { %v1236_v14 = vpop.f32.mrb[7].mxu0  ;;  %2262 = vadd.xlane.f32.xlu0 %v2261_v25  ;;  %v1797_v11 = vmul.f32 %v5497_v52, %v1234_v51  ;;  %v1823_v31 = vmul.f32 %v5502_v5, %v1234_v51  ;;  %v5535_v25 = vld [vmem:[%s8270_s2 + $0x48] sm:$0xff] }
 0x17d   : > { %v2216_v3 = vsel %vm2207_vm10, %v1796_v60, 0.0  ;;  %v2268_v24 = vsel %vm2207_vm10, %v1822_v4, 0.0  ;;  %v1798_v9 = vmul.f32 %v5485_v53, %v1236_v14  ;;  %v1824_v22 = vmul.f32 %v5490_v59, %v1236_v14  ;;  %v5576_v14 = vld [vmem:[%s8270_s2 + $0x120] sm:$0xff] }
 0x17e   : > { %4650 = vmatmul.mubr.msk.bf16.gmra.mrb[64].mxu1 %vm1029_vm2, %v971_v57  ;;  %v5518_v47 = vadd.f32 %v2216_v3, %v1795_v15  ;;  %v5520_v35 = vadd.f32 %v2268_v24, %v1821_v2  ;;  %v5564_v57 = vld [vmem:[%s8270_s2 + $0x128] sm:$0xff]  ;;  %v972_v60 = vpack.c.bf16 %v4583_v8, %v4582_v42  ;;  %v5571_v2 = vld [vmem:[%s8270_s2 + $0x50] sm:$0xff] }
 0x17f   : > { %1648 = vmatprep.mubr.bf16.mxu1 %v8276_v1  ;;  %v2220_v7 = vsel %vm2207_vm10, %v1798_v9, 0.0  ;;  %v2272_v38 = vsel %vm2207_vm10, %v1824_v22, 0.0 }
 0x180   : > { %8409 = vst [vmem:[#allocation5_spill] sm:$0xff] %v5518_v47  ;;  %8410 = vst [vmem:[#allocation6_spill] sm:$0xff] %v5520_v35  ;;  %v5542_v18 = vadd.f32 %v2220_v7, %v1797_v11  ;;  %v5544_v55 = vadd.f32 %v2272_v38, %v1823_v31  ;;  %v8421_v47 = vmov 0.0  }
 0x181   : > { %v1240_v36 = vpop.f32.mrb[8].mxu0 }
 0x182   : > { %8411 = vst [vmem:[#allocation7_spill] sm:$0xff] %v5542_v18  ;;  %8412 = vst [vmem:[#allocation8_spill] sm:$0xff] %v5544_v55  ;;  %v1242_v58 = vpop.f32.mrb[9].mxu0  ;;  %v1799_v3 = vmul.f32 %v5549_v6, %v1240_v36  ;;  %v1825_v24 = vmul.f32 %v5554_v19, %v1240_v36  ;;  %v8418_v18 = vmov 0  }
 0x183   : > { %v1800_v4 = vmul.f32 %v5535_v25, %v1242_v58  ;;  %v1826_v51 = vmul.f32 %v5540_v26, %v1242_v58  ;;  %v1244_v15 = vpop.f32.mrb[10].mxu0 }
 0x184   : > { %v1246_v9 = vpop.f32.mrb[11].mxu0  ;;  %v1801_v38 = vmul.f32 %v5571_v2, %v1244_v15  ;;  %v1827_v8 = vmul.f32 %v5576_v14, %v1244_v15  ;;  %v5609_v15 = vld [vmem:[%s8270_s2 + $0x68] sm:$0xff] }
 0x185   : > { %v2224_v22 = vsel %vm2207_vm10, %v1800_v4, 0.0  ;;  %v2276_v11 = vsel %vm2207_vm10, %v1826_v51, 0.0  ;;  %v1802_v31 = vmul.f32 %v5559_v46, %v1246_v9  ;;  %v1828_v7 = vmul.f32 %v5564_v57, %v1246_v9 }
 0x186   : > { %4651 = vmatmul.mubr.msk.bf16.gmra.mrb[68].mxu1 %vm1029_vm2, %v972_v60  ;;  %v5592_v42 = vadd.f32 %v2224_v22, %v1799_v3  ;;  %v5594_v36 = vadd.f32 %v2276_v11, %v1825_v24  ;;  %v4585_v51 = vsel %vm706_vm15, 1.0, %v8274_v20  ;;  %v4584_v60 = vsel %vm705_vm0, 1.0, %v8274_v20  ;;  %v5614_v3 = vld [vmem:[%s8270_s2 + $0x138] sm:$0xff]  ;;  %v5628_v22 = vld [vmem:[%s8270_s2 + $0x130] sm:$0xff]  ;;  %v5650_v20 = vld [vmem:[%s8270_s2 + $0x140] sm:$0xff] }
 0x187   : > { %1658 = vmatprep.mubr.bf16.mxu1 %v8276_v1  ;;  %v2228_v58 = vsel %vm2207_vm10, %v1802_v31, 0.0  ;;  %v2280_v4 = vsel %vm2207_vm10, %v1828_v7, 0.0  ;;  %v5633_v31 = vld [vmem:[%s8270_s2 + $0x78] sm:$0xff]  ;;  %v5638_v7 = vld [vmem:[%s8270_s2 + $0x148] sm:$0xff]  ;;  %8417 = vst [vmem:[#allocation13_spill] sm:$0xff] %v5650_v20 }
 0x188   : > { %8413 = vst [vmem:[#allocation9_spill] sm:$0xff] %v5592_v42  ;;  %8414 = vst [vmem:[#allocation10_spill] sm:$0xff] %v5594_v36  ;;  %v5616_v24 = vadd.f32 %v2228_v58, %v1801_v38  ;;  %v5618_v9 = vadd.f32 %v2280_v4, %v1827_v8  ;;  %v973_v38 = vpack.c.bf16 %v4585_v51, %v4584_v60 }
 0x189   : > { %v1250_v16 = vpop.f32.mrb[12].mxu0 }
 0x18a   : > { %8415 = vst [vmem:[#allocation11_spill] sm:$0xff] %v5616_v24  ;;  %8416 = vst [vmem:[#allocation12_spill] sm:$0xff] %v5618_v9  ;;  %v1252_v11 = vpop.f32.mrb[13].mxu0  ;;  %v1803_v51 = vmul.f32 %v5623_v17, %v1250_v16  ;;  %v1829_v60 = vmul.f32 %v5628_v22, %v1250_v16 }
 0x18b   : > { %v1804_v8 = vmul.f32 %v5609_v15, %v1252_v11  ;;  %v1830_v58 = vmul.f32 %v5614_v3, %v1252_v11  ;;  %v1254_v4 = vpop.f32.mrb[14].mxu0 }
 0x18c   : > { %v1256_v11 = vpop.f32.mrb[15].mxu0  ;;  %v1805_v42 = vmul.f32 %v5645_v10, %v1254_v4  ;;  %v1831_v55 = vmul.f32 %v5650_v20, %v1254_v4  ;;  %v5702_v4 = vld [vmem:[%s8270_s2 + $0x150] sm:$0xff] }
 0x18d   : > { %v2232_v1 = vsel %vm2207_vm10, %v1804_v8, 0.0  ;;  %v2284_v9 = vsel %vm2207_vm10, %v1830_v58, 0.0  ;;  %v1806_v24 = vmul.f32 %v5633_v31, %v1256_v11  ;;  %v1832_v36 = vmul.f32 %v5638_v7, %v1256_v11 }
 0x18e   : > { %4652 = vmatmul.mubr.msk.bf16.gmra.mrb[72].mxu1 %vm1029_vm2, %v973_v38  ;;  %v5666_v35 = vadd.f32 %v2232_v1, %v1803_v51  ;;  %v5668_v16 = vadd.f32 %v2284_v9, %v1829_v60  ;;  %v4587_v11 = vsel %vm708_vm1, 1.0, %v8421_v47  ;;  %v4586_v38 = vsel %vm707_vm3, 1.0, %v8421_v47  ;;  %v5683_v1 = vld [vmem:[%s8270_s2 + $0x88] sm:$0xff]  ;;  %v5707_v60 = vld [vmem:[%s8270_s2 + $0x98] sm:$0xff] }
 0x18f   : > { %1668 = vmatprep.mubr.bf16.mxu1 %v8418_v18  ;;  %v2236_v8 = vsel %vm2207_vm10, %v1806_v24, 0.0  ;;  %v2288_v58 = vsel %vm2207_vm10, %v1832_v36, 0.0  ;;  %8422 = vst [vmem:[#allocation16_spill] sm:$0xff] %v5683_v1  ;;  %v5688_v24 = vld [vmem:[%s8270_s2 + $0x158] sm:$0xff]  ;;  %vm3264_vm1 = vcmask 195712   ;;  %vm3271_vm3 = vcmask 261312  }
 0x190   : > { %8419 = vst [vmem:[#allocation14_spill] sm:$0xff] %v5666_v35  ;;  %8420 = vst [vmem:[#allocation15_spill] sm:$0xff] %v5668_v16  ;;  %v5690_v36 = vadd.f32 %v2236_v8, %v1805_v42  ;;  %v5692_v9 = vadd.f32 %v2288_v58, %v1831_v55  ;;  %v5712_v55 = vld [vmem:[%s8270_s2 + $0x168] sm:$0xff]  ;;  %v974_v42 = vpack.c.bf16 %v4587_v11, %v4586_v38  ;;  %v5724_v16 = vld [vmem:[%s8270_s2 + $0x160] sm:$0xff] }
 0x191   : > { %8423 = vst [vmem:[#allocation17_spill] sm:$0xff] %v5688_v24  ;;  %v1260_v23 = vpop.f32.mrb[16].mxu0  ;;  %8427 = vst [vmem:[#allocation21_spill] sm:$0xff] %v5712_v55 }
 0x192   : > { %8424 = vst [vmem:[#allocation18_spill] sm:$0xff] %v5690_v36  ;;  %8425 = vst [vmem:[#allocation19_spill] sm:$0xff] %v5692_v9  ;;  %v1262_v51 = vpop.f32.mrb[17].mxu0  ;;  %v5719_v36 = vld [vmem:[%s8270_s2 + $0x90] sm:$0xff]  ;;  %v1807_v11 = vmul.f32 %v5697_v43, %v1260_v23  ;;  %v1833_v38 = vmul.f32 %v5702_v4, %v1260_v23 }
 0x193   : > { %v1808_v8 = vmul.f32 %v5683_v1, %v1262_v51  ;;  %v1834_v58 = vmul.f32 %v5688_v24, %v1262_v51  ;;  %v1264_v9 = vpop.f32.mrb[18].mxu0  ;;  %8428 = vst [vmem:[#allocation22_spill] sm:$0xff] %v5719_v36  ;;  %8429 = vst [vmem:[#allocation23_spill] sm:$0xff] %v5724_v16 }
 0x194   : > { %v1266_v51 = vpop.f32.mrb[19].mxu0  ;;  %v1809_v1 = vmul.f32 %v5719_v36, %v1264_v9  ;;  %v1835_v20 = vmul.f32 %v5724_v16, %v1264_v9  ;;  %v4588_v9 = vsel %vm709_vm5, 1.0, %v8421_v47  ;;  %vm3285_vm5 = vcmask 392512  }
 0x195   : > { %v2240_v35 = vsel %vm2207_vm10, %v1808_v8, 0.0  ;;  %v2292_v61 = vsel %vm2207_vm10, %v1834_v58, 0.0  ;;  %v1810_v32 = vmul.f32 %v5707_v60, %v1266_v51  ;;  %v1836_v24 = vmul.f32 %v5712_v55, %v1266_v51 }
 0x196   : > { %4653 = vmatmul.mubr.msk.bf16.gmra.mrb[76].mxu1 %vm1029_vm2, %v974_v42  ;;  %v5740_v43 = vadd.f32 %v2240_v35, %v1807_v11  ;;  %v5742_v23 = vadd.f32 %v2292_v61, %v1833_v38  ;;  %v4589_v51 = vsel %vm710_vm4, 1.0, %v8421_v47  ;;  %v5757_v35 = vld [vmem:[%s8270_s2 + $0xa8] sm:$0xff]  ;;  %v5776_v42 = vld [vmem:[%s8270_s2 + $0x170] sm:$0xff]  ;;  %v5781_v38 = vld [vmem:[%s8270_s2 + $0xb8] sm:$0xff]  ;;  %vm3278_vm4 = vcmask 326912  }
 0x197   : > { %1678 = vmatprep.mubr.bf16.mxu1 %v8418_v18  ;;  %v2244_v8 = vsel %vm2207_vm10, %v1810_v32, 0.0  ;;  %v2296_v58 = vsel %vm2207_vm10, %v1836_v24, 0.0  ;;  %8432 = vst [vmem:[#allocation26_spill] sm:$0xff] %v5757_v35  ;;  %v5762_v32 = vld [vmem:[%s8270_s2 + $0x178] sm:$0xff]  ;;  %8437 = vst [vmem:[#allocation31_spill] sm:$0xff] %v5776_v42 }
 0x198   : > { %8430 = vst [vmem:[#allocation24_spill] sm:$0xff] %v5740_v43  ;;  %8431 = vst [vmem:[#allocation25_spill] sm:$0xff] %v5742_v23  ;;  %v5764_v61 = vadd.f32 %v2244_v8, %v1809_v1  ;;  %v5766_v24 = vadd.f32 %v2296_v58, %v1835_v20  ;;  %v5786_v20 = vld [vmem:[%s8270_s2 + $0x188] sm:$0xff]  ;;  %v975_v1 = vpack.c.bf16 %v4589_v51, %v4588_v9  ;;  %v5798_v43 = vld [vmem:[%s8270_s2 + $0x180] sm:$0xff] }
 0x199   : > { %8433 = vst [vmem:[#allocation27_spill] sm:$0xff] %v5762_v32  ;;  %v1270_v27 = vpop.f32.mrb[20].mxu0  ;;  %8438 = vst [vmem:[#allocation32_spill] sm:$0xff] %v5781_v38 }
 0x19a   : > { %8434 = vst [vmem:[#allocation28_spill] sm:$0xff] %v5764_v61  ;;  %8435 = vst [vmem:[#allocation29_spill] sm:$0xff] %v5766_v24  ;;  %v1272_v11 = vpop.f32.mrb[21].mxu0  ;;  %v5793_v61 = vld [vmem:[%s8270_s2 + $0xb0] sm:$0xff]  ;;  %v1811_v51 = vmul.f32 %v5771_v21, %v1270_v27  ;;  %v1837_v9 = vmul.f32 %v5776_v42, %v1270_v27 }
 0x19b   : > { %8439 = vst [vmem:[#allocation33_spill] sm:$0xff] %v5786_v20  ;;  %v1812_v8 = vmul.f32 %v5757_v35, %v1272_v11  ;;  %v1838_v58 = vmul.f32 %v5762_v32, %v1272_v11  ;;  %v1274_v24 = vpop.f32.mrb[22].mxu0  ;;  %8440 = vst [vmem:[#allocation34_spill] sm:$0xff] %v5793_v61 }
 0x19c   : > { %8441 = vst [vmem:[#allocation35_spill] sm:$0xff] %v5798_v43  ;;  %v1276_v11 = vpop.f32.mrb[23].mxu0  ;;  %v1813_v36 = vmul.f32 %v5793_v61, %v1274_v24  ;;  %v1839_v55 = vmul.f32 %v5798_v43, %v1274_v24  ;;  %v4590_v24 = vsel %vm711_vm7, 1.0, %v8421_v47  ;;  %vm3299_vm7 = vcmask 523712  }
 0x19d   : > { %v2248_v23 = vsel %vm2207_vm10, %v1812_v8, 0.0  ;;  %v2300_v32 = vsel %vm2207_vm10, %v1838_v58, 0.0  ;;  %v1814_v35 = vmul.f32 %v5781_v38, %v1276_v11  ;;  %v1840_v16 = vmul.f32 %v5786_v20, %v1276_v11 }
 0x19e   : > { %4654 = vmatmul.mubr.msk.bf16.gmra.mrb[80].mxu1 %vm1029_vm2, %v975_v1  ;;  %v5814_v21 = vadd.f32 %v2248_v23, %v1811_v51  ;;  %v5816_v27 = vadd.f32 %v2300_v32, %v1837_v9  ;;  %v4591_v11 = vsel %vm712_vm6, 1.0, %v8421_v47  ;;  %v5831_v23 = vld [vmem:[%s8270_s2 + $0xc8] sm:$0xff]  ;;  %v5850_v1 = vld [vmem:[%s8270_s2 + $0x190] sm:$0xff]  ;;  %vm3292_vm6 = vcmask 458112  }
 0x19f   : > { %1688 = vmatprep.mubr.bf16.mxu1 %v8418_v18  ;;  %v2252_v8 = vsel %vm2207_vm10, %v1814_v35, 0.0  ;;  %v2304_v58 = vsel %vm2207_vm10, %v1840_v16, 0.0  ;;  %8444 = vst [vmem:[#allocation38_spill] sm:$0xff] %v5831_v23  ;;  %v5836_v35 = vld [vmem:[%s8270_s2 + $0x198] sm:$0xff]  ;;  %8449 = vst [vmem:[#allocation43_spill] sm:$0xff] %v5850_v1  ;;  %v976_v9 = vpack.c.bf16 %v4591_v11, %v4590_v24 }
 0x1a0   : > { %8442 = vst [vmem:[#allocation36_spill] sm:$0xff] %v5814_v21  ;;  %8443 = vst [vmem:[#allocation37_spill] sm:$0xff] %v5816_v27  ;;  %v5838_v16 = vadd.f32 %v2252_v8, %v1813_v36  ;;  %v5840_v32 = vadd.f32 %v2304_v58, %v1839_v55 }
 0x1a1   : > { %8445 = vst [vmem:[#allocation39_spill] sm:$0xff] %v5836_v35  ;;  %v1280_v29 = vpop.f32.mrb[24].mxu0 }
 0x1a2   : > { %8446 = vst [vmem:[#allocation40_spill] sm:$0xff] %v5838_v16  ;;  %8447 = vst [vmem:[#allocation41_spill] sm:$0xff] %v5840_v32  ;;  %v1282_v51 = vpop.f32.mrb[25].mxu0  ;;  %v1815_v55 = vmul.f32 %v5845_v30, %v1280_v29  ;;  %v1841_v58 = vmul.f32 %v5850_v1, %v1280_v29 }
 0x1a3   : > { %v1816_v27 = vmul.f32 %v5831_v23, %v1282_v51  ;;  %v1842_v36 = vmul.f32 %v5836_v35, %v1282_v51  ;;  %v1284_v8 = vpop.f32.mrb[26].mxu0 }
 0x1a4   : > { %v1286_v32 = vpop.f32.mrb[27].mxu0  ;;  %v1843_v21 = vmul.f32 %v5405_v33, %v1284_v8  ;;  %v1869_v35 = vmul.f32 %v5410_v0, %v1284_v8 }
 0x1a5   : > { %v2256_v16 = vsel %vm2207_vm10, %v1816_v27, 0.0  ;;  %v2308_v11 = vsel %vm2207_vm10, %v1842_v36, 0.0  ;;  %v1844_v24 = vmul.f32 %v5395_v63, %v1286_v32  ;;  %v1870_v51 = vmul.f32 %v5400_v56, %v1286_v32 }
 0x1a6   : > { %4655 = vmatmul.mubr.msk.bf16.gmra.mrb[84].mxu1 %vm1029_vm2, %v976_v9  ;;  %v5868_v23 = vadd.f32 %v2256_v16, %v1815_v55  ;;  %v5870_v29 = vadd.f32 %v2308_v11, %v1841_v58  ;;  %v4593_v32 = vsel %vm714_vm8, 1.0, %v8421_v47  ;;  %v4592_v9 = vsel %vm713_vm9, 1.0, %v8421_v47 }
 0x1a7   : > { %1698 = vmatprep.mubr.bf16.mxu1 %v8418_v18  ;;  %v2312_v27 = vsel %vm2207_vm10, %v1844_v24, 0.0  ;;  %v2364_v36 = vsel %vm2207_vm10, %v1870_v51, 0.0  ;;  %v977_v11 = vpack.c.bf16 %v4593_v32, %v4592_v9  ;;  %vm3306_vm8 = vcmask 589312  }
 0x1a8   : > { %8450 = vst [vmem:[#allocation44_spill] sm:$0xff] %v5868_v23  ;;  %8451 = vst [vmem:[#allocation45_spill] sm:$0xff] %v5870_v29  ;;  %v5882_v8 = vadd.f32 %v2364_v36, %v1869_v35  ;;  %v5884_v16 = vadd.f32 %v2312_v27, %v1843_v21  ;;  %vm3320_vm9 = vcmask 720512  }
 0x1a9   : > { %v1290_v55 = vpop.f32.mrb[28].mxu0 }
 0x1aa   : > { %8452 = vst [vmem:[#allocation46_spill] sm:$0xff] %v5882_v8  ;;  %8453 = vst [vmem:[#allocation47_spill] sm:$0xff] %v5884_v16  ;;  %v1292_v58 = vpop.f32.mrb[29].mxu0  ;;  %v1845_v34 = vmul.f32 %v5427_v44, %v1290_v55  ;;  %v1871_v48 = vmul.f32 %v5432_v28, %v1290_v55  ;;  %v8474_v8 = vld [vmem:[#allocation21_spill] sm:$0xff] }
 0x1ab   : > { %v1846_v24 = vmul.f32 %v5415_v37, %v1292_v58  ;;  %v1872_v51 = vmul.f32 %v5420_v12, %v1292_v58  ;;  %v1294_v29 = vpop.f32.mrb[30].mxu0 }
 0x1ac   : > { %v1296_v21 = vpop.f32.mrb[31].mxu0  ;;  %v1847_v9 = vmul.f32 %v5475_v62, %v1294_v29  ;;  %v1873_v58 = vmul.f32 %v5480_v45, %v1294_v29  ;;  %v4594_v29 = vsel %vm715_vm12, 1.0, %v8421_v47  ;;  %vm3334_vm12 = vcmask 851712  }
 0x1ad   : > { %v2316_v35 = vsel %vm2207_vm10, %v1846_v24, 0.0  ;;  %v2368_v27 = vsel %vm2207_vm10, %v1872_v51, 0.0  ;;  %v1848_v36 = vmul.f32 %v5461_v49, %v1296_v21  ;;  %v1874_v32 = vmul.f32 %v5466_v50, %v1296_v21 }
 0x1ae   : > { %4656 = vmatmul.mubr.msk.bf16.gmra.mrb[88].mxu1 %vm1029_vm2, %v977_v11  ;;  %v5902_v16 = vadd.f32 %v2316_v35, %v1845_v34  ;;  %v5904_v55 = vadd.f32 %v2368_v27, %v1871_v48  ;;  %v4595_v21 = vsel %vm716_vm11, 1.0, %v8421_v47  ;;  %vm3327_vm11 = vcmask 786112  }
 0x1af   : > { %1708 = vmatprep.mubr.bf16.mxu1 %v8418_v18  ;;  %v2320_v24 = vsel %vm2207_vm10, %v1848_v36, 0.0  ;;  %v2372_v51 = vsel %vm2207_vm10, %v1874_v32, 0.0  ;;  %v978_v27 = vpack.c.bf16 %v4595_v21, %v4594_v29 }
 0x1b0   : > { %8454 = vst [vmem:[#allocation48_spill] sm:$0xff] %v5902_v16  ;;  %8455 = vst [vmem:[#allocation49_spill] sm:$0xff] %v5904_v55  ;;  %v5916_v11 = vadd.f32 %v2320_v24, %v1847_v9  ;;  %v5918_v34 = vadd.f32 %v2372_v51, %v1873_v58 }
 0x1b1   : > { %v1300_v48 = vpop.f32.mrb[32].mxu0 }
 0x1b2   : > { %8456 = vst [vmem:[#allocation50_spill] sm:$0xff] %v5916_v11  ;;  %8457 = vst [vmem:[#allocation51_spill] sm:$0xff] %v5918_v34  ;;  %v1302_v35 = vpop.f32.mrb[33].mxu0  ;;  %v1849_v39 = vmul.f32 %v5497_v52, %v1300_v48  ;;  %v1875_v40 = vmul.f32 %v5502_v5, %v1300_v48 }
 0x1b3   : > { %v1850_v36 = vmul.f32 %v5485_v53, %v1302_v35  ;;  %v1876_v32 = vmul.f32 %v5490_v59, %v1302_v35  ;;  %v1304_v55 = vpop.f32.mrb[34].mxu0 }
 0x1b4   : > { %v1306_v9 = vpop.f32.mrb[35].mxu0  ;;  %v1851_v29 = vmul.f32 %v5549_v6, %v1304_v55  ;;  %v1877_v35 = vmul.f32 %v5554_v19, %v1304_v55  ;;  %v4596_v55 = vsel %vm717_vm14, 1.0, %v8421_v47  ;;  %vm4313_vm14 = vcmask 844800  }
 0x1b5   : > { %v2324_v58 = vsel %vm2207_vm10, %v1850_v36, 0.0  ;;  %v2376_v24 = vsel %vm2207_vm10, %v1876_v32, 0.0  ;;  %v1852_v51 = vmul.f32 %v5535_v25, %v1306_v9  ;;  %v1878_v21 = vmul.f32 %v5540_v26, %v1306_v9 }
 0x1b6   : > { %4657 = vmatmul.mubr.msk.bf16.gmra.mrb[92].mxu1 %vm1029_vm2, %v978_v27  ;;  %v5936_v11 = vadd.f32 %v2376_v24, %v1875_v40  ;;  %v5938_v48 = vadd.f32 %v2324_v58, %v1849_v39  ;;  %v4597_v9 = vsel %vm718_vm13, 1.0, %v8421_v47  ;;  %v616_v27 = vpop.permute.xlu1 %615  ;;  %v613_v39 = vpop.permute.xlu0 %612  ;;  %vm4296_vm13 = vcmask 1041409  }
 0x1b7   : > { %1718 = vmatprep.mubr.bf16.mxu1 %v8418_v18  ;;  %v2328_v36 = vsel %vm2207_vm10, %v1852_v51, 0.0  ;;  %v2380_v32 = vsel %vm2207_vm10, %v1878_v21, 0.0  ;;  %v979_v51 = vpack.c.bf16 %v4597_v9, %v4596_v55  ;;  %vm720_vm15 = vcmp.eq.s32.totalorder %v616_v27, %v4899_v13  ;;  %v8466_v27 = vld [vmem:[#allocation13_spill] sm:$0xff] }
 0x1b8   : > { %8458 = vst [vmem:[#allocation52_spill] sm:$0xff] %v5936_v11  ;;  %8459 = vst [vmem:[#allocation53_spill] sm:$0xff] %v5938_v48  ;;  %v5950_v34 = vadd.f32 %v2328_v36, %v1851_v29  ;;  %v5952_v40 = vadd.f32 %v2380_v32, %v1877_v35  ;;  %vm719_vm0 = vcmp.eq.s32.totalorder %v613_v39, %v4899_v13 }
 0x1b9   : > { %v1310_v58 = vpop.f32.mrb[36].mxu0 }
 0x1ba   : > { %8460 = vst [vmem:[#allocation54_spill] sm:$0xff] %v5950_v34  ;;  %8461 = vst [vmem:[#allocation55_spill] sm:$0xff] %v5952_v40  ;;  %v1312_v24 = vpop.f32.mrb[37].mxu0  ;;  %v1853_v41 = vmul.f32 %v5571_v2, %v1310_v58  ;;  %v1879_v29 = vmul.f32 %v5576_v14, %v1310_v58 }
 0x1bb   : > { %v1854_v21 = vmul.f32 %v5559_v46, %v1312_v24  ;;  %v1880_v11 = vmul.f32 %v5564_v57, %v1312_v24  ;;  %v1314_v54 = vpop.f32.mrb[38].mxu0 }
 0x1bc   : > { %v1316_v36 = vpop.f32.mrb[39].mxu0  ;;  %v1855_v24 = vmul.f32 %v5623_v17, %v1314_v54  ;;  %v1881_v34 = vmul.f32 %v5628_v22, %v1314_v54 }
 0x1bd   : > { %v2332_v35 = vsel %vm2207_vm10, %v1854_v21, 0.0  ;;  %v2384_v32 = vsel %vm2207_vm10, %v1880_v11, 0.0  ;;  %v1856_v9 = vmul.f32 %v5609_v15, %v1316_v36  ;;  %v1882_v55 = vmul.f32 %v5614_v3, %v1316_v36 }
 0x1be   : > { %4658 = vmatmul.mubr.msk.bf16.gmra.mrb[96].mxu1 %vm1029_vm2, %v979_v51  ;;  %v5968_v40 = vadd.f32 %v2384_v32, %v1879_v29  ;;  %v5970_v58 = vadd.f32 %v2332_v35, %v1853_v41  ;;  %v4599_v36 = vsel %vm720_vm15, 1.0, %v8421_v47  ;;  %v4598_v51 = vsel %vm719_vm0, 1.0, %v8421_v47 }
 0x1bf   : > { %1728 = vmatprep.mubr.bf16.mxu1 %v8418_v18  ;;  %v2336_v21 = vsel %vm2207_vm10, %v1856_v9, 0.0  ;;  %v2388_v11 = vsel %vm2207_vm10, %v1882_v55, 0.0  ;;  %v980_v41 = vpack.c.bf16 %v4599_v36, %v4598_v51  ;;  %v8469_v36 = vld [vmem:[#allocation20_spill] sm:$0xff]  ;;  %vm4421_vm15 = vcmask 1042434  }
 0x1c0   : > { %8462 = vst [vmem:[#allocation56_spill] sm:$0xff] %v5968_v40  ;;  %8463 = vst [vmem:[#allocation57_spill] sm:$0xff] %v5970_v58  ;;  %v5980_v48 = vadd.f32 %v2336_v21, %v1855_v24  ;;  %v5982_v54 = vadd.f32 %v2388_v11, %v1881_v34  ;;  %v8467_v24 = vld [vmem:[#allocation16_spill] sm:$0xff]  ;;  %v8468_v21 = vld [vmem:[#allocation17_spill] sm:$0xff]  ;;  %vm4423_vm0 = vcmask 1043459  }
 0x1c1   : > { %v1320_v18 = vpop.f32.mrb[40].mxu0 }
 0x1c2   : > { %8464 = vst [vmem:[#allocation58_spill] sm:$0xff] %v5980_v48  ;;  %8465 = vst [vmem:[#allocation59_spill] sm:$0xff] %v5982_v54  ;;  %v1322_v29 = vpop.f32.mrb[41].mxu0  ;;  %v1857_v55 = vmul.f32 %v5645_v10, %v1320_v18  ;;  %v1883_v40 = vmul.f32 %v8466_v27, %v1320_v18 }
 0x1c3   : > { %v1858_v35 = vmul.f32 %v5633_v31, %v1322_v29  ;;  %v1884_v32 = vmul.f32 %v5638_v7, %v1322_v29  ;;  %v1324_v9 = vpop.f32.mrb[42].mxu0 }
 0x1c4   : > { %v1326_v58 = vpop.f32.mrb[43].mxu0  ;;  %v1859_v51 = vmul.f32 %v8469_v36, %v1324_v9  ;;  %v1885_v29 = vmul.f32 %v5702_v4, %v1324_v9  ;;  %v8475_v9 = vld [vmem:[#allocation22_spill] sm:$0xff] }
 0x1c5   : > { %v2340_v39 = vsel %vm2207_vm10, %v1858_v35, 0.0  ;;  %v2392_v47 = vsel %vm2207_vm10, %v1884_v32, 0.0  ;;  %v1860_v34 = vmul.f32 %v8467_v24, %v1326_v58  ;;  %v1886_v11 = vmul.f32 %v8468_v21, %v1326_v58 }
 0x1c6   : > { %4659 = vmatmul.mubr.msk.bf16.gmra.mrb[100].mxu1 %vm1029_vm2, %v980_v41  ;;  %v5995_v48 = vadd.f32 %v2392_v47, %v1883_v40  ;;  %v5997_v54 = vadd.f32 %v2340_v39, %v1857_v55  ;;  %v8476_v47 = vld [vmem:[#allocation23_spill] sm:$0xff]  ;;  %vm3257_vm2 = vcmask 130112  }
 0x1c7   : > { %v2344_v18 = vsel %vm2207_vm10, %v1860_v34, 0.0  ;;  %v2396_v35 = vsel %vm2207_vm10, %v1886_v11, 0.0 }
 0x1c8   : > { %8470 = vst [vmem:[#allocation13_spill] sm:$0xff] %v5995_v48  ;;  %8471 = vst [vmem:[#allocation16_spill] sm:$0xff] %v5997_v54  ;;  %v6001_v13 = vadd.f32 %v2396_v35, %v1885_v29  ;;  %v6003_v32 = vadd.f32 %v2344_v18, %v1859_v51  ;;  %v8477_v29 = vld [vmem:[#allocation26_spill] sm:$0xff]  ;;  %v8478_v51 = vld [vmem:[#allocation27_spill] sm:$0xff] }
 0x1c9   : > { %v1330_v16 = vpop.f32.mrb[44].mxu0 }
 0x1ca   : > { %8472 = vst [vmem:[#allocation17_spill] sm:$0xff] %v6001_v13  ;;  %8473 = vst [vmem:[#allocation60_spill] sm:$0xff] %v6003_v32  ;;  %v1332_v58 = vpop.f32.mrb[45].mxu0  ;;  %v1861_v40 = vmul.f32 %v8475_v9, %v1330_v16  ;;  %v1887_v55 = vmul.f32 %v8476_v47, %v1330_v16  ;;  %v8479_v32 = vld [vmem:[#allocation30_spill] sm:$0xff] }
 0x1cb   : > { %v1862_v41 = vmul.f32 %v5707_v60, %v1332_v58  ;;  %v1888_v23 = vmul.f32 %v8474_v8, %v1332_v58  ;;  %v1334_v36 = vpop.f32.mrb[46].mxu0 }
 0x1cc   : > { %v1336_v39 = vpop.f32.mrb[47].mxu0  ;;  %v1863_v13 = vmul.f32 %v8479_v32, %v1334_v36  ;;  %v1889_v48 = vmul.f32 %v5776_v42, %v1334_v36  ;;  %v8485_v42 = vld [vmem:[#allocation39_spill] sm:$0xff] }
 0x1cd   : > { %v2348_v34 = vsel %vm2207_vm10, %v1862_v41, 0.0  ;;  %v2400_v11 = vsel %vm2207_vm10, %v1888_v23, 0.0  ;;  %v1864_v35 = vmul.f32 %v8477_v29, %v1336_v39  ;;  %v1890_v18 = vmul.f32 %v8478_v51, %v1336_v39 }
 0x1ce   : > { %v6015_v54 = vadd.f32 %v2348_v34, %v1861_v40  ;;  %v6017_v58 = vadd.f32 %v2400_v11, %v1887_v55 }
 0x1cf   : > { %v2352_v8 = vsel %vm2207_vm10, %v1864_v35, 0.0  ;;  %v2404_v16 = vsel %vm2207_vm10, %v1890_v18, 0.0 }
 0x1d0   : > { %8480 = vst [vmem:[#allocation61_spill] sm:$0xff] %v6015_v54  ;;  %8481 = vst [vmem:[#allocation62_spill] sm:$0xff] %v6017_v58  ;;  %v6021_v41 = vadd.f32 %v2404_v16, %v1889_v48  ;;  %v6023_v23 = vadd.f32 %v2352_v8, %v1863_v13 }
 0x1d1   : > { %v1480_v47 = vpop.f32.mrb[0].mxu1  ;;  %v1340_v29 = vpop.f32.mrb[48].mxu0 }
 0x1d2   : > { %8482 = vst [vmem:[#allocation63_spill] sm:$0xff] %v6021_v41  ;;  %8483 = vst [vmem:[#allocation64_spill] sm:$0xff] %v6023_v23  ;;  %v1999_v39 = vmul.f32 %v5405_v33, %v1480_v47  ;;  %v2025_v51 = vmul.f32 %v5410_v0, %v1480_v47  ;;  %v1482_v32 = vpop.f32.mrb[1].mxu1  ;;  %v1865_v36 = vmul.f32 %v5793_v61, %v1340_v29  ;;  %v1342_v55 = vpop.f32.mrb[49].mxu0 }
 0x1d3   : > { %v1891_v40 = vmul.f32 %v5798_v43, %v1340_v29  ;;  %v2000_v34 = vmul.f32 %v5395_v63, %v1482_v32  ;;  %v2026_v11 = vmul.f32 %v5400_v56, %v1482_v32  ;;  %v1484_v35 = vpop.f32.mrb[2].mxu1  ;;  %v1866_v48 = vmul.f32 %v5781_v38, %v1342_v55  ;;  %v1344_v8 = vpop.f32.mrb[50].mxu0 }
 0x1d4   : > { %v1892_v13 = vmul.f32 %v5786_v20, %v1342_v55  ;;  %v2001_v18 = vmul.f32 %v5427_v44, %v1484_v35  ;;  %v2027_v47 = vmul.f32 %v5432_v28, %v1484_v35  ;;  %v1486_v16 = vpop.f32.mrb[3].mxu1  ;;  %v1867_v58 = vmul.f32 %v5845_v30, %v1344_v8  ;;  %v1346_v32 = vpop.f32.mrb[51].mxu0  ;;  %v8484_v55 = vld [vmem:[#allocation38_spill] sm:$0xff] }
 0x1d5   : > { %v2624_v23 = vsel %vm2207_vm10, %v2000_v34, 0.0  ;;  %v2676_v29 = vsel %vm2207_vm10, %v2026_v11, 0.0  ;;  %v1893_v41 = vmul.f32 %v5850_v1, %v1344_v8  ;;  %v2356_v54 = vsel %vm2207_vm10, %v1866_v48, 0.0 }
 0x1d6   : > { %v2408_v43 = vsel %vm2207_vm10, %v1892_v13, 0.0  ;;  %v1868_v20 = vmul.f32 %v8484_v55, %v1346_v32  ;;  %v1894_v61 = vmul.f32 %v8485_v42, %v1346_v32  ;;  %v2002_v35 = vmul.f32 %v5415_v37, %v1486_v16 }
 0x1d7   : > { %v2028_v38 = vmul.f32 %v5420_v12, %v1486_v16  ;;  %v2677_v34 = vadd.f32 %v2676_v29, %v2025_v51  ;;  %v2625_v9 = vadd.f32 %v2624_v23, %v1999_v39  ;;  %v6047_v8 = vadd.f32 %v2356_v54, %v1865_v36 }
 0x1d8   : > { %v2360_v11 = vsel %vm2207_vm10, %v1868_v20, 0.0  ;;  %v2412_v30 = vsel %vm2207_vm10, %v1894_v61, 0.0  ;;  %v6049_v1 = vadd.f32 %v2408_v43, %v1891_v40  ;;  %v2628_v48 = vsel %vm2207_vm10, %v2002_v35, 0.0 }
 0x1d9   : > { %8486 = vst [vmem:[#allocation38_spill] sm:$0xff] %v6047_v8  ;;  %v2680_v13 = vsel %vm2207_vm10, %v2028_v38, 0.0  ;;  %2678 = vadd.xlane.f32.xlu0 %v2677_v34  ;;  %2626 = vadd.xlane.f32.xlu1 %v2625_v9  ;;  %v1490_v32 = vpop.f32.mrb[4].mxu1  ;;  %v6053_v42 = vadd.f32 %v2412_v30, %v1893_v41  ;;  %v6055_v16 = vadd.f32 %v2360_v11, %v1867_v58  ;;  %v1350_v51 = vpop.f32.mrb[52].mxu0  ;;  %v8537_v8 = vld [vmem:[#allocation35_spill] sm:$0xff] }
 0x1da   : > { %8487 = vst [vmem:[#allocation65_spill] sm:$0xff] %v6049_v1  ;;  %v2003_v20 = vmul.f32 %v5475_v62, %v1490_v32  ;;  %v2029_v61 = vmul.f32 %v5480_v45, %v1490_v32  ;;  %v1492_v54 = vpop.f32.mrb[5].mxu1  ;;  %v2629_v23 = vadd.f32 %v2628_v48, %v2001_v18  ;;  %v2681_v43 = vadd.f32 %v2680_v13, %v2027_v47  ;;  %v1352_v38 = vpop.f32.mrb[53].mxu0  ;;  %v8490_v13 = vld [vmem:[#allocation3_spill] sm:$0xff]  ;;  %v6320_v1 = vld [vmem:[%s8270_s2 + $0xd0] sm:$0xff] }
 0x1db   : > { %8488 = vst [vmem:[#allocation66_spill] sm:$0xff] %v6053_v42  ;;  %8489 = vst [vmem:[#allocation67_spill] sm:$0xff] %v6055_v16  ;;  %v1895_v39 = vmul.f32 %v5405_v33, %v1350_v51  ;;  %v1921_v36 = vmul.f32 %v5410_v0, %v1350_v51  ;;  %v2004_v9 = vmul.f32 %v5461_v49, %v1492_v54  ;;  %v1494_v41 = vpop.f32.mrb[6].mxu1  ;;  %v1354_v29 = vpop.f32.mrb[54].mxu0 }
 0x1dc   : > { %v2030_v30 = vmul.f32 %v5466_v50, %v1492_v54  ;;  %v1896_v58 = vmul.f32 %v5395_v63, %v1352_v38  ;;  %v1922_v40 = vmul.f32 %v5400_v56, %v1352_v38  ;;  %v2005_v35 = vmul.f32 %v5497_v52, %v1494_v41  ;;  %v1496_v47 = vpop.f32.mrb[7].mxu1  ;;  %v1356_v48 = vpop.f32.mrb[55].mxu0 }
 0x1dd   : > { %v2031_v18 = vmul.f32 %v5502_v5, %v1494_v41  ;;  %v2632_v33 = vsel %vm2207_vm10, %v2004_v9, 0.0  ;;  %v1897_v34 = vmul.f32 %v5427_v44, %v1354_v29  ;;  %v1923_v11 = vmul.f32 %v5432_v28, %v1354_v29  ;;  %2214 = vadd.xlane.f32.xlu1 %v8490_v13  ;;  %2630 = vadd.xlane.f32.xlu0 %v2629_v23 }
 0x1de   : > { %v2684_v0 = vsel %vm2207_vm10, %v2030_v30, 0.0  ;;  %v2416_v63 = vsel %vm2207_vm10, %v1896_v58, 0.0  ;;  %v2468_v56 = vsel %vm2207_vm10, %v1922_v40, 0.0  ;;  %v1898_v32 = vmul.f32 %v5415_v37, %v1356_v48  ;;  %v8493_v40 = vld [vmem:[#allocation4_spill] sm:$0xff] }
 0x1df   : > { %v1924_v51 = vmul.f32 %v5420_v12, %v1356_v48  ;;  %v2006_v54 = vmul.f32 %v5485_v53, %v1496_v47  ;;  %v2032_v38 = vmul.f32 %v5490_v59, %v1496_v47  ;;  %v2685_v9 = vadd.f32 %v2684_v0, %v2029_v61  ;;  %v8494_v12 = vld [vmem:[#allocation5_spill] sm:$0xff] }
 0x1e0   : > { %v2633_v44 = vadd.f32 %v2632_v33, %v2003_v20  ;;  %v2420_v28 = vsel %vm2207_vm10, %v1898_v32, 0.0  ;;  %v6080_v41 = vadd.f32 %v2468_v56, %v1921_v36  ;;  %v6082_v23 = vadd.f32 %v2416_v63, %v1895_v39 }
 0x1e1   : > { %v2472_v30 = vsel %vm2207_vm10, %v1924_v51, 0.0  ;;  %v2636_v58 = vsel %vm2207_vm10, %v2006_v54, 0.0  ;;  %v2688_v37 = vsel %vm2207_vm10, %v2032_v38, 0.0  ;;  %2266 = vadd.xlane.f32.xlu1 %v8493_v40  ;;  %2218 = vadd.xlane.f32.xlu0 %v8494_v12  ;;  %v1500_v29 = vpop.f32.mrb[8].mxu1  ;;  %v6088_v47 = vadd.f32 %v2420_v28, %v1897_v34  ;;  %v1360_v61 = vpop.f32.mrb[56].mxu0 }
 0x1e2   : > { %8491 = vst [vmem:[#allocation3_spill] sm:$0xff] %v6080_v41  ;;  %8492 = vst [vmem:[#allocation68_spill] sm:$0xff] %v6082_v23  ;;  %v6090_v20 = vadd.f32 %v2472_v30, %v1923_v11  ;;  %v1502_v33 = vpop.f32.mrb[9].mxu1  ;;  %v6092_v0 = vadd.f32 %v2688_v37, %v2031_v18  ;;  %v2637_v36 = vadd.f32 %v2636_v58, %v2005_v35  ;;  %v1362_v39 = vpop.f32.mrb[57].mxu0  ;;  %v8497_v58 = vld [vmem:[#allocation6_spill] sm:$0xff] }
 0x1e3   : > { %8495 = vst [vmem:[#allocation4_spill] sm:$0xff] %v6088_v47  ;;  %v2008_v48 = vmul.f32 %v5535_v25, %v1502_v33  ;;  %v2034_v13 = vmul.f32 %v5540_v26, %v1502_v33  ;;  %v1504_v63 = vpop.f32.mrb[10].mxu1  ;;  %v2007_v56 = vmul.f32 %v5549_v6, %v1500_v29  ;;  %v2033_v32 = vmul.f32 %v5554_v19, %v1500_v29  ;;  %v6100_v51 = vpop.f32.mrb[58].mxu0  ;;  %v8513_v47 = vld [vmem:[#allocation32_spill] sm:$0xff] }
 0x1e4   : > { %8496 = vst [vmem:[#allocation5_spill] sm:$0xff] %v6090_v20  ;;  %v1900_v34 = vmul.f32 %v5461_v49, %v1362_v39  ;;  %v1926_v11 = vmul.f32 %v5466_v50, %v1362_v39  ;;  %v1506_v54 = vpop.f32.mrb[11].mxu1  ;;  %v1899_v18 = vmul.f32 %v5475_v62, %v1360_v61  ;;  %v1925_v35 = vmul.f32 %v5480_v45, %v1360_v61  ;;  %v1366_v30 = vpop.f32.mrb[59].mxu0 }
 0x1e5   : > { %v2640_v38 = vsel %vm2207_vm10, %v2008_v48, 0.0  ;;  %v2692_v28 = vsel %vm2207_vm10, %v2034_v13, 0.0  ;;  %2682 = vadd.xlane.f32.xlu1 %v2681_v43  ;;  %2270 = vadd.xlane.f32.xlu0 %v8497_v58  ;;  %v1901_v50 = vmul.f32 %v5497_v52, %v6100_v51  ;;  %v1902_v40 = vmul.f32 %v5485_v53, %v1366_v30 }
 0x1e6   : > { %v2424_v37 = vsel %vm2207_vm10, %v1900_v34, 0.0  ;;  %v2476_v49 = vsel %vm2207_vm10, %v1926_v11, 0.0  ;;  %v2010_v62 = vmul.f32 %v5559_v46, %v1506_v54  ;;  %v2036_v45 = vmul.f32 %v5564_v57, %v1506_v54 }
 0x1e7   : > { %v6114_v12 = vadd.f32 %v2692_v28, %v2033_v32  ;;  %v6116_v29 = vadd.f32 %v2640_v38, %v2007_v56  ;;  %v2009_v43 = vmul.f32 %v5571_v2, %v1504_v63  ;;  %v2035_v61 = vmul.f32 %v5576_v14, %v1504_v63 }
 0x1e8   : > { %v2428_v33 = vsel %vm2207_vm10, %v1902_v40, 0.0  ;;  %v6121_v39 = vadd.f32 %v2476_v49, %v1925_v35  ;;  %v2644_v52 = vsel %vm2207_vm10, %v2010_v62, 0.0  ;;  %v2696_v53 = vsel %vm2207_vm10, %v2036_v45, 0.0  ;;  %v8501_v40 = vld [vmem:[#allocation7_spill] sm:$0xff]  ;;  %v8502_v62 = vld [vmem:[#allocation8_spill] sm:$0xff] }
 0x1e9   : > { %2686 = vadd.xlane.f32.xlu0 %v2685_v9  ;;  %2634 = vadd.xlane.f32.xlu1 %v2633_v44  ;;  %v1510_v48 = vpop.f32.mrb[12].mxu1  ;;  %v6125_v13 = vadd.f32 %v2424_v37, %v1899_v18  ;;  %v6127_v32 = vadd.f32 %v2428_v33, %v1901_v50  ;;  %v6129_v56 = vpop.f32.mrb[60].mxu0  ;;  %v6131_v11 = vadd.f32 %v2696_v53, %v2035_v61 }
 0x1ea   : > { %8498 = vst [vmem:[#allocation6_spill] sm:$0xff] %v6121_v39  ;;  %v1512_v34 = vpop.f32.mrb[13].mxu1  ;;  %v6133_v63 = vadd.f32 %v2644_v52, %v2009_v43  ;;  %v1372_v54 = vpop.f32.mrb[61].mxu0  ;;  %v2011_v18 = vmul.f32 %v5623_v17, %v1510_v48  ;;  %v2037_v58 = vmul.f32 %v5628_v22, %v1510_v48  ;;  %v1929_v20 = vmul.f32 %v5554_v19, %v6129_v56 }
 0x1eb   : > { %8499 = vst [vmem:[#allocation69_spill] sm:$0xff] %v6125_v13  ;;  %8500 = vst [vmem:[#allocation70_spill] sm:$0xff] %v6127_v32  ;;  %v2012_v35 = vmul.f32 %v5609_v15, %v1512_v34  ;;  %v2038_v38 = vmul.f32 %v5614_v3, %v1512_v34  ;;  %v1514_v28 = vpop.f32.mrb[14].mxu1  ;;  %v6137_v9 = vpop.f32.mrb[62].mxu0 }
 0x1ec   : > { %v1516_v44 = vpop.f32.mrb[15].mxu1  ;;  %v1376_v50 = vpop.f32.mrb[63].mxu0  ;;  %v2013_v52 = vmul.f32 %v5645_v10, %v1514_v28  ;;  %v2039_v53 = vmul.f32 %v8466_v27, %v1514_v28 }
 0x1ed   : > { %v2648_v37 = vsel %vm2207_vm10, %v2012_v35, 0.0  ;;  %v2700_v49 = vsel %vm2207_vm10, %v2038_v38, 0.0  ;;  %2222 = vadd.xlane.f32.xlu0 %v8501_v40  ;;  %2274 = vadd.xlane.f32.xlu1 %v8502_v62  ;;  %v2014_v45 = vmul.f32 %v5633_v31, %v1516_v44  ;;  %v2040_v43 = vmul.f32 %v5638_v7, %v1516_v44 }
 0x1ee   : > { %v6147_v61 = vadd.f32 %v2700_v49, %v2037_v58  ;;  %v6149_v33 = vadd.f32 %v2648_v37, %v2011_v18  ;;  %v1928_v38 = vmul.f32 %v5490_v59, %v1366_v30  ;;  %v1930_v44 = vmul.f32 %v5540_v26, %v1372_v54  ;;  %v8503_v59 = vld [vmem:[#allocation20_spill] sm:$0xff] }
 0x1ef   : > { %v2652_v48 = vsel %vm2207_vm10, %v2014_v45, 0.0  ;;  %v2704_v34 = vsel %vm2207_vm10, %v2040_v43, 0.0 }
 0x1f0   : > { %v6160_v37 = vadd.f32 %v2704_v34, %v2039_v53  ;;  %v6162_v49 = vadd.f32 %v2652_v48, %v2013_v52  ;;  %v8504_v48 = vld [vmem:[#allocation9_spill] sm:$0xff]  ;;  %v8505_v34 = vld [vmem:[#allocation10_spill] sm:$0xff]  ;;  %v2480_v32 = vsel %vm2207_vm10, %v1928_v38, 0.0  ;;  %v2484_v13 = vsel %vm2207_vm10, %v1930_v44, 0.0 }
 0x1f1   : > { %2690 = vadd.xlane.f32.xlu1 %v6092_v0  ;;  %2638 = vadd.xlane.f32.xlu0 %v2637_v36  ;;  %v1520_v35 = vpop.f32.mrb[16].mxu1  ;;  %v6158_v58 = vpop.f32.mrb[64].mxu0  ;;  %v6195_v19 = vadd.f32 %v2484_v13, %v1929_v20  ;;  %v1906_v44 = vmul.f32 %v5559_v46, %v1376_v50  ;;  %v1905_v46 = vmul.f32 %v5571_v2, %v6137_v9 }
 0x1f2   : > { %v1522_v18 = vpop.f32.mrb[17].mxu1  ;;  %v1382_v28 = vpop.f32.mrb[65].mxu0  ;;  %v2015_v30 = vmul.f32 %v8503_v59, %v1520_v35  ;;  %v2041_v26 = vmul.f32 %v5702_v4, %v1520_v35 }
 0x1f3   : > { %v2016_v40 = vmul.f32 %v8467_v24, %v1522_v18  ;;  %v2042_v62 = vmul.f32 %v8468_v21, %v1522_v18  ;;  %v6166_v45 = vpop.f32.mrb[18].mxu1  ;;  %v6168_v0 = vpop.f32.mrb[66].mxu0  ;;  %v1927_v18 = vmul.f32 %v5502_v5, %v6100_v51  ;;  %8508 = vst [vmem:[#allocation8_spill] sm:$0xff] %v6195_v19  ;;  %v1934_v2 = vmul.f32 %v5614_v3, %v1382_v28 }
 0x1f4   : > { %v1526_v36 = vpop.f32.mrb[19].mxu1  ;;  %v1386_v52 = vpop.f32.mrb[67].mxu0 }
 0x1f5   : > { %v2656_v43 = vsel %vm2207_vm10, %v2016_v40, 0.0  ;;  %v2708_v53 = vsel %vm2207_vm10, %v2042_v62, 0.0  ;;  %2226 = vadd.xlane.f32.xlu1 %v8504_v48  ;;  %2278 = vadd.xlane.f32.xlu0 %v8505_v34  ;;  %v2018_v35 = vmul.f32 %v5707_v60, %v1526_v36  ;;  %v8506_v48 = vld [vmem:[#allocation22_spill] sm:$0xff]  ;;  %v1904_v34 = vmul.f32 %v5535_v25, %v1372_v54 }
 0x1f6   : > { %v6183_v40 = vadd.f32 %v2708_v53, %v2041_v26  ;;  %v6185_v62 = vadd.f32 %v2656_v43, %v2015_v30  ;;  %v2017_v39 = vmul.f32 %v8506_v48, %v6166_v45  ;;  %v6193_v38 = vadd.f32 %v2480_v32, %v1927_v18  ;;  %v8509_v54 = vld [vmem:[#allocation26_spill] sm:$0xff]  ;;  %v8511_v18 = vld [vmem:[#allocation11_spill] sm:$0xff] }
 0x1f7   : > { %v2660_v5 = vsel %vm2207_vm10, %v2018_v35, 0.0  ;;  %v1932_v30 = vmul.f32 %v5564_v57, %v1376_v50  ;;  %v2432_v13 = vsel %vm2207_vm10, %v1904_v34, 0.0  ;;  %v8510_v57 = vld [vmem:[#allocation30_spill] sm:$0xff]  ;;  %v1908_v34 = vmul.f32 %v5609_v15, %v1382_v28 }
 0x1f8   : > { %8507 = vst [vmem:[#allocation7_spill] sm:$0xff] %v6193_v38  ;;  %v6199_v53 = vadd.f32 %v2660_v5, %v2017_v39  ;;  %v8512_v5 = vld [vmem:[#allocation12_spill] sm:$0xff]  ;;  %v1910_v38 = vmul.f32 %v5633_v31, %v1386_v52  ;;  %v1933_v28 = vmul.f32 %v5628_v22, %v6158_v58 }
 0x1f9   : > { %2694 = vadd.xlane.f32.xlu0 %v6114_v12  ;;  %2642 = vadd.xlane.f32.xlu1 %v6116_v29  ;;  %v1530_v51 = vpop.f32.mrb[20].mxu1  ;;  %v1390_v26 = vpop.f32.mrb[68].mxu0  ;;  %v1903_v12 = vmul.f32 %v5549_v6, %v6129_v56  ;;  %v1931_v6 = vmul.f32 %v5576_v14, %v6137_v9  ;;  %v2436_v56 = vsel %vm2207_vm10, %v1906_v44, 0.0  ;;  %v2488_v19 = vsel %vm2207_vm10, %v1932_v30, 0.0  ;;  %v8515_v14 = vld [vmem:[#allocation34_spill] sm:$0xff] }
 0x1fa   : > { %v1532_v43 = vpop.f32.mrb[21].mxu1  ;;  %v1392_v25 = vpop.f32.mrb[69].mxu0  ;;  %v2019_v32 = vmul.f32 %v8510_v57, %v1530_v51  ;;  %v6236_v3 = vadd.f32 %v2436_v56, %v1905_v46  ;;  %v2492_v46 = vsel %vm2207_vm10, %v1934_v2, 0.0  ;;  %v8523_v56 = vld [vmem:[#allocation31_spill] sm:$0xff]  ;;  %v8525_v2 = vld [vmem:[#allocation42_spill] sm:$0xff]  ;;  %8533 = vst [vmem:[#allocation34_spill] sm:$0xff] %v6320_v1 }
 0x1fb   : > { %v2020_v35 = vmul.f32 %v8509_v54, %v1532_v43  ;;  %v6202_v23 = vpop.f32.mrb[22].mxu1  ;;  %v6206_v29 = vpop.f32.mrb[70].mxu0  ;;  %v6229_v44 = vadd.f32 %v2432_v13, %v1903_v12  ;;  %v6238_v31 = vadd.f32 %v2488_v19, %v1931_v6  ;;  %v2440_v13 = vsel %vm2207_vm10, %v1908_v34, 0.0 }
 0x1fc   : > { %v1536_v20 = vpop.f32.mrb[23].mxu1  ;;  %v1396_v50 = vpop.f32.mrb[71].mxu0  ;;  %v2021_v9 = vmul.f32 %v8515_v14, %v6202_v23  ;;  %8517 = vst [vmem:[#allocation9_spill] sm:$0xff] %v6236_v3  ;;  %v6257_v19 = vmul.f32 %v5645_v10, %v6168_v0  ;;  %v6281_v34 = vmul.f32 %v8523_v56, %v1530_v51  ;;  %v8528_v3 = vld [vmem:[#allocation27_spill] sm:$0xff] }
 0x1fd   : > { %v2664_v39 = vsel %vm2207_vm10, %v2020_v35, 0.0  ;;  %2230 = vadd.xlane.f32.xlu0 %v8511_v18  ;;  %2282 = vadd.xlane.f32.xlu1 %v8512_v5  ;;  %v2022_v35 = vmul.f32 %v8513_v47, %v1536_v20  ;;  %v1936_v18 = vmul.f32 %v5638_v7, %v1386_v52  ;;  %v8514_v5 = vld [vmem:[#allocation21_spill] sm:$0xff]  ;;  %8516 = vst [vmem:[#allocation20_spill] sm:$0xff] %v6229_v44  ;;  %8518 = vst [vmem:[#allocation10_spill] sm:$0xff] %v6238_v31 }
 0x1fe   : > { %v6223_v16 = vadd.f32 %v2664_v39, %v2019_v32  ;;  %v2044_v41 = vmul.f32 %v8514_v5, %v1526_v36  ;;  %v1907_v7 = vmul.f32 %v5623_v17, %v6158_v58  ;;  %v8519_v36 = vld [vmem:[#allocation23_spill] sm:$0xff]  ;;  %v6261_v17 = vmul.f32 %v8466_v27, %v6168_v0  ;;  %8524 = vst [vmem:[#allocation11_spill] sm:$0xff] %v6281_v34 }
 0x1ff   : > { %v2668_v30 = vsel %vm2207_vm10, %v2022_v35, 0.0  ;;  %v6246_v52 = vmul.f32 %v8519_v36, %v6166_v45  ;;  %v6267_v32 = vsel %vm2207_vm10, %v1910_v38, 0.0  ;;  %v6270_v39 = vsel %vm2207_vm10, %v1936_v18, 0.0  ;;  %v8526_v18 = vld [vmem:[#allocation14_spill] sm:$0xff] }
 0x200   : > { %v6273_v10 = vsel %vm2207_vm10, %v2044_v41, 0.0  ;;  %v6278_v0 = vmul.f32 %v8503_v59, %v1390_v26  ;;  %v6289_v41 = vmul.f32 %v5702_v4, %v1390_v26  ;;  %v1912_v31 = vmul.f32 %v8467_v24, %v1392_v25  ;;  %v6304_v4 = vld [vmem:[%s8270_s2 + $0xd8] sm:$0xff] }
 0x201   : > { %2698 = vadd.xlane.f32.xlu1 %v6131_v11  ;;  %2646 = vadd.xlane.f32.xlu0 %v6133_v63  ;;  %v6234_v15 = vpop.f32.mrb[24].mxu1  ;;  %8520 = vst [vmem:[#allocation22_spill] sm:$0xff] %v6246_v52  ;;  %v6248_v12 = vpop.f32.mrb[72].mxu0  ;;  %v6252_v63 = vadd.f32 %v2668_v30, %v2021_v9  ;;  %8522 = vst [vmem:[#allocation30_spill] sm:$0xff] %v6273_v10  ;;  %v8527_v30 = vld [vmem:[#allocation15_spill] sm:$0xff]  ;;  %v1938_v59 = vmul.f32 %v8468_v21, %v1392_v25  ;;  %v6314_v25 = vld [vmem:[%s8270_s2] sm:$0xff] }
 0x202   : > { %v6250_v11 = vpop.f32.mrb[25].mxu1  ;;  %v1402_v22 = vpop.f32.mrb[73].mxu0  ;;  %v2023_v35 = vmul.f32 %v8525_v2, %v6234_v15  ;;  %v2046_v51 = vmul.f32 %v8528_v3, %v1532_v43  ;;  %v1914_v44 = vmul.f32 %v5707_v60, %v1396_v50  ;;  %v1940_v21 = vmul.f32 %v8514_v5, %v1396_v50  ;;  %v8531_v43 = vld [vmem:[#allocation33_spill] sm:$0xff]  ;;  %8532 = vst [vmem:[#allocation21_spill] sm:$0xff] %v6314_v25  ;;  %v6410_v10 = vld [vmem:[%s8270_s2 + $0x28] sm:$0xff] }
 0x203   : > { %8521 = vst [vmem:[#allocation26_spill] sm:$0xff] %v6252_v63  ;;  %v2024_v58 = vmul.f32 %v8484_v55, %v6250_v11  ;;  %v1544_v45 = vpop.f32.mrb[26].mxu1  ;;  %v6275_v6 = vpop.f32.mrb[74].mxu0  ;;  %v2048_v60 = vmul.f32 %v8531_v43, %v1536_v20  ;;  %v6327_v5 = vadd.f32 %v2492_v46, %v1933_v28  ;;  %v6336_v34 = vmul.f32 %v8537_v8, %v6202_v23 }
 0x204   : > { %v1546_v27 = vpop.f32.mrb[27].mxu1  ;;  %v1406_v9 = vpop.f32.mrb[75].mxu0  ;;  %v6332_v42 = vsel %vm2207_vm10, %v2046_v51, 0.0  ;;  %v6356_v23 = vmul.f32 %v8519_v36, %v6206_v29  ;;  %v6361_v46 = vsel %vm2207_vm10, %v1914_v44, 0.0 }
 0x205   : > { %v2672_v38 = vsel %vm2207_vm10, %v2024_v58, 0.0  ;;  %2234 = vadd.xlane.f32.xlu1 %v8526_v18  ;;  %2286 = vadd.xlane.f32.xlu0 %v8527_v30  ;;  %v6298_v58 = vld [vmem:[%s8270_s2 + $0x8] sm:$0xff]  ;;  %v2078_v24 = vmul.f32 %v6304_v4, %v1546_v27  ;;  %v2051_v30 = vmul.f32 %v6314_v25, %v1544_v45  ;;  %8534 = vst [vmem:[#allocation23_spill] sm:$0xff] %v6327_v5  ;;  %8536 = vst [vmem:[#allocation42_spill] sm:$0xff] %v6332_v42  ;;  %v8547_v5 = vld [vmem:[#allocation18_spill] sm:$0xff] }
 0x206   : > { %8529 = vst [vmem:[#allocation12_spill] sm:$0xff] %v6298_v58  ;;  %v2052_v18 = vmul.f32 %v6298_v58, %v1546_v27  ;;  %v6307_v26 = vadd.f32 %v2672_v38, %v2023_v35  ;;  %v2077_v27 = vmul.f32 %v6320_v1, %v1544_v45  ;;  %v6329_v38 = vadd.f32 %v2440_v13, %v1907_v7 }
 0x207   : > { %v2780_v50 = vsel %vm2207_vm10, %v2078_v24, 0.0  ;;  %8538 = vst [vmem:[#allocation14_spill] sm:$0xff] %v6336_v34  ;;  %v6352_v7 = vmul.f32 %v8506_v48, %v6206_v29  ;;  %8541 = vst [vmem:[#allocation33_spill] sm:$0xff] %v6356_v23  ;;  %v6375_v29 = vld [vmem:[%s8270_s2 + $0xe8] sm:$0xff]  ;;  %v1944_v42 = vmul.f32 %v8531_v43, %v1406_v9  ;;  %v6428_v43 = vld [vmem:[%s8270_s2 + $0xf0] sm:$0xff] }
 0x208   : > { %8530 = vst [vmem:[#allocation32_spill] sm:$0xff] %v6307_v26  ;;  %v2728_v35 = vsel %vm2207_vm10, %v2052_v18, 0.0  ;;  %8535 = vst [vmem:[#allocation31_spill] sm:$0xff] %v6329_v38  ;;  %v6342_v24 = vadd.f32 %v2780_v50, %v2077_v27  ;;  %v1942_v27 = vmul.f32 %v8528_v3, %v1402_v22 }
 0x209   : > { %2702 = vadd.xlane.f32.xlu0 %v6147_v61  ;;  %2650 = vadd.xlane.f32.xlu1 %v6149_v33  ;;  %v1550_v20 = vpop.f32.mrb[28].mxu1  ;;  %v6338_v45 = vpop.f32.mrb[76].mxu0  ;;  %v6340_v18 = vadd.f32 %v2728_v35, %v2051_v30  ;;  %v6345_v61 = vsel %vm2207_vm10, %v1912_v31, 0.0  ;;  %v6348_v33 = vsel %vm2207_vm10, %v1938_v59, 0.0  ;;  %v6364_v31 = vsel %vm2207_vm10, %v1940_v21, 0.0  ;;  %v6369_v59 = vld [vmem:[%s8270_s2 + $0x18] sm:$0xff] }
 0x20a   : > { %8540 = vst [vmem:[#allocation27_spill] sm:$0xff] %v6342_v24  ;;  %v6358_v28 = vpop.f32.mrb[77].mxu0  ;;  %v1552_v13 = vpop.f32.mrb[29].mxu1  ;;  %8542 = vst [vmem:[#allocation35_spill] sm:$0xff] %v6364_v31  ;;  %v6381_v21 = vsel %vm2207_vm10, %v2048_v60, 0.0  ;;  %v1916_v30 = vmul.f32 %v8509_v54, %v1402_v22  ;;  %v8546_v35 = vld [vmem:[#allocation39_spill] sm:$0xff] }
 0x20b   : > { %8539 = vst [vmem:[#allocation15_spill] sm:$0xff] %v6340_v18  ;;  %8543 = vst [vmem:[#allocation71_spill] sm:$0xff] %v6369_v59  ;;  %v2054_v48 = vmul.f32 %v6369_v59, %v1552_v13  ;;  %v2080_v36 = vmul.f32 %v6375_v29, %v1552_v13  ;;  %v6378_v51 = vpop.f32.mrb[78].mxu0  ;;  %v1554_v44 = vpop.f32.mrb[30].mxu1  ;;  %v2050_v50 = vmul.f32 %v8546_v35, %v6250_v11  ;;  %v6393_v13 = vld [vmem:[%s8270_s2 + $0x10] sm:$0xff]  ;;  %v6399_v54 = vld [vmem:[%s8270_s2 + $0xe0] sm:$0xff] }
 0x20c   : > { %8544 = vst [vmem:[#allocation72_spill] sm:$0xff] %v6375_v29  ;;  %8545 = vst [vmem:[#allocation73_spill] sm:$0xff] %v6381_v21  ;;  %v6387_v38 = vpop.f32.mrb[79].mxu0  ;;  %v1556_v34 = vpop.f32.mrb[31].mxu1  ;;  %v2053_v60 = vmul.f32 %v6393_v13, %v1550_v20  ;;  %v2079_v3 = vmul.f32 %v6399_v54, %v1550_v20  ;;  %v1918_v21 = vmul.f32 %v8513_v47, %v1406_v9  ;;  %v6416_v20 = vld [vmem:[%s8270_s2 + $0xf8] sm:$0xff]  ;;  %v6422_v47 = vld [vmem:[%s8270_s2 + $0x20] sm:$0xff] }
 0x20d   : > { %2238 = vadd.xlane.f32.xlu0 %v8547_v5  ;;  %8548 = vst [vmem:[#allocation39_spill] sm:$0xff] %v6393_v13  ;;  %8549 = vst [vmem:[#allocation18_spill] sm:$0xff] %v6399_v54  ;;  %v2732_v11 = vsel %vm2207_vm10, %v2054_v48, 0.0  ;;  %v2784_v22 = vsel %vm2207_vm10, %v2080_v36, 0.0  ;;  %v8550_v5 = vld [vmem:[#allocation19_spill] sm:$0xff]  ;;  %v2056_v52 = vmul.f32 %v6410_v10, %v1556_v34  ;;  %v2082_v48 = vmul.f32 %v6416_v20, %v1556_v34 }
 0x20e   : > { %2290 = vadd.xlane.f32.xlu1 %v8550_v5  ;;  %8551 = vst [vmem:[#allocation19_spill] sm:$0xff] %v6410_v10  ;;  %8552 = vst [vmem:[#allocation74_spill] sm:$0xff] %v6416_v20  ;;  %v2055_v9 = vmul.f32 %v6422_v47, %v1554_v44  ;;  %v2081_v36 = vmul.f32 %v6428_v43, %v1554_v44  ;;  %v6431_v5 = vadd.f32 %v2732_v11, %v2053_v60  ;;  %v8557_v18 = vld [vmem:[#allocation43_spill] sm:$0xff] }
 0x20f   : > { %8553 = vst [vmem:[#allocation75_spill] sm:$0xff] %v6422_v47  ;;  %8554 = vst [vmem:[#allocation76_spill] sm:$0xff] %v6428_v43  ;;  %v6433_v24 = vadd.f32 %v2784_v22, %v2079_v3  ;;  %v6437_v34 = vmul.f32 %v8510_v57, %v6248_v12  ;;  %v6441_v26 = vmul.f32 %v8557_v18, %v6234_v15  ;;  %v2736_v31 = vsel %vm2207_vm10, %v2056_v52, 0.0 }
 0x210   : > { %8555 = vst [vmem:[#allocation77_spill] sm:$0xff] %v6431_v5  ;;  %v2788_v23 = vsel %vm2207_vm10, %v2082_v48, 0.0  ;;  %v6448_v44 = vmul.f32 %v8523_v56, %v6248_v12  ;;  %v6451_v60 = vsel %vm2207_vm10, %v2050_v50, 0.0  ;;  %v6456_v3 = vadd.f32 %v2736_v31, %v2055_v9 }
 0x211   : > { %8556 = vst [vmem:[#allocation78_spill] sm:$0xff] %v6433_v24  ;;  %8558 = vst [vmem:[#allocation43_spill] sm:$0xff] %v6441_v26  ;;  %2654 = vadd.xlane.f32.xlu0 %v6162_v49  ;;  %v1560_v63 = vpop.f32.mrb[32].mxu1  ;;  %v6454_v57 = vpop.f32.mrb[80].mxu0  ;;  %v6458_v52 = vadd.f32 %v2788_v23, %v2081_v36  ;;  %v6462_v49 = vmul.f32 %v8515_v14, %v6275_v6  ;;  %v6466_v12 = vmul.f32 %v8537_v8, %v6275_v6  ;;  %v6479_v23 = vld [vmem:[%s8270_s2 + $0x108] sm:$0xff]  ;;  %v6499_v36 = vld [vmem:[%s8270_s2 + $0x30] sm:$0xff] }
 0x212   : > { %8559 = vst [vmem:[#allocation79_spill] sm:$0xff] %v6451_v60  ;;  %2706 = vadd.xlane.f32.xlu1 %v6160_v37  ;;  %v1562_v15 = vpop.f32.mrb[33].mxu1  ;;  %8560 = vst [vmem:[#allocation80_spill] sm:$0xff] %v6456_v3  ;;  %v6468_v56 = vpop.f32.mrb[81].mxu0  ;;  %v6473_v37 = vld [vmem:[%s8270_s2 + $0x38] sm:$0xff]  ;;  %v6483_v8 = vsel %vm2207_vm10, %v1916_v30, 0.0  ;;  %v2057_v30 = vmul.f32 %v6499_v36, %v1560_v63  ;;  %v6515_v3 = vmul.f32 %v8525_v2, %v6338_v45 }
 0x213   : > { %8561 = vst [vmem:[#allocation81_spill] sm:$0xff] %v6458_v52  ;;  %8562 = vst [vmem:[#allocation82_spill] sm:$0xff] %v6473_v37  ;;  %v2058_v31 = vmul.f32 %v6473_v37, %v1562_v15  ;;  %v2084_v14 = vmul.f32 %v6479_v23, %v1562_v15  ;;  %v1564_v50 = vpop.f32.mrb[34].mxu1  ;;  %v6486_v6 = vsel %vm2207_vm10, %v1942_v27, 0.0  ;;  %v6489_v11 = vsel %vm2207_vm10, %v1918_v21, 0.0  ;;  %v6494_v48 = vpop.f32.mrb[82].mxu0 }
 0x214   : > { %v6492_v22 = vsel %vm2207_vm10, %v1944_v42, 0.0  ;;  %v1566_v9 = vpop.f32.mrb[35].mxu1  ;;  %v6505_v27 = vld [vmem:[%s8270_s2 + $0x100] sm:$0xff]  ;;  %v6510_v60 = vpop.f32.mrb[83].mxu0  ;;  %v8563_v26 = vld [vmem:[#allocation25_spill] sm:$0xff]  ;;  %v1920_v52 = vmul.f32 %v8484_v55, %v6358_v28  ;;  %v1946_v24 = vmul.f32 %v8546_v35, %v6358_v28  ;;  %v1974_v5 = vmul.f32 %v6304_v4, %v6387_v38 }
 0x215   : > { %v2083_v21 = vmul.f32 %v6505_v27, %v1560_v63  ;;  %v2740_v42 = vsel %vm2207_vm10, %v2058_v31, 0.0  ;;  %v2792_v15 = vsel %vm2207_vm10, %v2084_v14, 0.0  ;;  %2294 = vadd.xlane.f32.xlu0 %v8563_v26  ;;  %8564 = vst [vmem:[#allocation25_spill] sm:$0xff] %v6515_v3  ;;  %v1948_v63 = vmul.f32 %v6298_v58, %v6387_v38  ;;  %v8565_v31 = vld [vmem:[#allocation24_spill] sm:$0xff]  ;;  %v6527_v14 = vld [vmem:[%s8270_s2 + $0x48] sm:$0xff]  ;;  %v6533_v2 = vld [vmem:[%s8270_s2 + $0x118] sm:$0xff] }
 0x216   : > { %2242 = vadd.xlane.f32.xlu1 %v8565_v31  ;;  %8566 = vst [vmem:[#allocation24_spill] sm:$0xff] %v6527_v14  ;;  %v2060_v26 = vmul.f32 %v6527_v14, %v1566_v9  ;;  %8567 = vst [vmem:[#allocation83_spill] sm:$0xff] %v6533_v2  ;;  %v2086_v55 = vmul.f32 %v6533_v2, %v1566_v9  ;;  %v6536_v28 = vadd.f32 %v2740_v42, %v2057_v30  ;;  %v6549_v58 = vld [vmem:[%s8270_s2 + $0x40] sm:$0xff]  ;;  %v6555_v9 = vld [vmem:[%s8270_s2 + $0x110] sm:$0xff] }
 0x217   : > { %v6538_v35 = vadd.f32 %v2792_v15, %v2083_v21  ;;  %v6542_v31 = vmul.f32 %v8557_v18, %v6338_v45  ;;  %8570 = vst [vmem:[#allocation86_spill] sm:$0xff] %v6549_v58  ;;  %v2059_v3 = vmul.f32 %v6549_v58, %v1564_v50  ;;  %8571 = vst [vmem:[#allocation87_spill] sm:$0xff] %v6555_v9  ;;  %v6570_v15 = vsel %vm2207_vm10, %v1920_v52, 0.0  ;;  %v6598_v52 = vld [vmem:[%s8270_s2 + $0x128] sm:$0xff] }
 0x218   : > { %8568 = vst [vmem:[#allocation84_spill] sm:$0xff] %v6536_v28  ;;  %v2085_v30 = vmul.f32 %v6555_v9, %v1564_v50  ;;  %v6560_v45 = vmul.f32 %v6314_v25, %v6378_v51  ;;  %v2744_v38 = vsel %vm2207_vm10, %v2060_v26, 0.0  ;;  %v2796_v18 = vsel %vm2207_vm10, %v2086_v55, 0.0  ;;  %8578 = vst [vmem:[#allocation94_spill] sm:$0xff] %v6598_v52 }
 0x219   : > { %8569 = vst [vmem:[#allocation85_spill] sm:$0xff] %v6538_v35  ;;  %2710 = vadd.xlane.f32.xlu0 %v6183_v40  ;;  %v1570_v21 = vpop.f32.mrb[36].mxu1  ;;  %v6567_v42 = vadd.f32 %v6267_v32, %v6257_v19  ;;  %v6574_v50 = vmul.f32 %v6320_v1, %v6378_v51  ;;  %v6577_v28 = vpop.f32.mrb[84].mxu0  ;;  %v6581_v40 = vadd.f32 %v2744_v38, %v2059_v3  ;;  %v6584_v35 = vsel %vm2207_vm10, %v1946_v24, 0.0  ;;  %v6592_v51 = vld [vmem:[%s8270_s2 + $0x58] sm:$0xff] }
 0x21a   : > { %8572 = vst [vmem:[#allocation88_spill] sm:$0xff] %v6560_v45  ;;  %2658 = vadd.xlane.f32.xlu1 %v6185_v62  ;;  %v1572_v26 = vpop.f32.mrb[37].mxu1  ;;  %v6579_v55 = vadd.f32 %v2796_v18, %v2085_v30  ;;  %v6587_v19 = vsel %vm2207_vm10, %v1948_v63, 0.0  ;;  %v1432_v32 = vpop.f32.mrb[85].mxu0  ;;  %8577 = vst [vmem:[#allocation93_spill] sm:$0xff] %v6592_v51  ;;  %v6602_v30 = vsel %vm2207_vm10, %v1974_v5, 0.0  ;;  %v6606_v63 = vmul.f32 %v6393_v13, %v6454_v57 }
 0x21b   : > { %8573 = vst [vmem:[#allocation89_spill] sm:$0xff] %v6567_v42  ;;  %8575 = vst [vmem:[#allocation91_spill] sm:$0xff] %v6581_v40  ;;  %v2062_v62 = vmul.f32 %v6592_v51, %v1572_v26  ;;  %v2088_v3 = vmul.f32 %v6598_v52, %v1572_v26  ;;  %v1574_v24 = vpop.f32.mrb[38].mxu1  ;;  %v6610_v38 = vmul.f32 %v6399_v54, %v6454_v57  ;;  %v1434_v42 = vpop.f32.mrb[86].mxu0  ;;  %v6617_v26 = vld [vmem:[%s8270_s2 + $0x50] sm:$0xff]  ;;  %v6623_v40 = vld [vmem:[%s8270_s2 + $0x120] sm:$0xff] }
 0x21c   : > { %8574 = vst [vmem:[#allocation90_spill] sm:$0xff] %v6579_v55  ;;  %8576 = vst [vmem:[#allocation92_spill] sm:$0xff] %v6587_v19  ;;  %v1950_v18 = vmul.f32 %v6369_v59, %v6468_v56  ;;  %v1576_v55 = vpop.f32.mrb[39].mxu1  ;;  %v2061_v5 = vmul.f32 %v6617_v26, %v1570_v21  ;;  %v2087_v57 = vmul.f32 %v6623_v40, %v1570_v21  ;;  %v1436_v19 = vpop.f32.mrb[87].mxu0  ;;  %v8583_v45 = vld [vmem:[#allocation28_spill] sm:$0xff] }
 0x21d   : > { %8579 = vst [vmem:[#allocation95_spill] sm:$0xff] %v6606_v63  ;;  %8580 = vst [vmem:[#allocation96_spill] sm:$0xff] %v6610_v38  ;;  %v2748_v38 = vsel %vm2207_vm10, %v2062_v62, 0.0  ;;  %v2800_v63 = vsel %vm2207_vm10, %v2088_v3, 0.0  ;;  %2246 = vadd.xlane.f32.xlu0 %v8583_v45  ;;  %v1976_v59 = vmul.f32 %v6375_v29, %v6468_v56  ;;  %v6633_v54 = vmul.f32 %v6422_v47, %v6494_v48  ;;  %v8586_v62 = vld [vmem:[#allocation29_spill] sm:$0xff]  ;;  %v6645_v45 = vld [vmem:[%s8270_s2 + $0x68] sm:$0xff] }
 0x21e   : > { %8581 = vst [vmem:[#allocation97_spill] sm:$0xff] %v6617_v26  ;;  %8582 = vst [vmem:[#allocation98_spill] sm:$0xff] %v6623_v40  ;;  %v6637_v13 = vmul.f32 %v6428_v43, %v6494_v48  ;;  %v1952_v21 = vmul.f32 %v6410_v10, %v6510_v60  ;;  %2298 = vadd.xlane.f32.xlu1 %v8586_v62  ;;  %v2064_v56 = vmul.f32 %v6645_v45, %v1576_v55  ;;  %v6651_v3 = vld [vmem:[%s8270_s2 + $0x138] sm:$0xff]  ;;  %v6664_v43 = vld [vmem:[%s8270_s2 + $0x60] sm:$0xff] }
 0x21f   : > { %8584 = vst [vmem:[#allocation28_spill] sm:$0xff] %v6633_v54  ;;  %8587 = vst [vmem:[#allocation29_spill] sm:$0xff] %v6645_v45  ;;  %v2090_v48 = vmul.f32 %v6651_v3, %v1576_v55  ;;  %v6654_v54 = vadd.f32 %v2748_v38, %v2061_v5  ;;  %v1978_v62 = vmul.f32 %v6416_v20, %v6510_v60  ;;  %v6670_v55 = vld [vmem:[%s8270_s2 + $0x130] sm:$0xff]  ;;  %v6692_v29 = vsel %vm2207_vm10, %v1950_v18, 0.0 }
 0x220   : > { %8585 = vst [vmem:[#allocation99_spill] sm:$0xff] %v6637_v13  ;;  %8588 = vst [vmem:[#allocation100_spill] sm:$0xff] %v6651_v3  ;;  %v6656_v13 = vadd.f32 %v2800_v63, %v2087_v57  ;;  %v1954_v10 = vmul.f32 %v6473_v37, %v1432_v32  ;;  %v2063_v47 = vmul.f32 %v6664_v43, %v1574_v24  ;;  %v2752_v38 = vsel %vm2207_vm10, %v2064_v56, 0.0 }
 0x221   : > { %8589 = vst [vmem:[#allocation101_spill] sm:$0xff] %v6654_v54  ;;  %8591 = vst [vmem:[#allocation103_spill] sm:$0xff] %v6664_v43  ;;  %v2089_v63 = vmul.f32 %v6670_v55, %v1574_v24  ;;  %v2804_v60 = vsel %vm2207_vm10, %v2090_v48, 0.0  ;;  %2662 = vadd.xlane.f32.xlu0 %v6199_v53  ;;  %v1580_v5 = vpop.f32.mrb[40].mxu1  ;;  %v6678_v57 = vadd.f32 %v6270_v39, %v6261_v17  ;;  %v8595_v24 = vld [vmem:[#allocation36_spill] sm:$0xff]  ;;  %v1440_v56 = vpop.f32.mrb[88].mxu0 }
 0x222   : > { %8590 = vst [vmem:[#allocation102_spill] sm:$0xff] %v6656_v13  ;;  %8592 = vst [vmem:[#allocation104_spill] sm:$0xff] %v6670_v55  ;;  %v6682_v54 = vadd.f32 %v6348_v33, %v6289_v41  ;;  %v1980_v13 = vmul.f32 %v6479_v23, %v1432_v32  ;;  %v1956_v37 = vmul.f32 %v6527_v14, %v1436_v19  ;;  %2250 = vadd.xlane.f32.xlu1 %v8595_v24  ;;  %v1582_v20 = vpop.f32.mrb[41].mxu1  ;;  %v1442_v41 = vpop.f32.mrb[89].mxu0  ;;  %v6701_v33 = vld [vmem:[%s8270_s2 + $0x78] sm:$0xff]  ;;  %v6744_v14 = vld [vmem:[%s8270_s2 + $0x148] sm:$0xff] }
 0x223   : > { %8593 = vst [vmem:[#allocation105_spill] sm:$0xff] %v6678_v57  ;;  %v6687_v48 = vadd.f32 %v2804_v60, %v2089_v63  ;;  %v6689_v53 = vadd.f32 %v2752_v38, %v2063_v47  ;;  %v6695_v17 = vsel %vm2207_vm10, %v1976_v59, 0.0  ;;  %v1982_v39 = vmul.f32 %v6533_v2, %v1436_v19  ;;  %8598 = vst [vmem:[#allocation108_spill] sm:$0xff] %v6701_v33  ;;  %v1584_v63 = vpop.f32.mrb[42].mxu1  ;;  %v1444_v38 = vpop.f32.mrb[90].mxu0 }
 0x224   : > { %8594 = vst [vmem:[#allocation106_spill] sm:$0xff] %v6682_v54  ;;  %v2066_v32 = vmul.f32 %v6701_v33, %v1582_v20  ;;  %v6705_v47 = vsel %vm2207_vm10, %v1952_v21, 0.0  ;;  %v6708_v18 = vsel %vm2207_vm10, %v1978_v62, 0.0  ;;  %v6712_v59 = vmul.f32 %v6499_v36, %v6577_v28  ;;  %v1586_v60 = vpop.f32.mrb[43].mxu1  ;;  %v6727_v21 = vld [vmem:[%s8270_s2 + $0x70] sm:$0xff]  ;;  %8602 = vst [vmem:[#allocation110_spill] sm:$0xff] %v6744_v14 }
 0x225   : > { %8596 = vst [vmem:[#allocation36_spill] sm:$0xff] %v6687_v48  ;;  %8597 = vst [vmem:[#allocation107_spill] sm:$0xff] %v6689_v53  ;;  %v6716_v19 = vmul.f32 %v6505_v27, %v6577_v28  ;;  %v6719_v24 = vmul.f32 %v6549_v58, %v1434_v42  ;;  %v6722_v57 = vmul.f32 %v6555_v9, %v1434_v42  ;;  %v1446_v48 = vpop.f32.mrb[91].mxu0  ;;  %v8600_v28 = vld [vmem:[#allocation37_spill] sm:$0xff]  ;;  %v6733_v53 = vsel %vm2207_vm10, %v1954_v10, 0.0 }
 0x226   : > { %8599 = vst [vmem:[#allocation109_spill] sm:$0xff] %v6727_v21  ;;  %v2065_v62 = vmul.f32 %v6727_v21, %v1580_v5  ;;  %v2756_v54 = vsel %vm2207_vm10, %v2066_v32, 0.0  ;;  %2302 = vadd.xlane.f32.xlu0 %v8600_v28  ;;  %v6736_v2 = vsel %vm2207_vm10, %v1980_v13, 0.0  ;;  %v6739_v42 = vsel %vm2207_vm10, %v1956_v37, 0.0  ;;  %2666 = vadd.xlane.f32.xlu1 %v6223_v16 }
 0x227   : > { %8601 = vst [vmem:[#allocation37_spill] sm:$0xff] %v6739_v42  ;;  %v2092_v9 = vmul.f32 %v6744_v14, %v1582_v20  ;;  %v6749_v32 = vsel %vm2207_vm10, %v1982_v39, 0.0  ;;  %v1958_v10 = vmul.f32 %v6592_v51, %v1442_v41  ;;  %v1984_v13 = vmul.f32 %v6598_v52, %v1442_v41  ;;  %v6760_v42 = vld [vmem:[%s8270_s2 + $0x88] sm:$0xff]  ;;  %v6781_v41 = vld [vmem:[%s8270_s2 + $0x158] sm:$0xff] }
 0x228   : > { %v6753_v28 = vadd.f32 %v2756_v54, %v2065_v62  ;;  %v1960_v37 = vmul.f32 %v6645_v45, %v1446_v48  ;;  %v1986_v58 = vmul.f32 %v6651_v3, %v1446_v48  ;;  %8604 = vst [vmem:[#allocation112_spill] sm:$0xff] %v6760_v42  ;;  %v2068_v16 = vmul.f32 %v6760_v42, %v1586_v60  ;;  %v6773_v54 = vld [vmem:[%s8270_s2 + $0x140] sm:$0xff] }
 0x229   : > { %v6765_v20 = vadd.f32 %v6345_v61, %v6278_v0  ;;  %v6768_v39 = vmul.f32 %v6617_v26, %v1440_v56  ;;  %8606 = vst [vmem:[#allocation114_spill] sm:$0xff] %v6773_v54  ;;  %v6776_v48 = vmul.f32 %v6773_v54, %v1580_v5  ;;  %8608 = vst [vmem:[#allocation116_spill] sm:$0xff] %v6781_v41  ;;  %v8609_v0 = vld [vmem:[#allocation40_spill] sm:$0xff]  ;;  %v1590_v61 = vpop.f32.mrb[44].mxu1  ;;  %v6793_v5 = vsel %vm2207_vm10, %v2092_v9, 0.0  ;;  %v6798_v3 = vld [vmem:[%s8270_s2 + $0x80] sm:$0xff] }
 0x22a   : > { %8603 = vst [vmem:[#allocation111_spill] sm:$0xff] %v6753_v28  ;;  %v2094_v62 = vmul.f32 %v6781_v41, %v1586_v60  ;;  %2254 = vadd.xlane.f32.xlu0 %v8609_v0  ;;  %v6790_v28 = vmul.f32 %v6623_v40, %v1440_v56  ;;  %8611 = vst [vmem:[#allocation117_spill] sm:$0xff] %v6793_v5  ;;  %v6801_v60 = vmul.f32 %v6798_v3, %v1584_v63  ;;  %v6806_v0 = vld [vmem:[%s8270_s2 + $0x150] sm:$0xff]  ;;  %v1450_v9 = vpop.f32.mrb[92].mxu0  ;;  %v1592_v56 = vpop.f32.mrb[45].mxu1  ;;  %v8627_v40 = vld [vmem:[#allocation26_spill] sm:$0xff] }
 0x22b   : > { %8605 = vst [vmem:[#allocation113_spill] sm:$0xff] %v6765_v20  ;;  %8607 = vst [vmem:[#allocation115_spill] sm:$0xff] %v6776_v48  ;;  %v6787_v20 = vadd.f32 %v6361_v46, %v6352_v7  ;;  %v6809_v7 = vmul.f32 %v6806_v0, %v1584_v63  ;;  %v8616_v46 = vld [vmem:[#allocation41_spill] sm:$0xff]  ;;  %v6816_v45 = vsel %vm2207_vm10, %v1984_v13, 0.0  ;;  %v6822_v5 = vmul.f32 %v6670_v55, %v1444_v38  ;;  %v1452_v48 = vpop.f32.mrb[93].mxu0  ;;  %v1594_v52 = vpop.f32.mrb[46].mxu1 }
 0x22c   : > { %8612 = vst [vmem:[#allocation118_spill] sm:$0xff] %v6798_v3  ;;  %8613 = vst [vmem:[#allocation119_spill] sm:$0xff] %v6801_v60  ;;  %2306 = vadd.xlane.f32.xlu1 %v8616_v46  ;;  %v6819_v60 = vmul.f32 %v6664_v43, %v1444_v38  ;;  %v6825_v63 = vsel %vm2207_vm10, %v1960_v37, 0.0  ;;  %v6828_v46 = vsel %vm2207_vm10, %v1986_v58, 0.0  ;;  %v6836_v13 = vld [vmem:[%s8270_s2 + $0x98] sm:$0xff]  ;;  %v1454_v38 = vpop.f32.mrb[94].mxu0  ;;  %v6869_v26 = vmul.f32 %v6773_v54, %v1450_v9 }
 0x22d   : > { %8610 = vst [vmem:[#allocation40_spill] sm:$0xff] %v6787_v20  ;;  %8614 = vst [vmem:[#allocation120_spill] sm:$0xff] %v6806_v0  ;;  %v6813_v20 = vsel %vm2207_vm10, %v1958_v10, 0.0  ;;  %v6831_v10 = vsel %vm2207_vm10, %v2068_v16, 0.0  ;;  %v2070_v43 = vmul.f32 %v6836_v13, %v1592_v56  ;;  %v1596_v55 = vpop.f32.mrb[47].mxu1  ;;  %v6845_v58 = vld [vmem:[%s8270_s2 + $0x90] sm:$0xff] }
 0x22e   : > { %8615 = vst [vmem:[#allocation121_spill] sm:$0xff] %v6809_v7  ;;  %8617 = vst [vmem:[#allocation41_spill] sm:$0xff] %v6819_v60  ;;  %v6840_v7 = vsel %vm2207_vm10, %v2094_v62, 0.0  ;;  %v6848_v37 = vmul.f32 %v6845_v58, %v1590_v61  ;;  %v6853_v16 = vld [vmem:[%s8270_s2 + $0x160] sm:$0xff]  ;;  %v6861_v62 = vld [vmem:[%s8270_s2 + $0x168] sm:$0xff]  ;;  %v1456_v51 = vpop.f32.mrb[95].mxu0  ;;  %2670 = vadd.xlane.f32.xlu0 %v8627_v40 }
 0x22f   : > { %8618 = vst [vmem:[#allocation122_spill] sm:$0xff] %v6825_v63  ;;  %8619 = vst [vmem:[#allocation123_spill] sm:$0xff] %v6831_v10  ;;  %v6856_v10 = vmul.f32 %v6853_v16, %v1590_v61  ;;  %v1962_v63 = vmul.f32 %v6701_v33, %v1452_v48  ;;  %v1988_v61 = vmul.f32 %v6744_v14, %v1452_v48  ;;  %v6877_v60 = vld [vmem:[%s8270_s2 + $0xa0] sm:$0xff]  ;;  %v6885_v40 = vld [vmem:[%s8270_s2 + $0x170] sm:$0xff]  ;;  %v6893_v54 = vsel %vm2207_vm10, %v2070_v43, 0.0 }
 0x230   : > { %8620 = vst [vmem:[#allocation124_spill] sm:$0xff] %v6836_v13  ;;  %8621 = vst [vmem:[#allocation125_spill] sm:$0xff] %v6840_v7  ;;  %v2096_v7 = vmul.f32 %v6861_v62, %v1592_v56  ;;  %v6880_v56 = vmul.f32 %v6877_v60, %v1594_v52  ;;  %v1964_v48 = vmul.f32 %v6760_v42, %v1456_v51  ;;  %v6898_v14 = vld [vmem:[%s8270_s2 + $0xa8] sm:$0xff]  ;;  %v8638_v42 = vld [vmem:[#allocation33_spill] sm:$0xff] }
 0x231   : > { %8622 = vst [vmem:[#allocation126_spill] sm:$0xff] %v6845_v58  ;;  %8623 = vst [vmem:[#allocation127_spill] sm:$0xff] %v6848_v37  ;;  %v6866_v37 = vmul.f32 %v6727_v21, %v1450_v9  ;;  %v6888_v9 = vmul.f32 %v6885_v40, %v1594_v52  ;;  %v2072_v33 = vmul.f32 %v6898_v14, %v1596_v55  ;;  %v6904_v21 = vld [vmem:[%s8270_s2 + $0x178] sm:$0xff] }
 0x232   : > { %8624 = vst [vmem:[#allocation128_spill] sm:$0xff] %v6853_v16  ;;  %8625 = vst [vmem:[#allocation129_spill] sm:$0xff] %v6856_v10  ;;  %v8630_v10 = vld [vmem:[#allocation44_spill] sm:$0xff]  ;;  %v2098_v52 = vmul.f32 %v6904_v21, %v1596_v55  ;;  %v6912_v43 = vsel %vm2207_vm10, %v2096_v7, 0.0  ;;  %v6926_v55 = vsel %vm2207_vm10, %v1962_v63, 0.0 }
 0x233   : > { %8626 = vst [vmem:[#allocation130_spill] sm:$0xff] %v6861_v62  ;;  %8628 = vst [vmem:[#allocation26_spill] sm:$0xff] %v6866_v37  ;;  %2258 = vadd.xlane.f32.xlu1 %v8630_v10  ;;  %v1990_v10 = vmul.f32 %v6781_v41, %v1456_v51  ;;  %v6915_v41 = vmul.f32 %v6798_v3, %v1454_v38  ;;  %v6923_v37 = vadd.f32 %v6486_v6, %v6448_v44  ;;  %v8644_v7 = vld [vmem:[#allocation32_spill] sm:$0xff] }
 0x234   : > { %8629 = vst [vmem:[#allocation131_spill] sm:$0xff] %v6869_v26  ;;  %8631 = vst [vmem:[#allocation44_spill] sm:$0xff] %v6877_v60  ;;  %v1600_v26 = vpop.f32.mrb[48].mxu1  ;;  %v6941_v44 = vsel %vm2207_vm10, %v1964_v48, 0.0  ;;  %v6962_v48 = vsel %vm2207_vm10, %v2098_v52, 0.0  ;;  %v6982_v52 = vld [vmem:[%s8270_s2 + $0x180] sm:$0xff] }
 0x235   : > { %8632 = vst [vmem:[#allocation132_spill] sm:$0xff] %v6880_v56  ;;  %8633 = vst [vmem:[#allocation133_spill] sm:$0xff] %v6885_v40  ;;  %v6918_v56 = vmul.f32 %v6806_v0, %v1454_v38  ;;  %v6934_v38 = vadd.f32 %v6483_v8, %v6437_v34  ;;  %v6944_v6 = vsel %vm2207_vm10, %v1990_v10, 0.0  ;;  %v6955_v34 = vld [vmem:[%s8270_s2 + $0x188] sm:$0xff]  ;;  %v6967_v10 = vld [vmem:[%s8270_s2 + $0xb0] sm:$0xff]  ;;  %v6985_v3 = vmul.f32 %v6982_v52, %v1600_v26 }
 0x236   : > { %8634 = vst [vmem:[#allocation134_spill] sm:$0xff] %v6888_v9  ;;  %8635 = vst [vmem:[#allocation135_spill] sm:$0xff] %v6893_v54  ;;  %v8639_v9 = vld [vmem:[#allocation35_spill] sm:$0xff]  ;;  %v8642_v54 = vld [vmem:[#allocation45_spill] sm:$0xff] }
 0x237   : > { %8636 = vst [vmem:[#allocation136_spill] sm:$0xff] %v6898_v14  ;;  %8637 = vst [vmem:[#allocation137_spill] sm:$0xff] %v6904_v21  ;;  %v6909_v51 = vadd.f32 %v8639_v9, %v8638_v42  ;;  %2310 = vadd.xlane.f32.xlu0 %v8642_v54  ;;  %v6929_v42 = vsel %vm2207_vm10, %v1988_v61, 0.0  ;;  %2674 = vadd.xlane.f32.xlu1 %v8644_v7  ;;  %v1460_v9 = vpop.f32.mrb[96].mxu0  ;;  %v6938_v54 = vadd.f32 %v6489_v11, %v6462_v49  ;;  %v6949_v61 = vld [vmem:[%s8270_s2 + $0xb8] sm:$0xff] }
 0x238   : > { %8641 = vst [vmem:[#allocation35_spill] sm:$0xff] %v6912_v43  ;;  %8643 = vst [vmem:[#allocation45_spill] sm:$0xff] %v6923_v37  ;;  %v1462_v63 = vpop.f32.mrb[97].mxu0  ;;  %v6959_v11 = vsel %vm2207_vm10, %v2072_v33, 0.0  ;;  %v6977_v33 = vmul.f32 %v6853_v16, %v1460_v9  ;;  %v7000_v16 = vld [vmem:[%s8270_s2 + $0x190] sm:$0xff] }
 0x239   : > { %8640 = vst [vmem:[#allocation33_spill] sm:$0xff] %v6909_v51  ;;  %v1602_v51 = vpop.f32.mrb[49].mxu1  ;;  %8645 = vst [vmem:[#allocation32_spill] sm:$0xff] %v6934_v38  ;;  %v6970_v38 = vmul.f32 %v6967_v10, %v1600_v26  ;;  %v1464_v37 = vpop.f32.mrb[98].mxu0 }
 0x23a   : > { %8646 = vst [vmem:[#allocation138_spill] sm:$0xff] %v6938_v54  ;;  %8647 = vst [vmem:[#allocation139_spill] sm:$0xff] %v6949_v61  ;;  %v2074_v7 = vmul.f32 %v6949_v61, %v1602_v51  ;;  %v2100_v49 = vmul.f32 %v6955_v34, %v1602_v51  ;;  %v1604_v8 = vpop.f32.mrb[50].mxu1  ;;  %v1966_v54 = vmul.f32 %v6836_v13, %v1462_v63  ;;  %v8655_v13 = vld [vmem:[#allocation46_spill] sm:$0xff] }
 0x23b   : > { %8648 = vst [vmem:[#allocation140_spill] sm:$0xff] %v6955_v34  ;;  %8649 = vst [vmem:[#allocation141_spill] sm:$0xff] %v6959_v11  ;;  %v1606_v0 = vpop.f32.mrb[51].mxu1  ;;  %v6974_v51 = vmul.f32 %v6845_v58, %v1460_v9  ;;  %2366 = vadd.xlane.f32.xlu0 %v8655_v13  ;;  %v6992_v58 = vld [vmem:[%s8270_s2 + $0xc0] sm:$0xff]  ;;  %v7003_v26 = vmul.f32 %v7000_v16, %v1604_v8 }
 0x23c   : > { %8650 = vst [vmem:[#allocation142_spill] sm:$0xff] %v6962_v48  ;;  %8651 = vst [vmem:[#allocation143_spill] sm:$0xff] %v6967_v10  ;;  %v1466_v48 = vpop.f32.mrb[99].mxu0  ;;  %v6995_v9 = vmul.f32 %v6992_v58, %v1604_v8  ;;  %v7012_v11 = vsel %vm2207_vm10, %v2100_v49, 0.0  ;;  %v7020_v8 = vld [vmem:[%s8270_s2 + $0xc8] sm:$0xff]  ;;  %v7035_v49 = vadd.f32 %v6584_v35, %v6542_v31 }
 0x23d   : > { %8652 = vst [vmem:[#allocation144_spill] sm:$0xff] %v6970_v38  ;;  %8653 = vst [vmem:[#allocation145_spill] sm:$0xff] %v6982_v52  ;;  %v1992_v38 = vmul.f32 %v6861_v62, %v1462_v63  ;;  %v1968_v63 = vmul.f32 %v6898_v14, %v1466_v48  ;;  %v1994_v13 = vmul.f32 %v6904_v21, %v1466_v48  ;;  %v8660_v62 = vld [vmem:[#allocation47_spill] sm:$0xff]  ;;  %v7024_v48 = vsel %vm2207_vm10, %v1966_v54, 0.0  ;;  %v7046_v54 = vld [vmem:[%s8270_s2 + $0x198] sm:$0xff] }
 0x23e   : > { %8654 = vst [vmem:[#allocation146_spill] sm:$0xff] %v6985_v3  ;;  %8656 = vst [vmem:[#allocation46_spill] sm:$0xff] %v6992_v58  ;;  %2314 = vadd.xlane.f32.xlu1 %v8660_v62  ;;  %v7009_v3 = vsel %vm2207_vm10, %v2074_v7, 0.0  ;;  %v2076_v14 = vmul.f32 %v7020_v8, %v1606_v0  ;;  %v7027_v62 = vmul.f32 %v6885_v40, %v1464_v37 }
 0x23f   : > { %8657 = vst [vmem:[#allocation147_spill] sm:$0xff] %v6995_v9  ;;  %8658 = vst [vmem:[#allocation148_spill] sm:$0xff] %v7000_v16  ;;  %v7015_v9 = vmul.f32 %v6877_v60, %v1464_v37  ;;  %v7031_v7 = vadd.f32 %v6492_v22, %v6466_v12  ;;  %v7038_v60 = vsel %vm2207_vm10, %v1992_v38, 0.0  ;;  %v7041_v21 = vsel %vm2207_vm10, %v1968_v63, 0.0  ;;  %v8668_v12 = vld [vmem:[#allocation48_spill] sm:$0xff]  ;;  %v1610_v22 = vpop.f32.mrb[52].mxu1 }
 0x240   : > { %8659 = vst [vmem:[#allocation149_spill] sm:$0xff] %v7003_v26  ;;  %8661 = vst [vmem:[#allocation47_spill] sm:$0xff] %v7009_v3  ;;  %v7049_v37 = vmul.f32 %v7046_v54, %v1606_v0  ;;  %2318 = vadd.xlane.f32.xlu0 %v8668_v12  ;;  %v7057_v31 = vsel %vm2207_vm10, %v1994_v13, 0.0  ;;  %v7060_v38 = vsel %vm2207_vm10, %v2076_v14, 0.0  ;;  %v8672_v63 = vld [vmem:[#allocation15_spill] sm:$0xff]  ;;  %v2103_v40 = vmul.f32 %v6314_v25, %v1610_v22  ;;  %v1612_v0 = vpop.f32.mrb[53].mxu1 }
 0x241   : > { %8662 = vst [vmem:[#allocation150_spill] sm:$0xff] %v7012_v11  ;;  %8663 = vst [vmem:[#allocation151_spill] sm:$0xff] %v7020_v8  ;;  %v7066_v12 = vadd.f32 %v6602_v30, %v6574_v50  ;;  %v2130_v14 = vmul.f32 %v6304_v4, %v1612_v0  ;;  %v8675_v30 = vld [vmem:[#allocation39_spill] sm:$0xff] }
 0x242   : > { %8664 = vst [vmem:[#allocation152_spill] sm:$0xff] %v7031_v7  ;;  %8665 = vst [vmem:[#allocation153_spill] sm:$0xff] %v7035_v49  ;;  %v8669_v7 = vld [vmem:[#allocation25_spill] sm:$0xff]  ;;  %2730 = vadd.xlane.f32.xlu1 %v8672_v63  ;;  %v1470_v49 = vpop.f32.mrb[100].mxu0 }
 0x243   : > { %8666 = vst [vmem:[#allocation154_spill] sm:$0xff] %v7046_v54  ;;  %8667 = vst [vmem:[#allocation155_spill] sm:$0xff] %v7049_v37  ;;  %v7054_v35 = vadd.f32 %v6570_v15, %v8669_v7  ;;  %v7069_v26 = vmul.f32 %v6967_v10, %v1470_v49  ;;  %v2129_v15 = vmul.f32 %v6320_v1, %v1610_v22  ;;  %v1472_v13 = vpop.f32.mrb[101].mxu0  ;;  %v8674_v7 = vld [vmem:[#allocation12_spill] sm:$0xff]  ;;  %v2884_v22 = vsel %vm2207_vm10, %v2130_v14, 0.0  ;;  %v8676_v1 = vld [vmem:[#allocation18_spill] sm:$0xff] }
 0x244   : > { %8671 = vst [vmem:[#allocation25_spill] sm:$0xff] %v7060_v38  ;;  %8673 = vst [vmem:[#allocation15_spill] sm:$0xff] %v7066_v12  ;;  %v1614_v38 = vpop.f32.mrb[54].mxu1  ;;  %v7075_v63 = vmul.f32 %v6982_v52, %v1470_v49  ;;  %v1970_v25 = vmul.f32 %v6949_v61, %v1472_v13  ;;  %v1996_v11 = vmul.f32 %v6955_v34, %v1472_v13  ;;  %v1474_v50 = vpop.f32.mrb[102].mxu0  ;;  %v8678_v34 = vld [vmem:[#allocation27_spill] sm:$0xff]  ;;  %v8680_v37 = vld [vmem:[#allocation72_spill] sm:$0xff] }
 0x245   : > { %8670 = vst [vmem:[#allocation48_spill] sm:$0xff] %v7054_v35  ;;  %v2104_v35 = vmul.f32 %v8674_v7, %v1612_v0  ;;  %v2105_v12 = vmul.f32 %v8675_v30, %v1614_v38  ;;  %v1616_v10 = vpop.f32.mrb[55].mxu1  ;;  %v1971_v7 = vmul.f32 %v6992_v58, %v1474_v50  ;;  %v2131_v4 = vmul.f32 %v8676_v1, %v1614_v38  ;;  %v8677_v0 = vld [vmem:[#allocation77_spill] sm:$0xff]  ;;  %v1476_v49 = vpop.f32.mrb[103].mxu0  ;;  %v8679_v61 = vld [vmem:[#allocation71_spill] sm:$0xff]  ;;  %v8683_v1 = vld [vmem:[#allocation92_spill] sm:$0xff] }
 0x246   : > { %2734 = vadd.xlane.f32.xlu0 %v8677_v0  ;;  %v7086_v52 = vsel %vm2207_vm10, %v1970_v25, 0.0  ;;  %v1997_v13 = vmul.f32 %v7000_v16, %v1474_v50  ;;  %2782 = vadd.xlane.f32.xlu1 %v8678_v34  ;;  %v1972_v30 = vmul.f32 %v7020_v8, %v1476_v49  ;;  %v2106_v14 = vmul.f32 %v8679_v61, %v1616_v10  ;;  %v8682_v34 = vld [vmem:[#allocation88_spill] sm:$0xff] }
 0x247   : > { %v2832_v3 = vsel %vm2207_vm10, %v2104_v35, 0.0  ;;  %v1998_v35 = vmul.f32 %v7046_v54, %v1476_v49  ;;  %v2132_v58 = vmul.f32 %v8680_v37, %v1616_v10  ;;  %v7096_v38 = vadd.f32 %v2884_v22, %v2129_v15  ;;  %v8687_v10 = vld [vmem:[#allocation78_spill] sm:$0xff]  ;;  %v8688_v37 = vld [vmem:[#allocation49_spill] sm:$0xff]  ;;  %v8689_v15 = vld [vmem:[#allocation75_spill] sm:$0xff] }
 0x248   : > { %v7094_v43 = vadd.f32 %v2832_v3, %v2103_v40  ;;  %v7099_v0 = vsel %vm2207_vm10, %v1996_v11, 0.0  ;;  %v2568_v25 = vsel %vm2207_vm10, %v1972_v30, 0.0  ;;  %v7105_v16 = vadd.f32 %v8683_v1, %v8682_v34  ;;  %v1620_v11 = vpop.f32.mrb[56].mxu1  ;;  %v8690_v22 = vld [vmem:[#allocation76_spill] sm:$0xff] }
 0x249   : > { %8681 = vst [vmem:[#allocation12_spill] sm:$0xff] %v7096_v38  ;;  %v2620_v50 = vsel %vm2207_vm10, %v1998_v35, 0.0  ;;  %v7107_v49 = vadd.f32 %v2568_v25, %v1971_v7  ;;  %v2836_v3 = vsel %vm2207_vm10, %v2106_v14, 0.0  ;;  %v2888_v40 = vsel %vm2207_vm10, %v2132_v58, 0.0  ;;  %v1622_v38 = vpop.f32.mrb[57].mxu1  ;;  %v8693_v58 = vld [vmem:[#allocation95_spill] sm:$0xff] }
 0x24a   : > { %8684 = vst [vmem:[#allocation77_spill] sm:$0xff] %v7105_v16  ;;  %v7109_v61 = vadd.f32 %v2620_v50, %v1997_v13  ;;  %2786 = vadd.xlane.f32.xlu0 %v8687_v10  ;;  %2370 = vadd.xlane.f32.xlu1 %v8688_v37  ;;  %v2107_v30 = vmul.f32 %v8689_v15, %v1620_v11  ;;  %v8691_v13 = vld [vmem:[#allocation19_spill] sm:$0xff]  ;;  %v8692_v50 = vld [vmem:[#allocation74_spill] sm:$0xff]  ;;  %v1624_v34 = vpop.f32.mrb[58].mxu1 }
 0x24b   : > { %8685 = vst [vmem:[#allocation27_spill] sm:$0xff] %v7107_v49  ;;  %v2133_v35 = vmul.f32 %v8690_v22, %v1620_v11  ;;  %v7117_v1 = vadd.f32 %v2836_v3, %v2105_v12  ;;  %v7119_v7 = vadd.f32 %v2888_v40, %v2131_v4  ;;  %v2108_v25 = vmul.f32 %v8691_v13, %v1622_v38  ;;  %v8695_v49 = vld [vmem:[#allocation96_spill] sm:$0xff]  ;;  %v1626_v3 = vpop.f32.mrb[59].mxu1  ;;  %v8697_v4 = vld [vmem:[#allocation99_spill] sm:$0xff] }
 0x24c   : > { %8686 = vst [vmem:[#allocation71_spill] sm:$0xff] %v7109_v61  ;;  %v2134_v14 = vmul.f32 %v8692_v50, %v1622_v38  ;;  %v7125_v10 = vadd.f32 %v6692_v29, %v8693_v58  ;;  %v7129_v37 = vadd.f32 %v6695_v17, %v8695_v49  ;;  %v2109_v11 = vmul.f32 %v6499_v36, %v1624_v34  ;;  %v8699_v61 = vld [vmem:[#allocation28_spill] sm:$0xff]  ;;  %v8701_v16 = vld [vmem:[#allocation51_spill] sm:$0xff]  ;;  %v8702_v17 = vld [vmem:[#allocation82_spill] sm:$0xff] }
 0x24d   : > { %v2135_v12 = vmul.f32 %v6505_v27, %v1624_v34  ;;  %v7135_v40 = vadd.f32 %v6708_v18, %v8697_v4  ;;  %v7139_v38 = vadd.f32 %v6705_v47, %v8699_v61  ;;  %v2840_v29 = vsel %vm2207_vm10, %v2108_v25, 0.0  ;;  %v8703_v34 = vld [vmem:[#allocation50_spill] sm:$0xff] }
 0x24e   : > { %8694 = vst [vmem:[#allocation72_spill] sm:$0xff] %v7125_v10  ;;  %8696 = vst [vmem:[#allocation88_spill] sm:$0xff] %v7129_v37  ;;  %v2892_v58 = vsel %vm2207_vm10, %v2134_v14, 0.0  ;;  %2374 = vadd.xlane.f32.xlu0 %v8701_v16  ;;  %v2110_v49 = vmul.f32 %v8702_v17, %v1626_v3  ;;  %v2136_v37 = vmul.f32 %v6479_v23, %v1626_v3  ;;  %2322 = vadd.xlane.f32.xlu1 %v8703_v34  ;;  %v8730_v34 = vld [vmem:[#allocation83_spill] sm:$0xff] }
 0x24f   : > { %8698 = vst [vmem:[#allocation92_spill] sm:$0xff] %v7135_v40  ;;  %8700 = vst [vmem:[#allocation78_spill] sm:$0xff] %v7139_v38  ;;  %v7147_v10 = vadd.f32 %v2892_v58, %v2133_v35  ;;  %v7149_v18 = vadd.f32 %v2840_v29, %v2107_v30  ;;  %v7153_v47 = vadd.f32 %v6733_v53, %v6712_v59  ;;  %v8709_v35 = vld [vmem:[#allocation37_spill] sm:$0xff]  ;;  %v8726_v29 = vld [vmem:[#allocation87_spill] sm:$0xff] }
 0x250   : > { %v7157_v61 = vadd.f32 %v6736_v2, %v6716_v19  ;;  %v2844_v16 = vsel %vm2207_vm10, %v2110_v49, 0.0  ;;  %v2896_v25 = vsel %vm2207_vm10, %v2136_v37, 0.0  ;;  %v7163_v23 = vadd.f32 %v6749_v32, %v6722_v57  ;;  %v8715_v19 = vld [vmem:[#allocation81_spill] sm:$0xff]  ;;  %v1630_v57 = vpop.f32.mrb[60].mxu1  ;;  %v8718_v37 = vld [vmem:[#allocation122_spill] sm:$0xff] }
 0x251   : > { %8704 = vst [vmem:[#allocation49_spill] sm:$0xff] %v7147_v10  ;;  %8705 = vst [vmem:[#allocation75_spill] sm:$0xff] %v7149_v18  ;;  %v7167_v30 = vadd.f32 %v8709_v35, %v6719_v24  ;;  %v7169_v14 = vadd.f32 %v2844_v16, %v2109_v11  ;;  %v7171_v53 = vadd.f32 %v2896_v25, %v2135_v12  ;;  %v8717_v24 = vld [vmem:[#allocation41_spill] sm:$0xff]  ;;  %v8720_v12 = vld [vmem:[#allocation26_spill] sm:$0xff] }
 0x252   : > { %8706 = vst [vmem:[#allocation76_spill] sm:$0xff] %v7153_v47  ;;  %8707 = vst [vmem:[#allocation19_spill] sm:$0xff] %v7157_v61  ;;  %v7175_v2 = vadd.f32 %v6813_v20, %v6768_v39  ;;  %v7179_v59 = vadd.f32 %v6816_v45, %v6790_v28  ;;  %2790 = vadd.xlane.f32.xlu0 %v8715_v19  ;;  %v7184_v32 = vadd.f32 %v6828_v46, %v6822_v5  ;;  %v8722_v20 = vld [vmem:[#allocation131_spill] sm:$0xff]  ;;  %v8724_v45 = vld [vmem:[#allocation80_spill] sm:$0xff]  ;;  %v1632_v5 = vpop.f32.mrb[61].mxu1 }
 0x253   : > { %8708 = vst [vmem:[#allocation74_spill] sm:$0xff] %v7163_v23  ;;  %8710 = vst [vmem:[#allocation95_spill] sm:$0xff] %v7167_v30  ;;  %v7188_v11 = vadd.f32 %v8718_v37, %v8717_v24  ;;  %v7192_v3 = vadd.f32 %v6926_v55, %v8720_v12  ;;  %v7196_v39 = vadd.f32 %v6929_v42, %v8722_v20  ;;  %2738 = vadd.xlane.f32.xlu1 %v8724_v45  ;;  %v8725_v28 = vld [vmem:[#allocation86_spill] sm:$0xff]  ;;  %v8729_v55 = vld [vmem:[#allocation24_spill] sm:$0xff]  ;;  %v1634_v16 = vpop.f32.mrb[62].mxu1 }
 0x254   : > { %8711 = vst [vmem:[#allocation96_spill] sm:$0xff] %v7169_v14  ;;  %8712 = vst [vmem:[#allocation99_spill] sm:$0xff] %v7171_v53  ;;  %v2111_v4 = vmul.f32 %v8725_v28, %v1630_v57  ;;  %v2137_v58 = vmul.f32 %v8726_v29, %v1630_v57  ;;  %v7203_v46 = vadd.f32 %v6944_v6, %v6918_v56  ;;  %v8733_v19 = vld [vmem:[#allocation97_spill] sm:$0xff]  ;;  %v8734_v6 = vld [vmem:[#allocation98_spill] sm:$0xff]  ;;  %v1636_v24 = vpop.f32.mrb[63].mxu1 }
 0x255   : > { %8713 = vst [vmem:[#allocation28_spill] sm:$0xff] %v7175_v2  ;;  %8714 = vst [vmem:[#allocation51_spill] sm:$0xff] %v7179_v59  ;;  %v7207_v17 = vadd.f32 %v6941_v44, %v6915_v41  ;;  %v2112_v49 = vmul.f32 %v8729_v55, %v1632_v5  ;;  %v2138_v42 = vmul.f32 %v8730_v34, %v1632_v5  ;;  %v8737_v37 = vld [vmem:[#allocation53_spill] sm:$0xff]  ;;  %v8739_v12 = vld [vmem:[#allocation94_spill] sm:$0xff] }
 0x256   : > { %8716 = vst [vmem:[#allocation82_spill] sm:$0xff] %v7184_v32  ;;  %8719 = vst [vmem:[#allocation50_spill] sm:$0xff] %v7188_v11  ;;  %v7213_v25 = vadd.f32 %v7024_v48, %v6974_v51  ;;  %v7217_v35 = vadd.f32 %v7038_v60, %v6977_v33  ;;  %v2113_v56 = vmul.f32 %v8733_v19, %v1634_v16  ;;  %2326 = vadd.xlane.f32.xlu0 %v8737_v37  ;;  %v8738_v60 = vld [vmem:[#allocation93_spill] sm:$0xff]  ;;  %v8740_v45 = vld [vmem:[#allocation52_spill] sm:$0xff] }
 0x257   : > { %8721 = vst [vmem:[#allocation37_spill] sm:$0xff] %v7192_v3  ;;  %8723 = vst [vmem:[#allocation81_spill] sm:$0xff] %v7196_v39  ;;  %v2139_v57 = vmul.f32 %v8734_v6, %v1634_v16  ;;  %v7223_v41 = vadd.f32 %v7057_v31, %v7027_v62  ;;  %v7227_v44 = vadd.f32 %v7041_v21, %v7015_v9  ;;  %v2848_v51 = vsel %vm2207_vm10, %v2112_v49, 0.0  ;;  %v8746_v16 = vld [vmem:[#allocation117_spill] sm:$0xff]  ;;  %v8754_v37 = vld [vmem:[#allocation123_spill] sm:$0xff] }
 0x258   : > { %8727 = vst [vmem:[#allocation41_spill] sm:$0xff] %v7203_v46  ;;  %8728 = vst [vmem:[#allocation122_spill] sm:$0xff] %v7207_v17  ;;  %v2900_v48 = vsel %vm2207_vm10, %v2138_v42, 0.0  ;;  %v2114_v33 = vmul.f32 %v8738_v60, %v1636_v24  ;;  %v2140_v20 = vmul.f32 %v8739_v12, %v1636_v24  ;;  %2378 = vadd.xlane.f32.xlu1 %v8740_v45  ;;  %v8745_v42 = vld [vmem:[#allocation115_spill] sm:$0xff]  ;;  %v8789_v17 = vld [vmem:[#allocation104_spill] sm:$0xff] }
 0x259   : > { %8731 = vst [vmem:[#allocation26_spill] sm:$0xff] %v7213_v25  ;;  %8732 = vst [vmem:[#allocation131_spill] sm:$0xff] %v7217_v35  ;;  %v7235_v5 = vadd.f32 %v2900_v48, %v2137_v58  ;;  %v7237_v62 = vadd.f32 %v2848_v51, %v2111_v4  ;;  %v7241_v21 = vadd.f32 %v7086_v52, %v7069_v26  ;;  %v8748_v58 = vld [vmem:[#allocation22_spill] sm:$0xff]  ;;  %v8753_v26 = vld [vmem:[#allocation119_spill] sm:$0xff] }
 0x25a   : > { %8735 = vst [vmem:[#allocation80_spill] sm:$0xff] %v7223_v41  ;;  %8736 = vst [vmem:[#allocation86_spill] sm:$0xff] %v7227_v44  ;;  %v7245_v9 = vadd.f32 %v7099_v0, %v7075_v63  ;;  %v2852_v31 = vsel %vm2207_vm10, %v2114_v33, 0.0  ;;  %v2904_v49 = vsel %vm2207_vm10, %v2140_v20, 0.0  ;;  %v7251_v24 = vadd.f32 %v8746_v16, %v8745_v42  ;;  %v8749_v48 = vld [vmem:[#allocation30_spill] sm:$0xff]  ;;  %v8756_v0 = vld [vmem:[#allocation121_spill] sm:$0xff] }
 0x25b   : > { %8741 = vst [vmem:[#allocation87_spill] sm:$0xff] %v7235_v5  ;;  %8742 = vst [vmem:[#allocation24_spill] sm:$0xff] %v7237_v62  ;;  %v7255_v4 = vadd.f32 %v8749_v48, %v8748_v58  ;;  %v7257_v51 = vadd.f32 %v2852_v31, %v2113_v56  ;;  %v7259_v52 = vadd.f32 %v2904_v49, %v2139_v57  ;;  %v8757_v33 = vld [vmem:[#allocation125_spill] sm:$0xff]  ;;  %v1640_v42 = vpop.f32.mrb[64].mxu1  ;;  %v8760_v16 = vld [vmem:[#allocation11_spill] sm:$0xff] }
 0x25c   : > { %8743 = vst [vmem:[#allocation83_spill] sm:$0xff] %v7241_v21  ;;  %8744 = vst [vmem:[#allocation97_spill] sm:$0xff] %v7245_v9  ;;  %v7263_v63 = vadd.f32 %v8754_v37, %v8753_v26  ;;  %v7267_v45 = vadd.f32 %v8757_v33, %v8756_v0  ;;  %v8759_v20 = vld [vmem:[#allocation85_spill] sm:$0xff]  ;;  %v8763_v58 = vld [vmem:[#allocation127_spill] sm:$0xff] }
 0x25d   : > { %8747 = vst [vmem:[#allocation98_spill] sm:$0xff] %v7251_v24  ;;  %8750 = vst [vmem:[#allocation53_spill] sm:$0xff] %v7255_v4  ;;  %2794 = vadd.xlane.f32.xlu0 %v8759_v20  ;;  %v8761_v24 = vld [vmem:[#allocation42_spill] sm:$0xff]  ;;  %v8764_v56 = vld [vmem:[#allocation135_spill] sm:$0xff] }
 0x25e   : > { %8751 = vst [vmem:[#allocation93_spill] sm:$0xff] %v7257_v51  ;;  %8752 = vst [vmem:[#allocation94_spill] sm:$0xff] %v7259_v52  ;;  %v7272_v9 = vadd.f32 %v8761_v24, %v8760_v16  ;;  %v7276_v31 = vadd.f32 %v8764_v56, %v8763_v58  ;;  %v8766_v57 = vld [vmem:[#allocation129_spill] sm:$0xff]  ;;  %v8767_v49 = vld [vmem:[#allocation35_spill] sm:$0xff]  ;;  %v1642_v16 = vpop.f32.mrb[65].mxu1 }
 0x25f   : > { %8755 = vst [vmem:[#allocation52_spill] sm:$0xff] %v7263_v63  ;;  %8758 = vst [vmem:[#allocation115_spill] sm:$0xff] %v7267_v45  ;;  %v7280_v48 = vadd.f32 %v8767_v49, %v8766_v57  ;;  %v8769_v26 = vld [vmem:[#allocation14_spill] sm:$0xff]  ;;  %v8770_v37 = vld [vmem:[#allocation73_spill] sm:$0xff] }
 0x260   : > { %8762 = vst [vmem:[#allocation117_spill] sm:$0xff] %v7272_v9  ;;  %8765 = vst [vmem:[#allocation22_spill] sm:$0xff] %v7276_v31  ;;  %v7284_v4 = vadd.f32 %v8770_v37, %v8769_v26  ;;  %v8772_v0 = vld [vmem:[#allocation155_spill] sm:$0xff]  ;;  %v8773_v20 = vld [vmem:[#allocation84_spill] sm:$0xff] }
 0x261   : > { %8768 = vst [vmem:[#allocation30_spill] sm:$0xff] %v7280_v48  ;;  %v2828_v33 = vsel %vm2207_vm10, %v8772_v0, 0.0  ;;  %2742 = vadd.xlane.f32.xlu1 %v8773_v20  ;;  %v8774_v45 = vld [vmem:[#allocation103_spill] sm:$0xff]  ;;  %v8775_v9 = vld [vmem:[#allocation132_spill] sm:$0xff]  ;;  %v8776_v63 = vld [vmem:[#allocation141_spill] sm:$0xff] }
 0x262   : > { %8771 = vst [vmem:[#allocation119_spill] sm:$0xff] %v7284_v4  ;;  %v2115_v24 = vmul.f32 %v8774_v45, %v1640_v42  ;;  %v7292_v58 = vadd.f32 %v8776_v63, %v8775_v9  ;;  %v8778_v56 = vld [vmem:[#allocation134_spill] sm:$0xff]  ;;  %v8781_v49 = vld [vmem:[#allocation29_spill] sm:$0xff]  ;;  %v8782_v26 = vld [vmem:[#allocation100_spill] sm:$0xff]  ;;  %v1644_v4 = vpop.f32.mrb[66].mxu1  ;;  %v2141_v9 = vmul.f32 %v8789_v17, %v1640_v42 }
 0x263   : > { %v8779_v31 = vld [vmem:[#allocation142_spill] sm:$0xff]  ;;  %v2116_v48 = vmul.f32 %v8781_v49, %v1642_v16  ;;  %v2142_v37 = vmul.f32 %v8782_v26, %v1642_v16  ;;  %v8783_v44 = vld [vmem:[#allocation43_spill] sm:$0xff]  ;;  %v8786_v20 = vld [vmem:[#allocation144_spill] sm:$0xff]  ;;  %v1646_v25 = vpop.f32.mrb[67].mxu1 }
 0x264   : > { %8777 = vst [vmem:[#allocation123_spill] sm:$0xff] %v7292_v58  ;;  %v7296_v57 = vadd.f32 %v8779_v31, %v8778_v56  ;;  %v8784_v0 = vld [vmem:[#allocation79_spill] sm:$0xff]  ;;  %v8790_v63 = vld [vmem:[#allocation109_spill] sm:$0xff]  ;;  %v8791_v31 = vld [vmem:[#allocation146_spill] sm:$0xff] }
 0x265   : > { %v7302_v21 = vadd.f32 %v8784_v0, %v8783_v44  ;;  %v8787_v35 = vld [vmem:[#allocation47_spill] sm:$0xff]  ;;  %v2117_v58 = vmul.f32 %v8790_v63, %v1644_v4  ;;  %v8792_v56 = vld [vmem:[#allocation150_spill] sm:$0xff]  ;;  %v8795_v16 = vld [vmem:[#allocation25_spill] sm:$0xff]  ;;  %v2856_v44 = vsel %vm2207_vm10, %v2116_v48, 0.0  ;;  %v2908_v0 = vsel %vm2207_vm10, %v2142_v37, 0.0 }
 0x266   : > { %8780 = vst [vmem:[#allocation121_spill] sm:$0xff] %v7296_v57  ;;  %v7306_v41 = vadd.f32 %v8787_v35, %v8786_v20  ;;  %v7312_v57 = vadd.f32 %v8792_v56, %v8791_v31  ;;  %v8794_v39 = vld [vmem:[#allocation147_spill] sm:$0xff]  ;;  %v8798_v35 = vld [vmem:[#allocation108_spill] sm:$0xff]  ;;  %v8799_v42 = vld [vmem:[#allocation110_spill] sm:$0xff]  ;;  %v7325_v31 = vadd.f32 %v2856_v44, %v2115_v24  ;;  %v7327_v56 = vadd.f32 %v2908_v0, %v2141_v9 }
 0x267   : > { %8785 = vst [vmem:[#allocation125_spill] sm:$0xff] %v7302_v21  ;;  %v7316_v46 = vadd.f32 %v8795_v16, %v8794_v39  ;;  %v8797_v21 = vld [vmem:[#allocation55_spill] sm:$0xff]  ;;  %v2118_v20 = vmul.f32 %v8798_v35, %v1646_v25  ;;  %v8800_v11 = vld [vmem:[#allocation114_spill] sm:$0xff]  ;;  %v8804_v39 = vld [vmem:[#allocation149_spill] sm:$0xff] }
 0x268   : > { %8788 = vst [vmem:[#allocation85_spill] sm:$0xff] %v7306_v41  ;;  %8793 = vst [vmem:[#allocation11_spill] sm:$0xff] %v7312_v57  ;;  %2382 = vadd.xlane.f32.xlu0 %v8797_v21  ;;  %v2144_v41 = vmul.f32 %v8799_v42, %v1646_v25  ;;  %v2143_v3 = vmul.f32 %v8800_v11, %v1644_v4  ;;  %v8801_v59 = vld [vmem:[#allocation54_spill] sm:$0xff]  ;;  %v7330_v16 = vadd.f32 %v2828_v33, %v8804_v39  ;;  %v8808_v25 = vld [vmem:[#allocation91_spill] sm:$0xff]  ;;  %v1650_v4 = vpop.f32.mrb[68].mxu1  ;;  %v7342_v39 = vpop.xlane.xlu0 %2210 }
 0x269   : > { %8796 = vst [vmem:[#allocation42_spill] sm:$0xff] %v7316_v46  ;;  %2330 = vadd.xlane.f32.xlu1 %v8801_v59  ;;  %8802 = vst [vmem:[#allocation127_spill] sm:$0xff] %v7325_v31  ;;  %v2860_v48 = vsel %vm2207_vm10, %v2118_v20, 0.0  ;;  %v8809_v57 = vld [vmem:[#allocation90_spill] sm:$0xff]  ;;  %v1652_v59 = vpop.f32.mrb[69].mxu1  ;;  %v8810_v24 = vld [vmem:[#allocation112_spill] sm:$0xff] }
 0x26a   : > { %8803 = vst [vmem:[#allocation135_spill] sm:$0xff] %v7327_v56  ;;  %8805 = vst [vmem:[#allocation129_spill] sm:$0xff] %v7330_v16  ;;  %v2912_v37 = vsel %vm2207_vm10, %v2144_v41, 0.0  ;;  %v7334_v21 = vadd.f32 %v2860_v48, %v2117_v58  ;;  %v2120_v9 = vmul.f32 %v8810_v24, %v1652_v59  ;;  %v8811_v44 = vld [vmem:[#allocation116_spill] sm:$0xff]  ;;  %v1654_v33 = vpop.f32.mrb[70].mxu1  ;;  %v8812_v20 = vld [vmem:[#allocation118_spill] sm:$0xff] }
 0x26b   : > { %v7336_v46 = vadd.f32 %v2912_v37, %v2143_v3  ;;  %v2146_v0 = vmul.f32 %v8811_v44, %v1652_v59  ;;  %v2119_v16 = vmul.f32 %v8812_v20, %v1650_v4  ;;  %v8813_v41 = vld [vmem:[#allocation120_spill] sm:$0xff]  ;;  %v1656_v48 = vpop.f32.mrb[71].mxu1  ;;  %v8817_v56 = vld [vmem:[#allocation126_spill] sm:$0xff]  ;;  %v8833_v52 = vld [vmem:[#allocation139_spill] sm:$0xff] }
 0x26c   : > { %8806 = vst [vmem:[#allocation35_spill] sm:$0xff] %v7334_v21  ;;  %2746 = vadd.xlane.f32.xlu0 %v8808_v25  ;;  %v2145_v58 = vmul.f32 %v8813_v41, %v1650_v4  ;;  %v2864_v3 = vsel %vm2207_vm10, %v2120_v9, 0.0  ;;  %v8814_v25 = vld [vmem:[#allocation57_spill] sm:$0xff]  ;;  %v8816_v21 = vld [vmem:[#allocation130_spill] sm:$0xff]  ;;  %v2121_v59 = vmul.f32 %v8817_v56, %v1654_v33  ;;  %v8818_v32 = vld [vmem:[#allocation128_spill] sm:$0xff]  ;;  %v7365_v38 = vpop.xlane.xlu0 %2262 }
 0x26d   : > { %8807 = vst [vmem:[#allocation14_spill] sm:$0xff] %v7336_v46  ;;  %2798 = vadd.xlane.f32.xlu1 %v8809_v57  ;;  %v2916_v37 = vsel %vm2207_vm10, %v2146_v0, 0.0  ;;  %v8815_v57 = vld [vmem:[#allocation124_spill] sm:$0xff]  ;;  %v2148_v31 = vmul.f32 %v8816_v21, %v1656_v48  ;;  %v2147_v2 = vmul.f32 %v8818_v32, %v1654_v33  ;;  %v7354_v23 = vadd.f32 %v2864_v3, %v2119_v16  ;;  %v8824_v47 = vld [vmem:[#allocation102_spill] sm:$0xff]  ;;  %v8825_v33 = vld [vmem:[#allocation101_spill] sm:$0xff] }
 0x26e   : > { %v2122_v46 = vmul.f32 %v8815_v57, %v1656_v48  ;;  %v8819_v30 = vld [vmem:[#allocation56_spill] sm:$0xff]  ;;  %v7356_v4 = vadd.f32 %v2916_v37, %v2145_v58  ;;  %v1660_v48 = vpop.f32.mrb[72].mxu1  ;;  %v8826_v16 = vlaneseq  ;;  %v8835_v5 = vld [vmem:[#allocation143_spill] sm:$0xff]  ;;  %v8836_v14 = vld [vmem:[#allocation145_spill] sm:$0xff] }
 0x26f   : > { %8820 = vst [vmem:[#allocation73_spill] sm:$0xff] %v7354_v23  ;;  %v2920_v0 = vsel %vm2207_vm10, %v2148_v31, 0.0  ;;  %v8827_v58 = vld [vmem:[#allocation136_spill] sm:$0xff]  ;;  %v8837_v10 = vld [vmem:[#allocation58_spill] sm:$0xff] }
 0x270   : > { %2334 = vadd.xlane.f32.xlu0 %v8814_v25  ;;  %8821 = vst [vmem:[#allocation155_spill] sm:$0xff] %v7356_v4  ;;  %v2868_v9 = vsel %vm2207_vm10, %v2122_v46, 0.0  ;;  %v7362_v25 = vadd.f32 %v2920_v0, %v2147_v2  ;;  %v7369_v3 = vshrl.u32 %v8826_v16, 7  ;;  %v8828_v46 = vld [vmem:[#allocation137_spill] sm:$0xff]  ;;  %v8830_v2 = vld [vmem:[#allocation44_spill] sm:$0xff]  ;;  %v8832_v16 = vld [vmem:[#allocation59_spill] sm:$0xff] }
 0x271   : > { %2386 = vadd.xlane.f32.xlu1 %v8819_v30  ;;  %v7360_v61 = vadd.f32 %v2868_v9, %v2121_v59  ;;  %v1662_v30 = vpop.f32.mrb[73].mxu1  ;;  %v8829_v59 = vld [vmem:[#allocation2_spill] sm:$0xff]  ;;  %v2123_v0 = vmul.f32 %v8830_v2, %v1660_v48  ;;  %v8834_v62 = vld [vmem:[#allocation140_spill] sm:$0xff] }
 0x272   : > { %8823 = vst [vmem:[#allocation103_spill] sm:$0xff] %v7362_v25  ;;  %v2124_v37 = vmul.f32 %v8827_v58, %v1662_v30  ;;  %v2150_v23 = vmul.f32 %v8828_v46, %v1662_v30  ;;  %v1664_v31 = vpop.f32.mrb[74].mxu1  ;;  %v3252_v9 = vadd.s32 4294967288, %v8829_v59  ;;  %v8831_v25 = vld [vmem:[#allocation133_spill] sm:$0xff]  ;;  %v3259_v4 = vadd.s32 4294967280, %v8829_v59  ;;  %v7385_v46 = vpop.xlane.xlu0 %2678 }
 0x273   : > { %8822 = vst [vmem:[#allocation84_spill] sm:$0xff] %v7360_v61  ;;  %v1666_v61 = vpop.f32.mrb[75].mxu1  ;;  %v2125_v53 = vmul.f32 %v8835_v5, %v1664_v31  ;;  %v2151_v18 = vmul.f32 %v8836_v14, %v1664_v31  ;;  %v8842_v14 = vld [vmem:[#allocation107_spill] sm:$0xff] }
 0x274   : > { %2802 = vadd.xlane.f32.xlu0 %v8824_v47  ;;  %v2149_v47 = vmul.f32 %v8831_v25, %v1660_v48  ;;  %v2924_v40 = vsel %vm2207_vm10, %v2150_v23, 0.0  ;;  %v2126_v51 = vmul.f32 %v8833_v52, %v1666_v61  ;;  %v2152_v30 = vmul.f32 %v8834_v62, %v1666_v61  ;;  %v2627_v48 = vpop.xlane.xlu1 %2626  ;;  %v8848_v25 = vld [vmem:[#allocation16_spill] sm:$0xff] }
 0x275   : > { %2750 = vadd.xlane.f32.xlu1 %v8825_v33  ;;  %v2872_v33 = vsel %vm2207_vm10, %v2124_v37, 0.0  ;;  %v7393_v23 = vsub.s32 %v8829_v59, %v7369_v3  ;;  %v7398_v5 = vsub.s32 %v3252_v9, %v7369_v3 }
 0x276   : > { %v7387_v58 = vadd.f32 %v2872_v33, %v2123_v0  ;;  %v7389_v37 = vadd.f32 %v2924_v40, %v2149_v47  ;;  %v2928_v61 = vsel %vm2207_vm10, %v2152_v30, 0.0  ;;  %v1670_v0 = vpop.f32.mrb[76].mxu1  ;;  %v8843_v40 = vld [vmem:[#allocation36_spill] sm:$0xff]  ;;  %v2631_v33 = vpop.xlane.xlu0 %2630 }
 0x277   : > { %v1672_v9 = vpop.f32.mrb[77].mxu1 }
 0x278   : > { %2390 = vadd.xlane.f32.xlu0 %v8832_v16  ;;  %8838 = vst [vmem:[#allocation132_spill] sm:$0xff] %v7387_v58  ;;  %8839 = vst [vmem:[#allocation141_spill] sm:$0xff] %v7389_v37  ;;  %v2876_v16 = vsel %vm2207_vm10, %v2126_v51, 0.0  ;;  %v2215_v47 = vpop.xlane.xlu1 %2214  ;;  %v7407_v58 = vsub.s32 %v3259_v4, %v7369_v3  ;;  %v3251_v51 = vrot.slane %v7342_v39, %v7393_v23 }
 0x279   : > { %2338 = vadd.xlane.f32.xlu1 %v8837_v10  ;;  %v7400_v31 = vadd.f32 %v2876_v16, %v2125_v53  ;;  %v7402_v10 = vadd.f32 %v2928_v61, %v2151_v18  ;;  %v3787_v53 = vrot.slane %v2627_v48, %v7393_v23  ;;  %v3791_v18 = vrot.slane %v2631_v33, %v7398_v5  ;;  %v8844_v16 = vld [vmem:[#allocation46_spill] sm:$0xff]  ;;  %v8846_v48 = vld [vmem:[#allocation21_spill] sm:$0xff] }
 0x27a   : > { %v3256_v30 = vrot.slane %v2215_v47, %v7398_v5  ;;  %v2127_v61 = vmul.f32 %v8844_v16, %v1670_v0  ;;  %v2154_v4 = vmul.f32 %v7046_v54, %v1672_v9  ;;  %v8847_v33 = vld [vmem:[#allocation34_spill] sm:$0xff]  ;;  %v3339_v54 = vrot.slane %v7365_v38, %v7393_v23 }
 0x27b   : > { %8840 = vst [vmem:[#allocation134_spill] sm:$0xff] %v7400_v31  ;;  %8841 = vst [vmem:[#allocation142_spill] sm:$0xff] %v7402_v10  ;;  %v1674_v31 = vpop.f32.mrb[78].mxu1  ;;  %v8845_v10 = vld [vmem:[#allocation148_spill] sm:$0xff]  ;;  %v7420_v39 = vsel %vm3257_vm2, %v3791_v18, %v3787_v53  ;;  %v4748_v53 = vld [vmem:[%s8270_s2 + $0xd8] sm:$0xff]  ;;  %v3851_v38 = vrot.slane %v7385_v46, %v7393_v23 }
 0x27c   : > { %2754 = vadd.xlane.f32.xlu0 %v8842_v14  ;;  %v3266_v14 = vadd.s32 4294967272, %v8829_v59  ;;  %v2153_v37 = vmul.f32 %v8845_v10, %v1670_v0  ;;  %v2155_v62 = vmul.f32 %v8846_v48, %v1674_v31  ;;  %v2181_v52 = vmul.f32 %v8847_v33, %v1674_v31  ;;  %v1676_v2 = vpop.f32.mrb[79].mxu1  ;;  %v4747_v0 = vld [vmem:[%s8270_s2 + $0x8] sm:$0xff]  ;;  %v2267_v31 = vpop.xlane.xlu1 %2266 }
 0x27d   : > { %2806 = vadd.xlane.f32.xlu1 %v8843_v40  ;;  %v2128_v40 = vmul.f32 %v7020_v8, %v1672_v9  ;;  %v2932_v16 = vsel %vm2207_vm10, %v2154_v4, 0.0  ;;  %v8849_v8 = vld [vmem:[#allocation13_spill] sm:$0xff]  ;;  %v2156_v9 = vmul.f32 %v4747_v0, %v1676_v2  ;;  %v2182_v18 = vmul.f32 %v4748_v53, %v1676_v2  ;;  %v2219_v48 = vpop.xlane.xlu0 %2218  ;;  %v4750_v46 = vld [vmem:[%s8270_s2 + $0xe8] sm:$0xff] }
 0x27e   : > { %v7438_v4 = vadd.f32 %v2932_v16, %v2153_v37  ;;  %v8852_v53 = vld [vmem:[#allocation17_spill] sm:$0xff]  ;;  %v8853_v37 = vld [vmem:[#allocation111_spill] sm:$0xff]  ;;  %v7455_v16 = vsub.s32 %v3266_v14, %v7369_v3 }
 0x27f   : > { %v2880_v47 = vsel %vm2207_vm10, %v2128_v40, 0.0  ;;  %v3263_v40 = vrot.slane %v2219_v48, %v7407_v58  ;;  %v2936_v10 = vsel %vm2207_vm10, %v2156_v9, 0.0  ;;  %v2988_v0 = vsel %vm2207_vm10, %v2182_v18, 0.0  ;;  %v4749_v14 = vld [vmem:[%s8270_s2 + $0x18] sm:$0xff] }
 0x280   : > { %2342 = vadd.xlane.f32.xlu0 %v8848_v25  ;;  %v3343_v25 = vrot.slane %v2267_v31, %v7398_v5  ;;  %v7436_v33 = vadd.f32 %v2880_v47, %v2127_v61  ;;  %8851 = vst [vmem:[#allocation100_spill] sm:$0xff] %v7438_v4  ;;  %v1680_v31 = vpop.f32.mrb[80].mxu1  ;;  %v7449_v48 = vadd.f32 %v2936_v10, %v2155_v62  ;;  %v3273_v47 = vadd.s32 4294967264, %v8829_v59  ;;  %v8854_v10 = vld [vmem:[#allocation39_spill] sm:$0xff]  ;;  %v8857_v4 = vld [vmem:[#allocation60_spill] sm:$0xff] }
 0x281   : > { %2394 = vadd.xlane.f32.xlu1 %v8849_v8  ;;  %v3258_v8 = vsel %vm3257_vm2, %v3256_v30, %v3251_v51  ;;  %v7451_v61 = vadd.f32 %v2988_v0, %v2181_v52  ;;  %v2683_v51 = vpop.xlane.xlu1 %2682  ;;  %v2271_v30 = vpop.xlane.xlu0 %2270 }
 0x282   : > { %8850 = vst [vmem:[#allocation29_spill] sm:$0xff] %v7436_v33  ;;  %v7446_v2 = vsel %vm3264_vm1, %v3263_v40, %v3258_v8  ;;  %v3344_v9 = vsel %vm3257_vm2, %v3343_v25, %v3339_v54  ;;  %v3855_v18 = vrot.slane %v2683_v51, %v7398_v5  ;;  %v3348_v62 = vrot.slane %v2271_v30, %v7407_v58  ;;  %v1682_v52 = vpop.f32.mrb[81].mxu1  ;;  %v8855_v8 = vld [vmem:[#allocation18_spill] sm:$0xff] }
 0x283   : > { %v2157_v40 = vmul.f32 %v8854_v10, %v1680_v31  ;;  %v2183_v0 = vmul.f32 %v8855_v8, %v1680_v31  ;;  %v1684_v54 = vpop.f32.mrb[82].mxu1  ;;  %v8856_v31 = vld [vmem:[#allocation61_spill] sm:$0xff] }
 0x284   : > { %2398 = vadd.xlane.f32.xlu0 %v8852_v53  ;;  %v2158_v53 = vmul.f32 %v4749_v14, %v1682_v52  ;;  %v3856_v25 = vsel %vm3257_vm2, %v3855_v18, %v3851_v38  ;;  %v3349_v51 = vsel %vm3264_vm1, %v3348_v62, %v3344_v9  ;;  %v2159_v30 = vmul.f32 %v8689_v15, %v1684_v54  ;;  %v1686_v8 = vpop.f32.mrb[83].mxu1 }
 0x285   : > { %2758 = vadd.xlane.f32.xlu1 %v8853_v37  ;;  %v2184_v37 = vmul.f32 %v4750_v46, %v1682_v52  ;;  %v2185_v10 = vmul.f32 %v8690_v22, %v1684_v54  ;;  %v2160_v52 = vmul.f32 %v8691_v13, %v1686_v8  ;;  %v2186_v46 = vmul.f32 %v8692_v50, %v1686_v8  ;;  %v2635_v38 = vpop.xlane.xlu1 %2634  ;;  %v2687_v18 = vpop.xlane.xlu0 %2686  ;;  %v8858_v50 = vld [vmem:[#allocation63_spill] sm:$0xff] }
 0x286   : > { %v2940_v33 = vsel %vm2207_vm10, %v2158_v53, 0.0  ;;  %v3796_v9 = vrot.slane %v2635_v38, %v7407_v58  ;;  %v3860_v15 = vrot.slane %v2687_v18, %v7407_v58  ;;  %v1690_v54 = vpop.f32.mrb[84].mxu1  ;;  %v4751_v38 = vld [vmem:[%s8270_s2 + $0x38] sm:$0xff] }
 0x287   : > { %v2992_v14 = vsel %vm2207_vm10, %v2184_v37, 0.0  ;;  %v7483_v22 = vadd.f32 %v2940_v33, %v2157_v40  ;;  %v2944_v53 = vsel %vm2207_vm10, %v2160_v52, 0.0  ;;  %v2996_v37 = vsel %vm2207_vm10, %v2186_v46, 0.0  ;;  %v8859_v33 = vld [vmem:[#allocation62_spill] sm:$0xff]  ;;  %v1692_v46 = vpop.f32.mrb[85].mxu1 }
 0x288   : > { %2350 = vadd.xlane.f32.xlu0 %v8856_v31  ;;  %v7485_v62 = vadd.f32 %v2992_v14, %v2183_v0  ;;  %v3861_v13 = vsel %vm3264_vm1, %v3860_v15, %v3856_v25  ;;  %v7493_v31 = vadd.f32 %v2944_v53, %v2159_v30  ;;  %v7495_v8 = vadd.f32 %v2996_v37, %v2185_v10  ;;  %v1694_v53 = vpop.f32.mrb[86].mxu1 }
 0x289   : > { %2346 = vadd.xlane.f32.xlu1 %v8857_v4  ;;  %v3797_v4 = vsel %vm3264_vm1, %v3796_v9, %v7420_v39  ;;  %v2275_v40 = vpop.xlane.xlu1 %2274  ;;  %v2223_v0 = vpop.xlane.xlu0 %2222  ;;  %v7501_v39 = vsub.s32 %v3273_v47, %v7369_v3  ;;  %v3280_v25 = vadd.s32 4294967256, %v8829_v59  ;;  %v2161_v30 = vmul.f32 %v6499_v36, %v1690_v54  ;;  %v4752_v9 = vld [vmem:[%s8270_s2 + $0x108] sm:$0xff] }
 0x28a   : > { %v3353_v14 = vrot.slane %v2275_v40, %v7455_v16  ;;  %v3270_v52 = vrot.slane %v2223_v0, %v7455_v16  ;;  %v2187_v10 = vmul.f32 %v6505_v27, %v1690_v54  ;;  %v2162_v18 = vmul.f32 %v4751_v38, %v1692_v46  ;;  %v8860_v54 = vld [vmem:[#allocation38_spill] sm:$0xff]  ;;  %v8861_v0 = vld [vmem:[#allocation64_spill] sm:$0xff] }
 0x28b   : > { %v2188_v15 = vmul.f32 %v4752_v9, %v1692_v46  ;;  %v2163_v36 = vmul.f32 %v8725_v28, %v1694_v53  ;;  %v2189_v27 = vmul.f32 %v8726_v29, %v1694_v53  ;;  %v8862_v53 = vld [vmem:[#allocation66_spill] sm:$0xff] }
 0x28c   : > { %2406 = vadd.xlane.f32.xlu0 %v8858_v50  ;;  %v3354_v47 = vsel %vm3271_vm3, %v3353_v14, %v3349_v51  ;;  %v3272_v37 = vsel %vm3271_vm3, %v3270_v52, %v7446_v2  ;;  %v1696_v50 = vpop.f32.mrb[87].mxu1 }
 0x28d   : > { %2402 = vadd.xlane.f32.xlu1 %v8859_v33  ;;  %v2948_v33 = vsel %vm2207_vm10, %v2162_v18, 0.0  ;;  %v3000_v40 = vsel %vm2207_vm10, %v2188_v15, 0.0  ;;  %v2164_v46 = vmul.f32 %v8729_v55, %v1696_v50  ;;  %v2190_v51 = vmul.f32 %v8730_v34, %v1696_v50  ;;  %v2691_v14 = vpop.xlane.xlu1 %2690  ;;  %v2639_v38 = vpop.xlane.xlu0 %2638 }
 0x28e   : > { %v3865_v2 = vrot.slane %v2691_v14, %v7455_v16  ;;  %v3801_v28 = vrot.slane %v2639_v38, %v7455_v16  ;;  %v7525_v29 = vadd.f32 %v3000_v40, %v2187_v10  ;;  %v7527_v52 = vadd.f32 %v2948_v33, %v2161_v30  ;;  %v1700_v34 = vpop.f32.mrb[88].mxu1 }
 0x28f   : > { %v2952_v18 = vsel %vm2207_vm10, %v2164_v46, 0.0  ;;  %v3004_v9 = vsel %vm2207_vm10, %v2190_v51, 0.0  ;;  %v1702_v46 = vpop.f32.mrb[89].mxu1 }
 0x290   : > { %2358 = vadd.xlane.f32.xlu0 %v8860_v54  ;;  %v3866_v15 = vsel %vm3271_vm3, %v3865_v2, %v3861_v13  ;;  %v3802_v55 = vsel %vm3271_vm3, %v3801_v28, %v3797_v4  ;;  %v7534_v50 = vadd.f32 %v2952_v18, %v2163_v36  ;;  %v7536_v54 = vadd.f32 %v3004_v9, %v2189_v27  ;;  %v1704_v38 = vpop.f32.mrb[90].mxu1 }
 0x291   : > { %2354 = vadd.xlane.f32.xlu1 %v8861_v0  ;;  %v8863_v0 = vld [vmem:[#allocation65_spill] sm:$0xff]  ;;  %v2227_v30 = vpop.xlane.xlu1 %2226  ;;  %v2279_v10 = vpop.xlane.xlu0 %2278  ;;  %v7542_v13 = vsub.s32 %v3280_v25, %v7369_v3  ;;  %v3287_v4 = vadd.s32 4294967248, %v8829_v59  ;;  %v2165_v36 = vmul.f32 %v8733_v19, %v1700_v34  ;;  %v2191_v27 = vmul.f32 %v8734_v6, %v1700_v34  ;;  %v8865_v34 = vld [vmem:[#allocation67_spill] sm:$0xff] }
 0x292   : > { %v3277_v33 = vrot.slane %v2227_v30, %v7501_v39  ;;  %v3358_v40 = vrot.slane %v2279_v10, %v7501_v39  ;;  %v2166_v51 = vmul.f32 %v8738_v60, %v1702_v46  ;;  %v2192_v14 = vmul.f32 %v8739_v12, %v1702_v46  ;;  %v1706_v9 = vpop.f32.mrb[91].mxu1  ;;  %v8866_v46 = vld [vmem:[#allocation4_spill] sm:$0xff] }
 0x293   : > { %v2167_v18 = vmul.f32 %v8774_v45, %v1704_v38  ;;  %v2193_v25 = vmul.f32 %v8789_v17, %v1704_v38  ;;  %v2168_v60 = vmul.f32 %v8781_v49, %v1706_v9  ;;  %v2194_v12 = vmul.f32 %v8782_v26, %v1706_v9  ;;  %v1710_v26 = vpop.f32.mrb[92].mxu1  ;;  %v8867_v38 = vld [vmem:[#allocation68_spill] sm:$0xff] }
 0x294   : > { %2414 = vadd.xlane.f32.xlu0 %v8862_v53  ;;  %v3279_v2 = vsel %vm3278_vm4, %v3277_v33, %v3272_v37  ;;  %v3359_v28 = vsel %vm3278_vm4, %v3358_v40, %v3354_v47  ;;  %v8864_v53 = vld [vmem:[#allocation3_spill] sm:$0xff]  ;;  %v2956_v19 = vsel %vm2207_vm10, %v2166_v51, 0.0  ;;  %v3008_v6 = vsel %vm2207_vm10, %v2192_v14, 0.0 }
 0x295   : > { %2410 = vadd.xlane.f32.xlu1 %v8863_v0  ;;  %v2643_v37 = vpop.xlane.xlu1 %2642  ;;  %v2695_v0 = vpop.xlane.xlu0 %2694  ;;  %v7561_v17 = vadd.f32 %v2956_v19, %v2165_v36  ;;  %v7563_v30 = vadd.f32 %v3008_v6, %v2191_v27  ;;  %v2960_v10 = vsel %vm2207_vm10, %v2168_v60, 0.0  ;;  %v3012_v33 = vsel %vm2207_vm10, %v2194_v12, 0.0 }
 0x296   : > { %v3806_v47 = vrot.slane %v2643_v37, %v7501_v39  ;;  %v3870_v45 = vrot.slane %v2695_v0, %v7501_v39  ;;  %v7570_v51 = vadd.f32 %v2960_v10, %v2167_v18  ;;  %v7572_v14 = vadd.f32 %v3012_v33, %v2193_v25  ;;  %v1712_v19 = vpop.f32.mrb[93].mxu1 }
 0x297   : > { %v2169_v18 = vmul.f32 %v8790_v63, %v1710_v26  ;;  %v2195_v25 = vmul.f32 %v8800_v11, %v1710_v26  ;;  %v2170_v6 = vmul.f32 %v8798_v35, %v1712_v19  ;;  %v1714_v60 = vpop.f32.mrb[94].mxu1 }
 0x298   : > { %2470 = vadd.xlane.f32.xlu0 %v8864_v53  ;;  %v3807_v40 = vsel %vm3278_vm4, %v3806_v47, %v3802_v55  ;;  %v3871_v49 = vsel %vm3278_vm4, %v3870_v45, %v3866_v15  ;;  %v7578_v55 = vsub.s32 %v3287_v4, %v7369_v3  ;;  %v3294_v15 = vadd.s32 4294967240, %v8829_v59  ;;  %v1716_v47 = vpop.f32.mrb[95].mxu1 }
 0x299   : > { %2362 = vadd.xlane.f32.xlu1 %v8865_v34  ;;  %v2283_v36 = vpop.xlane.xlu1 %2282  ;;  %v2231_v27 = vpop.xlane.xlu0 %2230  ;;  %v2196_v34 = vmul.f32 %v8799_v42, %v1712_v19  ;;  %v2171_v0 = vmul.f32 %v8812_v20, %v1714_v60  ;;  %v2197_v4 = vmul.f32 %v8813_v41, %v1714_v60  ;;  %v2964_v63 = vsel %vm2207_vm10, %v2170_v6, 0.0 }
 0x29a   : > { %v3363_v9 = vrot.slane %v2283_v36, %v7542_v13  ;;  %v3284_v53 = vrot.slane %v2231_v27, %v7542_v13  ;;  %v2172_v35 = vmul.f32 %v8810_v24, %v1716_v47  ;;  %v2198_v42 = vmul.f32 %v8811_v44, %v1716_v47  ;;  %v1720_v44 = vpop.f32.mrb[96].mxu1  ;;  %v8870_v47 = vld [vmem:[#allocation133_spill] sm:$0xff] }
 0x29b   : > { %v3016_v11 = vsel %vm2207_vm10, %v2196_v34, 0.0  ;;  %v7597_v41 = vadd.f32 %v2964_v63, %v2169_v18  ;;  %v1722_v19 = vpop.f32.mrb[97].mxu1 }
 0x29c   : > { %2422 = vadd.xlane.f32.xlu0 %v8866_v46  ;;  %v3364_v12 = vsel %vm3285_vm5, %v3363_v9, %v3359_v28  ;;  %v3286_v37 = vsel %vm3285_vm5, %v3284_v53, %v3279_v2  ;;  %v7599_v10 = vadd.f32 %v3016_v11, %v2195_v25  ;;  %v3020_v33 = vsel %vm2207_vm10, %v2198_v42, 0.0  ;;  %v1724_v6 = vpop.f32.mrb[98].mxu1  ;;  %v8874_v42 = vld [vmem:[#allocation137_spill] sm:$0xff] }
 0x29d   : > { %2418 = vadd.xlane.f32.xlu1 %v8867_v38  ;;  %v2699_v28 = vpop.xlane.xlu1 %2698  ;;  %v2647_v45 = vpop.xlane.xlu0 %2646  ;;  %v7608_v26 = vadd.f32 %v3020_v33, %v2197_v4  ;;  %v8868_v38 = vld [vmem:[#allocation12_spill] sm:$0xff]  ;;  %v2174_v18 = vmul.f32 %v8815_v57, %v1722_v19  ;;  %v2200_v25 = vmul.f32 %v8816_v21, %v1722_v19  ;;  %v2201_v63 = vmul.f32 %v8870_v47, %v1724_v6 }
 0x29e   : > { %v3875_v2 = vrot.slane %v2699_v28, %v7542_v13  ;;  %v3811_v20 = vrot.slane %v2647_v45, %v7542_v13  ;;  %v1726_v11 = vpop.f32.mrb[99].mxu1  ;;  %v8873_v57 = vld [vmem:[#allocation136_spill] sm:$0xff] }
 0x29f   : > { %v2176_v21 = vmul.f32 %v8873_v57, %v1726_v11  ;;  %v2202_v28 = vmul.f32 %v8874_v42, %v1726_v11  ;;  %v8881_v57 = vld [vmem:[#allocation46_spill] sm:$0xff] }
 0x2a0   : > { %2838 = vadd.xlane.f32.xlu0 %v7117_v1  ;;  %v2968_v1 = vsel %vm2207_vm10, %v2172_v35, 0.0  ;;  %v3812_v24 = vsel %vm3285_vm5, %v3811_v20, %v3807_v40  ;;  %v2199_v40 = vmul.f32 %v8818_v32, %v1720_v44  ;;  %v3024_v32 = vsel %vm2207_vm10, %v2200_v25, 0.0  ;;  %v8872_v35 = vld [vmem:[#allocation5_spill] sm:$0xff] }
 0x2a1   : > { %2834 = vadd.xlane.f32.xlu1 %v7094_v43  ;;  %v3876_v43 = vsel %vm3285_vm5, %v3875_v2, %v3871_v49  ;;  %v7606_v46 = vadd.f32 %v2968_v1, %v2171_v0  ;;  %v2235_v36 = vpop.xlane.xlu1 %2234  ;;  %v2287_v27 = vpop.xlane.xlu0 %2286  ;;  %v7614_v49 = vsub.s32 %v3294_v15, %v7369_v3  ;;  %v8869_v0 = vld [vmem:[#allocation44_spill] sm:$0xff]  ;;  %v8871_v15 = vld [vmem:[#allocation6_spill] sm:$0xff]  ;;  %v2976_v33 = vsel %vm2207_vm10, %v2176_v21, 0.0 }
 0x2a2   : > { %v3291_v9 = vrot.slane %v2235_v36, %v7578_v55  ;;  %v3368_v53 = vrot.slane %v2287_v27, %v7578_v55  ;;  %v2175_v4 = vmul.f32 %v8869_v0, %v1724_v6  ;;  %v7634_v1 = vadd.f32 %v3024_v32, %v2199_v40  ;;  %v8875_v27 = vld [vmem:[#allocation49_spill] sm:$0xff]  ;;  %v8877_v0 = vld [vmem:[#allocation139_spill] sm:$0xff] }
 0x2a3   : > { %v8880_v32 = vld [vmem:[#allocation145_spill] sm:$0xff] }
 0x2a4   : > { %2890 = vadd.xlane.f32.xlu0 %v7119_v7  ;;  %v2173_v7 = vmul.f32 %v8817_v56, %v1720_v44  ;;  %v3293_v34 = vsel %vm3292_vm6, %v3291_v9, %v3286_v37  ;;  %v3369_v60 = vsel %vm3292_vm6, %v3368_v53, %v3364_v12  ;;  %v2972_v56 = vsel %vm2207_vm10, %v2174_v18, 0.0  ;;  %v1730_v9 = vpop.f32.mrb[100].mxu1  ;;  %v8876_v18 = vld [vmem:[#allocation69_spill] sm:$0xff] }
 0x2a5   : > { %2886 = vadd.xlane.f32.xlu1 %v8868_v38  ;;  %v2651_v37 = vpop.xlane.xlu1 %2650  ;;  %v2703_v45 = vpop.xlane.xlu0 %2702  ;;  %v3028_v44 = vsel %vm2207_vm10, %v2202_v28, 0.0  ;;  %v7641_v53 = vadd.f32 %v2976_v33, %v2175_v4  ;;  %v8883_v33 = vld [vmem:[#allocation70_spill] sm:$0xff] }
 0x2a6   : > { %v3816_v12 = vrot.slane %v2651_v37, %v7578_v55  ;;  %v3880_v2 = vrot.slane %v2703_v45, %v7578_v55  ;;  %v7632_v20 = vadd.f32 %v2972_v56, %v2173_v7  ;;  %v7643_v19 = vadd.f32 %v3028_v44, %v2201_v63  ;;  %v1732_v40 = vpop.f32.mrb[101].mxu1  ;;  %v8879_v56 = vld [vmem:[#allocation143_spill] sm:$0xff] }
 0x2a7   : > { %v2178_v47 = vmul.f32 %v8877_v0, %v1732_v40  ;;  %v2177_v63 = vmul.f32 %v8879_v56, %v1730_v9 }
 0x2a8   : > { %2478 = vadd.xlane.f32.xlu0 %v8871_v15  ;;  %v3817_v38 = vsel %vm3292_vm6, %v3816_v12, %v3812_v24  ;;  %v3881_v36 = vsel %vm3292_vm6, %v3880_v2, %v3876_v43  ;;  %v8878_v24 = vld [vmem:[#allocation140_spill] sm:$0xff]  ;;  %v1734_v43 = vpop.f32.mrb[102].mxu1  ;;  %v3301_v15 = vadd.s32 4294967232, %v8829_v59  ;;  %v8882_v12 = vld [vmem:[#allocation151_spill] sm:$0xff] }
 0x2a9   : > { %2474 = vadd.xlane.f32.xlu1 %v8872_v35  ;;  %v2239_v7 = vpop.xlane.xlu0 %2238  ;;  %v2291_v25 = vpop.xlane.xlu1 %2290  ;;  %v2204_v11 = vmul.f32 %v8878_v24, %v1732_v40  ;;  %v2203_v35 = vmul.f32 %v8880_v32, %v1730_v9  ;;  %v2179_v21 = vmul.f32 %v8881_v57, %v1734_v43  ;;  %v2980_v37 = vsel %vm2207_vm10, %v2178_v47, 0.0  ;;  %v8888_v57 = vld [vmem:[#allocation7_spill] sm:$0xff] }
 0x2aa   : > { %v3298_v6 = vrot.slane %v2239_v7, %v7614_v49  ;;  %v3373_v4 = vrot.slane %v2291_v25, %v7614_v49  ;;  %v1736_v42 = vpop.f32.mrb[103].mxu1  ;;  %v7662_v40 = vadd.f32 %v2980_v37, %v2177_v63  ;;  %v3308_v37 = vadd.s32 4294967224, %v8829_v59 }
 0x2ab   : > { %v3032_v45 = vsel %vm2207_vm10, %v2204_v11, 0.0  ;;  %v2180_v2 = vmul.f32 %v8882_v12, %v1736_v42  ;;  %v7670_v11 = vsub.s32 %v3301_v15, %v7369_v3 }
 0x2ac   : > { %2894 = vadd.xlane.f32.xlu0 %v8875_v27  ;;  %v3300_v28 = vsel %vm3299_vm7, %v3298_v6, %v3293_v34  ;;  %v3374_v44 = vsel %vm3299_vm7, %v3373_v4, %v3369_v60  ;;  %v8884_v27 = vld [vmem:[#allocation75_spill] sm:$0xff]  ;;  %v7664_v25 = vadd.f32 %v3032_v45, %v2203_v35  ;;  %v8886_v34 = vld [vmem:[#allocation148_spill] sm:$0xff] }
 0x2ad   : > { %2426 = vadd.xlane.f32.xlu1 %v8876_v18  ;;  %v8885_v18 = vld [vmem:[#allocation154_spill] sm:$0xff]  ;;  %v2655_v9 = vpop.xlane.xlu0 %2654  ;;  %v2205_v6 = vmul.f32 %v8886_v34, %v1734_v43  ;;  %v2984_v0 = vsel %vm2207_vm10, %v2180_v2, 0.0  ;;  %v2707_v47 = vpop.xlane.xlu1 %2706  ;;  %v8887_v35 = vld [vmem:[#allocation96_spill] sm:$0xff]  ;;  %v3315_v34 = vadd.s32 4294967216, %v8829_v59 }
 0x2ae   : > { %v2206_v7 = vmul.f32 %v8885_v18, %v1736_v42  ;;  %v3821_v24 = vrot.slane %v2655_v9, %v7614_v49  ;;  %v7672_v60 = vadd.f32 %v2984_v0, %v2179_v21  ;;  %v3885_v56 = vrot.slane %v2707_v47, %v7614_v49  ;;  %v8889_v2 = vld [vmem:[#allocation8_spill] sm:$0xff] }
 0x2af   : > { %v8892_v0 = vld [vmem:[#allocation20_spill] sm:$0xff] }
 0x2b0   : > { %2430 = vadd.xlane.f32.xlu0 %v8883_v33  ;;  %v3036_v4 = vsel %vm2207_vm10, %v2206_v7, 0.0  ;;  %v3822_v32 = vsel %vm3299_vm7, %v3821_v24, %v3817_v38  ;;  %v3886_v43 = vsel %vm3299_vm7, %v3885_v56, %v3881_v36  ;;  %v8890_v33 = vld [vmem:[#allocation99_spill] sm:$0xff]  ;;  %v7691_v7 = vsub.s32 %v3308_v37, %v7369_v3 }
 0x2b1   : > { %2842 = vadd.xlane.f32.xlu1 %v8884_v27  ;;  %v7676_v63 = vadd.f32 %v3036_v4, %v2205_v6  ;;  %v2295_v42 = vpop.xlane.xlu0 %2294  ;;  %v2243_v15 = vpop.xlane.xlu1 %2242  ;;  %vm3313_vm10 = vcmask 654912  }
 0x2b2   : > { %v3378_v21 = vrot.slane %v2295_v42, %v7670_v11  ;;  %v3305_v45 = vrot.slane %v2243_v15, %v7670_v11  ;;  %v8894_v15 = vld [vmem:[#allocation24_spill] sm:$0xff] }
 0x2b4   : > { %2846 = vadd.xlane.f32.xlu0 %v8887_v35  ;;  %v3379_v12 = vsel %vm3306_vm8, %v3378_v21, %v3374_v44  ;;  %v3307_v38 = vsel %vm3306_vm8, %v3305_v45, %v3300_v28  ;;  %v8891_v44 = vld [vmem:[#allocation87_spill] sm:$0xff]  ;;  %v7704_v35 = vsub.s32 %v3315_v34, %v7369_v3  ;;  %v3322_v45 = vadd.s32 4294967208, %v8829_v59 }
 0x2b5   : > { %2482 = vadd.xlane.f32.xlu1 %v8888_v57  ;;  %v2711_v36 = vpop.xlane.xlu0 %2710  ;;  %v2659_v27 = vpop.xlane.xlu1 %2658 }
 0x2b6   : > { %v3890_v18 = vrot.slane %v2711_v36, %v7670_v11  ;;  %v3826_v9 = vrot.slane %v2659_v27, %v7670_v11  ;;  %v8895_v36 = vld [vmem:[#allocation93_spill] sm:$0xff]  ;;  %v8896_v27 = vld [vmem:[#allocation10_spill] sm:$0xff]  ;;  %v7719_v34 = vsub.s32 %v3322_v45, %v7369_v3 }
 0x2b8   : > { %2486 = vadd.xlane.f32.xlu0 %v8889_v2  ;;  %v7696_v6 = vsel %vm3306_vm8, %v3890_v18, %v3886_v43  ;;  %v3827_v28 = vsel %vm3306_vm8, %v3826_v9, %v3822_v32  ;;  %v8893_v43 = vld [vmem:[#allocation9_spill] sm:$0xff] }
 0x2b9   : > { %2898 = vadd.xlane.f32.xlu1 %v8890_v33  ;;  %v2247_v47 = vpop.xlane.xlu0 %2246  ;;  %v2299_v24 = vpop.xlane.xlu1 %2298 }
 0x2ba   : > { %v3312_v4 = vrot.slane %v2247_v47, %v7691_v7  ;;  %v3383_v56 = vrot.slane %v2299_v24, %v7691_v7 }
 0x2bc   : > { %2902 = vadd.xlane.f32.xlu0 %v8891_v44  ;;  %v3314_v57 = vsel %vm3313_vm10, %v3312_v4, %v3307_v38  ;;  %v3384_v42 = vsel %vm3313_vm10, %v3383_v56, %v3379_v12  ;;  %v8898_v4 = vld [vmem:[#allocation94_spill] sm:$0xff] }
 0x2bd   : > { %2434 = vadd.xlane.f32.xlu1 %v8892_v0  ;;  %v2663_v32 = vpop.xlane.xlu0 %2662  ;;  %v2251_v21 = vpop.xlane.xlu1 %2250  ;;  %v3329_v0 = vadd.s32 4294967200, %v8829_v59 }
 0x2be   : > { %v3831_v37 = vrot.slane %v2663_v32, %v7691_v7  ;;  %v3319_v2 = vrot.slane %v2251_v21, %v7704_v35  ;;  %v8899_v21 = vld [vmem:[#allocation89_spill] sm:$0xff] }
 0x2bf   : > { %v7730_v32 = vsub.s32 %v3329_v0, %v7369_v3  ;;  %v8902_v3 = vld [vmem:[#allocation105_spill] sm:$0xff] }
 0x2c0   : > { %2438 = vadd.xlane.f32.xlu0 %v8893_v43  ;;  %v3832_v33 = vsel %vm3313_vm10, %v3831_v37, %v3827_v28  ;;  %v3321_v38 = vsel %vm3320_vm9, %v3319_v2, %v3314_v57  ;;  %v8897_v28 = vld [vmem:[#allocation23_spill] sm:$0xff] }
 0x2c1   : > { %2850 = vadd.xlane.f32.xlu1 %v8894_v15  ;;  %v2303_v12 = vpop.xlane.xlu0 %2302  ;;  %v2667_v18 = vpop.xlane.xlu1 %2666  ;;  %v8900_v37 = vld [vmem:[#allocation31_spill] sm:$0xff] }
 0x2c2   : > { %v3388_v9 = vrot.slane %v2303_v12, %v7704_v35  ;;  %v3836_v44 = vrot.slane %v2667_v18, %v7704_v35  ;;  %v8901_v12 = vld [vmem:[#allocation106_spill] sm:$0xff] }
 0x2c4   : > { %2854 = vadd.xlane.f32.xlu0 %v8895_v36  ;;  %v3389_v47 = vsel %vm3320_vm9, %v3388_v9, %v3384_v42  ;;  %v3837_v24 = vsel %vm3320_vm9, %v3836_v44, %v3832_v33 }
 0x2c5   : > { %2490 = vadd.xlane.f32.xlu1 %v8896_v27  ;;  %v2255_v56 = vpop.xlane.xlu0 %2254  ;;  %v2307_v57 = vpop.xlane.xlu1 %2306 }
 0x2c6   : > { %v3326_v43 = vrot.slane %v2255_v56, %v7719_v34  ;;  %v3393_v15 = vrot.slane %v2307_v57, %v7719_v34 }
 0x2c8   : > { %2494 = vadd.xlane.f32.xlu0 %v8897_v28  ;;  %v3328_v59 = vsel %vm3327_vm11, %v3326_v43, %v3321_v38  ;;  %v3394_v42 = vsel %vm3327_vm11, %v3393_v15, %v3389_v47  ;;  %v8903_v47 = vld [vmem:[#allocation40_spill] sm:$0xff]  ;;  %v8905_v15 = vld [vmem:[#allocation45_spill] sm:$0xff] }
 0x2c9   : > { %2906 = vadd.xlane.f32.xlu1 %v8898_v4  ;;  %v2671_v45 = vpop.xlane.xlu0 %2670  ;;  %v2259_v2 = vpop.xlane.xlu1 %2258  ;;  %v8904_v4 = vld [vmem:[#allocation113_spill] sm:$0xff] }
 0x2ca   : > { %v3841_v33 = vrot.slane %v2671_v45, %v7719_v34  ;;  %v3333_v36 = vrot.slane %v2259_v2, %v7730_v32 }
 0x2cc   : > { %2446 = vadd.xlane.f32.xlu0 %v8899_v21  ;;  %v3842_v27 = vsel %vm3327_vm11, %v3841_v33, %v3837_v24  ;;  %v3335_v18 = vsel %vm3334_vm12, %v3333_v36, %v3328_v59  ;;  %v8906_v59 = vld [vmem:[#allocation33_spill] sm:$0xff]  ;;  %v8907_v33 = vld [vmem:[#allocation138_spill] sm:$0xff]  ;;  %v8908_v36 = vld [vmem:[#allocation32_spill] sm:$0xff] }
 0x2cd   : > { %2442 = vadd.xlane.f32.xlu1 %v8900_v37  ;;  %v2311_v38 = vpop.xlane.xlu0 %2310  ;;  %v2675_v9 = vpop.xlane.xlu1 %2674 }
 0x2ce   : > { %v3398_v44 = vrot.slane %v2311_v38, %v7730_v32  ;;  %v3846_v0 = vrot.slane %v2675_v9, %v7730_v32  ;;  %v8909_v9 = vld [vmem:[#allocation153_spill] sm:$0xff] }
 0x2d0   : > { %2502 = vadd.xlane.f32.xlu0 %v8901_v12  ;;  %v3399_v28 = vsel %vm3334_vm12, %v3398_v44, %v3394_v42  ;;  %v7751_v57 = vsel %vm3334_vm12, %v3846_v0, %v3842_v27  ;;  %v8910_v44 = vld [vmem:[#allocation152_spill] sm:$0xff] }
 0x2d1   : > { %2498 = vadd.xlane.f32.xlu1 %v8902_v3  ;;  %v2367_v24 = vpop.xlane.xlu0 %2366  ;;  %v7748_v56 = vsel %vm4296_vm13, %v3399_v28, %v3335_v18  ;;  %v2315_v43 = vpop.xlane.xlu1 %2314 }
 0x2d2   : > { %v3403_v37 = vrot.slane %v2315_v43, %v7393_v23  ;;  %v3467_v43 = vrot.slane %v2367_v24, %v7393_v23 }
 0x2d4   : > { %2454 = vadd.xlane.f32.xlu0 %v8903_v47 }
 0x2d5   : > { %2450 = vadd.xlane.f32.xlu1 %v8904_v4  ;;  %v2319_v21 = vpop.xlane.xlu0 %2318  ;;  %v2731_v45 = vpop.xlane.xlu1 %2730 }
 0x2d6   : > { %v3407_v42 = vrot.slane %v2319_v21, %v7398_v5  ;;  %v3915_v27 = vrot.slane %v2731_v45, %v7393_v23  ;;  %v8911_v21 = vld [vmem:[#allocation15_spill] sm:$0xff]  ;;  %v8912_v45 = vld [vmem:[#allocation48_spill] sm:$0xff] }
 0x2d8   : > { %2510 = vadd.xlane.f32.xlu0 %v8905_v15  ;;  %v3408_v2 = vsel %vm3257_vm2, %v3407_v42, %v3403_v37 }
 0x2d9   : > { %2506 = vadd.xlane.f32.xlu1 %v8906_v59  ;;  %v2735_v12 = vpop.xlane.xlu0 %2734  ;;  %v2783_v3 = vpop.xlane.xlu1 %2782 }
 0x2da   : > { %v3919_v38 = vrot.slane %v2735_v12, %v7398_v5  ;;  %v3979_v47 = vrot.slane %v2783_v3, %v7393_v23  ;;  %v8913_v3 = vld [vmem:[#allocation72_spill] sm:$0xff] }
 0x2dc   : > { %2462 = vadd.xlane.f32.xlu0 %v8907_v33  ;;  %v3920_v18 = vsel %vm3257_vm2, %v3919_v38, %v3915_v27  ;;  %v8914_v38 = vld [vmem:[#allocation77_spill] sm:$0xff] }
 0x2dd   : > { %2458 = vadd.xlane.f32.xlu1 %v8908_v36  ;;  %v2787_v0 = vpop.xlane.xlu0 %2786  ;;  %v2371_v28 = vpop.xlane.xlu1 %2370 }
 0x2de   : > { %v3983_v4 = vrot.slane %v2787_v0, %v7398_v5  ;;  %v3471_v15 = vrot.slane %v2371_v28, %v7398_v5 }
 0x2e0   : > { %2518 = vadd.xlane.f32.xlu0 %v8909_v9  ;;  %v3984_v59 = vsel %vm3257_vm2, %v3983_v4, %v3979_v47  ;;  %v3472_v37 = vsel %vm3257_vm2, %v3471_v15, %v3467_v43 }
 0x2e1   : > { %2514 = vadd.xlane.f32.xlu1 %v8910_v44  ;;  %v2375_v42 = vpop.xlane.xlu0 %2374  ;;  %v2323_v33 = vpop.xlane.xlu1 %2322 }
 0x2e2   : > { %v3476_v36 = vrot.slane %v2375_v42, %v7407_v58  ;;  %v3412_v12 = vrot.slane %v2323_v33, %v7407_v58  ;;  %v8915_v33 = vld [vmem:[#allocation92_spill] sm:$0xff] }
 0x2e4   : > { %2574 = vadd.xlane.f32.xlu0 %v8911_v21  ;;  %v3477_v27 = vsel %vm3264_vm1, %v3476_v36, %v3472_v37  ;;  %v3413_v24 = vsel %vm3264_vm1, %v3412_v12, %v3408_v2  ;;  %v8916_v12 = vld [vmem:[#allocation88_spill] sm:$0xff] }
 0x2e5   : > { %2466 = vadd.xlane.f32.xlu1 %v8912_v45  ;;  %v2791_v9 = vpop.xlane.xlu0 %2790  ;;  %v2739_v44 = vpop.xlane.xlu1 %2738 }
 0x2e6   : > { %v3988_v0 = vrot.slane %v2791_v9, %v7407_v58  ;;  %v3924_v47 = vrot.slane %v2739_v44, %v7407_v58  ;;  %v8917_v9 = vld [vmem:[#allocation78_spill] sm:$0xff] }
 0x2e8   : > { %2526 = vadd.xlane.f32.xlu0 %v8913_v3  ;;  %v3989_v28 = vsel %vm3264_vm1, %v3988_v0, %v3984_v59  ;;  %v3925_v4 = vsel %vm3264_vm1, %v3924_v47, %v3920_v18 }
 0x2e9   : > { %2522 = vadd.xlane.f32.xlu1 %v8914_v38  ;;  %v2327_v43 = vpop.xlane.xlu0 %2326  ;;  %v2379_v15 = vpop.xlane.xlu1 %2378 }
 0x2ea   : > { %v3417_v2 = vrot.slane %v2327_v43, %v7455_v16  ;;  %v3481_v21 = vrot.slane %v2379_v15, %v7455_v16  ;;  %v8918_v43 = vld [vmem:[#allocation76_spill] sm:$0xff] }
 0x2ec   : > { %2942 = vadd.xlane.f32.xlu0 %v7483_v22  ;;  %v3418_v37 = vsel %vm3271_vm3, %v3417_v2, %v3413_v24  ;;  %v3482_v45 = vsel %vm3271_vm3, %v3481_v21, %v3477_v27 }
 0x2ed   : > { %2938 = vadd.xlane.f32.xlu1 %v7449_v48  ;;  %v2795_v59 = vpop.xlane.xlu0 %2794 }
 0x2ee   : > { %v2743_v22 = vpop.xlane.xlu1 %2742  ;;  %v3993_v18 = vrot.slane %v2795_v59, %v7455_v16 }
 0x2ef   : > { %v3929_v48 = vrot.slane %v2743_v22, %v7455_v16  ;;  %v8919_v22 = vld [vmem:[#allocation19_spill] sm:$0xff] }
 0x2f0   : > { %2994 = vadd.xlane.f32.xlu0 %v7485_v62  ;;  %v3994_v42 = vsel %vm3271_vm3, %v3993_v18, %v3989_v28 }
 0x2f1   : > { %2990 = vadd.xlane.f32.xlu1 %v7451_v61  ;;  %v3930_v36 = vsel %vm3271_vm3, %v3929_v48, %v3925_v4 }
 0x2f4   : > { %2582 = vadd.xlane.f32.xlu0 %v8915_v33 }
 0x2f5   : > { %2578 = vadd.xlane.f32.xlu1 %v8916_v12  ;;  %v2383_v3 = vpop.xlane.xlu0 %2382 }
 0x2f6   : > { %v2331_v62 = vpop.xlane.xlu1 %2330  ;;  %v3486_v27 = vrot.slane %v2383_v3, %v7501_v39 }
 0x2f7   : > { %v3422_v61 = vrot.slane %v2331_v62, %v7501_v39 }
 0x2f8   : > { %v3487_v24 = vsel %vm3278_vm4, %v3486_v27, %v3482_v45  ;;  %2946 = vadd.xlane.f32.xlu0 %v7493_v31 }
 0x2f9   : > { %v3423_v38 = vsel %vm3278_vm4, %v3422_v61, %v3418_v37  ;;  %2530 = vadd.xlane.f32.xlu1 %v8917_v9  ;;  %v2747_v44 = vpop.xlane.xlu0 %2746 }
 0x2fa   : > { %v2799_v0 = vpop.xlane.xlu1 %2798  ;;  %v3934_v47 = vrot.slane %v2747_v44, %v7501_v39 }
 0x2fb   : > { %v3998_v28 = vrot.slane %v2799_v0, %v7501_v39 }
 0x2fc   : > { %v3935_v4 = vsel %vm3278_vm4, %v3934_v47, %v3930_v36  ;;  %2534 = vadd.xlane.f32.xlu0 %v8918_v43  ;;  %v8920_v36 = vld [vmem:[#allocation74_spill] sm:$0xff] }
 0x2fd   : > { %v3999_v15 = vsel %vm3278_vm4, %v3998_v28, %v3994_v42  ;;  %2998 = vadd.xlane.f32.xlu1 %v7495_v8  ;;  %v2335_v2 = vpop.xlane.xlu0 %2334  ;;  %v8922_v28 = vld [vmem:[#allocation28_spill] sm:$0xff] }
 0x2fe   : > { %v2387_v31 = vpop.xlane.xlu1 %2386  ;;  %v3427_v21 = vrot.slane %v2335_v2, %v7542_v13 }
 0x2ff   : > { %v3491_v37 = vrot.slane %v2387_v31, %v7542_v13 }
 0x300   : > { %v3428_v45 = vsel %vm3285_vm5, %v3427_v21, %v3423_v38  ;;  %3002 = vadd.xlane.f32.xlu0 %v7525_v29  ;;  %v8921_v38 = vld [vmem:[#allocation95_spill] sm:$0xff]  ;;  %v8923_v21 = vld [vmem:[#allocation82_spill] sm:$0xff] }
 0x301   : > { %v3492_v59 = vsel %vm3285_vm5, %v3491_v37, %v3487_v24  ;;  %2586 = vadd.xlane.f32.xlu1 %v8919_v22  ;;  %v2803_v18 = vpop.xlane.xlu0 %2802 }
 0x302   : > { %v2751_v48 = vpop.xlane.xlu1 %2750  ;;  %v4003_v42 = vrot.slane %v2803_v18, %v7542_v13 }
 0x303   : > { %v3939_v8 = vrot.slane %v2751_v48, %v7542_v13 }
 0x304   : > { %v4004_v33 = vsel %vm3285_vm5, %v4003_v42, %v3999_v15  ;;  %2590 = vadd.xlane.f32.xlu0 %v8920_v36  ;;  %v8925_v42 = vld [vmem:[#allocation37_spill] sm:$0xff] }
 0x305   : > { %v3940_v12 = vsel %vm3285_vm5, %v3939_v8, %v3935_v4  ;;  %2950 = vadd.xlane.f32.xlu1 %v7527_v52  ;;  %v2391_v3 = vpop.xlane.xlu0 %2390 }
 0x306   : > { %v2339_v29 = vpop.xlane.xlu1 %2338  ;;  %v3496_v62 = vrot.slane %v2391_v3, %v7578_v55 }
 0x307   : > { %v3432_v27 = vrot.slane %v2339_v29, %v7578_v55 }
 0x308   : > { %v3497_v61 = vsel %vm3292_vm6, %v3496_v62, %v3492_v59  ;;  %2954 = vadd.xlane.f32.xlu0 %v7534_v50  ;;  %v8927_v62 = vld [vmem:[#allocation41_spill] sm:$0xff] }
 0x309   : > { %v3433_v24 = vsel %vm3292_vm6, %v3432_v27, %v3428_v45  ;;  %2538 = vadd.xlane.f32.xlu1 %v8921_v38  ;;  %v2755_v9 = vpop.xlane.xlu0 %2754  ;;  %v8924_v45 = vld [vmem:[#allocation51_spill] sm:$0xff] }
 0x30a   : > { %v2807_v44 = vpop.xlane.xlu1 %2806  ;;  %v3944_v0 = vrot.slane %v2755_v9, %v7578_v55 }
 0x30b   : > { %v4008_v52 = vrot.slane %v2807_v44, %v7578_v55 }
 0x30c   : > { %v3945_v47 = vsel %vm3292_vm6, %v3944_v0, %v3940_v12  ;;  %2542 = vadd.xlane.f32.xlu0 %v8922_v28  ;;  %v8930_v28 = vld [vmem:[#allocation122_spill] sm:$0xff] }
 0x30d   : > { %v7832_v4 = vsel %vm3292_vm6, %v4008_v52, %v4004_v33  ;;  %3006 = vadd.xlane.f32.xlu1 %v7536_v54  ;;  %v2343_v50 = vpop.xlane.xlu0 %2342  ;;  %v8926_v33 = vld [vmem:[#allocation50_spill] sm:$0xff] }
 0x30e   : > { %v2395_v43 = vpop.xlane.xlu1 %2394  ;;  %v3437_v15 = vrot.slane %v2343_v50, %v7614_v49  ;;  %v8929_v52 = vld [vmem:[#allocation26_spill] sm:$0xff] }
 0x30f   : > { %v3501_v2 = vrot.slane %v2395_v43, %v7614_v49 }
 0x310   : > { %v3438_v31 = vsel %vm3299_vm7, %v3437_v15, %v3433_v24  ;;  %2598 = vadd.xlane.f32.xlu0 %v8923_v21  ;;  %v8931_v21 = vld [vmem:[#allocation80_spill] sm:$0xff] }
 0x311   : > { %v3502_v37 = vsel %vm3299_vm7, %v3501_v2, %v3497_v61  ;;  %2594 = vadd.xlane.f32.xlu1 %v8924_v45  ;;  %v2399_v59 = vpop.xlane.xlu0 %2398  ;;  %v8928_v61 = vld [vmem:[#allocation81_spill] sm:$0xff]  ;;  %v8932_v45 = vld [vmem:[#allocation131_spill] sm:$0xff] }
 0x312   : > { %v2759_v22 = vpop.xlane.xlu1 %2758  ;;  %v3506_v18 = vrot.slane %v2399_v59, %v7670_v11 }
 0x313   : > { %v3949_v54 = vrot.slane %v2759_v22, %v7614_v49 }
 0x314   : > { %v3507_v48 = vsel %vm3306_vm8, %v3506_v18, %v3502_v37  ;;  %2550 = vadd.xlane.f32.xlu0 %v8925_v42  ;;  %v8933_v42 = vld [vmem:[#allocation83_spill] sm:$0xff] }
 0x315   : > { %v7846_v8 = vsel %vm3299_vm7, %v3949_v54, %v3945_v47  ;;  %2546 = vadd.xlane.f32.xlu1 %v8926_v33  ;;  %v2351_v36 = vpop.xlane.xlu0 %2350 }
 0x316   : > { %v2347_v12 = vpop.xlane.xlu1 %2346  ;;  %v3447_v3 = vrot.slane %v2351_v36, %v7691_v7  ;;  %v8934_v36 = vld [vmem:[#allocation86_spill] sm:$0xff] }
 0x317   : > { %v3442_v29 = vrot.slane %v2347_v12, %v7670_v11 }
 0x318   : > { %2606 = vadd.xlane.f32.xlu0 %v8927_v62 }
 0x319   : > { %v3443_v27 = vsel %vm3306_vm8, %v3442_v29, %v3438_v31  ;;  %2602 = vadd.xlane.f32.xlu1 %v8928_v61  ;;  %v2407_v24 = vpop.xlane.xlu0 %2406  ;;  %v8936_v61 = vld [vmem:[#allocation97_spill] sm:$0xff] }
 0x31a   : > { %v3448_v38 = vsel %vm3313_vm10, %v3447_v3, %v3443_v27  ;;  %v2403_v9 = vpop.xlane.xlu1 %2402  ;;  %v3516_v44 = vrot.slane %v2407_v24, %v7704_v35  ;;  %v8935_v27 = vld [vmem:[#allocation71_spill] sm:$0xff] }
 0x31b   : > { %v3511_v0 = vrot.slane %v2403_v9, %v7691_v7 }
 0x31c   : > { %2558 = vadd.xlane.f32.xlu0 %v8929_v52 }
 0x31d   : > { %v3512_v47 = vsel %vm3313_vm10, %v3511_v0, %v3507_v48  ;;  %2554 = vadd.xlane.f32.xlu1 %v8930_v28  ;;  %v2359_v50 = vpop.xlane.xlu0 %2358 }
 0x31e   : > { %v3517_v43 = vsel %vm3320_vm9, %v3516_v44, %v3512_v47  ;;  %v2355_v15 = vpop.xlane.xlu1 %2354  ;;  %v3457_v2 = vrot.slane %v2359_v50, %v7719_v34  ;;  %v8937_v47 = vld [vmem:[#allocation98_spill] sm:$0xff]  ;;  %v8938_v50 = vld [vmem:[#allocation27_spill] sm:$0xff] }
 0x31f   : > { %v3452_v31 = vrot.slane %v2355_v15, %v7704_v35 }
 0x320   : > { %2614 = vadd.xlane.f32.xlu0 %v8931_v21  ;;  %v8939_v21 = vld [vmem:[#allocation135_spill] sm:$0xff] }
 0x321   : > { %v3453_v37 = vsel %vm3320_vm9, %v3452_v31, %v3448_v38  ;;  %2610 = vadd.xlane.f32.xlu1 %v8932_v45  ;;  %v2415_v59 = vpop.xlane.xlu0 %2414  ;;  %v8940_v45 = vld [vmem:[#allocation127_spill] sm:$0xff] }
 0x322   : > { %v3458_v22 = vsel %vm3327_vm11, %v3457_v2, %v3453_v37  ;;  %v2411_v18 = vpop.xlane.xlu1 %2410  ;;  %v3526_v54 = vrot.slane %v2415_v59, %v7730_v32 }
 0x323   : > { %v3521_v48 = vrot.slane %v2411_v18, %v7719_v34 }
 0x324   : > { %2566 = vadd.xlane.f32.xlu0 %v8933_v42 }
 0x325   : > { %v3522_v33 = vsel %vm3327_vm11, %v3521_v48, %v3517_v43  ;;  %2562 = vadd.xlane.f32.xlu1 %v8934_v36  ;;  %v2471_v12 = vpop.xlane.xlu0 %2470 }
 0x326   : > { %v2363_v3 = vpop.xlane.xlu1 %2362  ;;  %v3527_v29 = vsel %vm3334_vm12, %v3526_v54, %v3522_v33 }
 0x327   : > { %v3462_v62 = vrot.slane %v2363_v3, %v7730_v32  ;;  %v3595_v3 = vrot.slane %v2471_v12, %v7393_v23  ;;  %v8943_v12 = vld [vmem:[#allocation35_spill] sm:$0xff] }
 0x328   : > { %2622 = vadd.xlane.f32.xlu0 %v8935_v27 }
 0x329   : > { %2618 = vadd.xlane.f32.xlu1 %v8936_v61  ;;  %v2423_v24 = vpop.xlane.xlu0 %2422  ;;  %v3463_v38 = vsel %vm3334_vm12, %v3462_v62, %v3458_v22  ;;  %v8941_v62 = vld [vmem:[#allocation52_spill] sm:$0xff]  ;;  %v8942_v61 = vld [vmem:[#allocation53_spill] sm:$0xff] }
 0x32a   : > { %v2419_v9 = vpop.xlane.xlu1 %2418  ;;  %v3535_v44 = vrot.slane %v2423_v24, %v7398_v5  ;;  %v7879_v0 = vsel %vm4296_vm13, %v3527_v29, %v3463_v38 }
 0x32b   : > { %v3531_v52 = vrot.slane %v2419_v9, %v7393_v23 }
 0x32c   : > { %2810 = vadd.xlane.f32.xlu0 %v8937_v47  ;;  %v8944_v47 = vld [vmem:[#allocation115_spill] sm:$0xff] }
 0x32d   : > { %v3536_v28 = vsel %vm3257_vm2, %v3535_v44, %v3531_v52  ;;  %2570 = vadd.xlane.f32.xlu1 %v8938_v50  ;;  %v2839_v43 = vpop.xlane.xlu0 %2838 }
 0x32e   : > { %v2835_v15 = vpop.xlane.xlu1 %2834  ;;  %v4047_v2 = vrot.slane %v2839_v43, %v7398_v5 }
 0x32f   : > { %v4043_v31 = vrot.slane %v2835_v15, %v7393_v23 }
 0x330   : > { %2910 = vadd.xlane.f32.xlu0 %v8939_v21 }
 0x331   : > { %v4048_v37 = vsel %vm3257_vm2, %v4047_v2, %v4043_v31  ;;  %2858 = vadd.xlane.f32.xlu1 %v8940_v45  ;;  %v2891_v59 = vpop.xlane.xlu0 %2890  ;;  %v8945_v45 = vld [vmem:[#allocation14_spill] sm:$0xff] }
 0x332   : > { %v2887_v22 = vpop.xlane.xlu1 %2886  ;;  %v4111_v18 = vrot.slane %v2891_v59, %v7398_v5 }
 0x333   : > { %v4107_v54 = vrot.slane %v2887_v22, %v7393_v23 }
 0x334   : > { %3010 = vadd.xlane.f32.xlu0 %v7563_v30 }
 0x335   : > { %v4112_v48 = vsel %vm3257_vm2, %v4111_v18, %v4107_v54  ;;  %2958 = vadd.xlane.f32.xlu1 %v7561_v17  ;;  %v2479_v42 = vpop.xlane.xlu0 %2478  ;;  %v8946_v54 = vld [vmem:[#allocation117_spill] sm:$0xff] }
 0x336   : > { %v2475_v33 = vpop.xlane.xlu1 %2474  ;;  %v3604_v36 = vrot.slane %v2479_v42, %v7407_v58 }
 0x337   : > { %v3599_v29 = vrot.slane %v2475_v33, %v7398_v5 }
 0x338   : > { %2762 = vadd.xlane.f32.xlu0 %v8941_v62 }
 0x339   : > { %v3600_v27 = vsel %vm3257_vm2, %v3599_v29, %v3595_v3  ;;  %2714 = vadd.xlane.f32.xlu1 %v8942_v61  ;;  %v2895_v24 = vpop.xlane.xlu0 %2894  ;;  %v8949_v61 = vld [vmem:[#allocation155_spill] sm:$0xff] }
 0x33a   : > { %v7902_v30 = vsel %vm3264_vm1, %v3604_v36, %v3600_v27  ;;  %v2427_v38 = vpop.xlane.xlu1 %2426  ;;  %v4116_v17 = vrot.slane %v2895_v24, %v7407_v58  ;;  %v8947_v36 = vld [vmem:[#allocation30_spill] sm:$0xff]  ;;  %v8950_v24 = vld [vmem:[#allocation73_spill] sm:$0xff] }
 0x33b   : > { %v3540_v9 = vrot.slane %v2427_v38, %v7407_v58 }
 0x33c   : > { %v4117_v44 = vsel %vm3264_vm1, %v4116_v17, %v4112_v48  ;;  %2862 = vadd.xlane.f32.xlu0 %v8943_v12 }
 0x33d   : > { %v3541_v52 = vsel %vm3264_vm1, %v3540_v9, %v3536_v28  ;;  %2814 = vadd.xlane.f32.xlu1 %v8944_v47  ;;  %v2431_v50 = vpop.xlane.xlu0 %2430 }
 0x33e   : > { %v2843_v43 = vpop.xlane.xlu1 %2842  ;;  %v3545_v15 = vrot.slane %v2431_v50, %v7455_v16  ;;  %v8951_v50 = vld [vmem:[#allocation123_spill] sm:$0xff] }
 0x33f   : > { %v4052_v2 = vrot.slane %v2843_v43, %v7407_v58  ;;  %v8952_v43 = vld [vmem:[#allocation119_spill] sm:$0xff] }
 0x340   : > { %v7913_v31 = vsel %vm3271_vm3, %v3545_v15, %v3541_v52  ;;  %2962 = vadd.xlane.f32.xlu0 %v7570_v51 }
 0x341   : > { %v4053_v21 = vsel %vm3264_vm1, %v4052_v2, %v4048_v37  ;;  %2914 = vadd.xlane.f32.xlu1 %v8945_v45  ;;  %v2847_v59 = vpop.xlane.xlu0 %2846  ;;  %v8948_v37 = vld [vmem:[#allocation22_spill] sm:$0xff] }
 0x342   : > { %v2483_v22 = vpop.xlane.xlu1 %2482  ;;  %v4057_v28 = vrot.slane %v2847_v59, %v7455_v16 }
 0x344   : > { %v4058_v18 = vsel %vm3271_vm3, %v4057_v28, %v4053_v21  ;;  %2718 = vadd.xlane.f32.xlu0 %v8946_v54 }
 0x345   : > { %3014 = vadd.xlane.f32.xlu1 %v7572_v14  ;;  %v2487_v48 = vpop.xlane.xlu0 %2486 }
 0x346   : > { %v2899_v42 = vpop.xlane.xlu1 %2898 }
 0x347   : > { %v4121_v33 = vrot.slane %v2899_v42, %v7455_v16 }
 0x348   : > { %2818 = vadd.xlane.f32.xlu0 %v8947_v36 }
 0x349   : > { %v4122_v51 = vsel %vm3271_vm3, %v4121_v33, %v4117_v44  ;;  %2766 = vadd.xlane.f32.xlu1 %v8948_v37  ;;  %v2903_v3 = vpop.xlane.xlu0 %2902  ;;  %v8956_v33 = vld [vmem:[#allocation125_spill] sm:$0xff] }
 0x34a   : > { %v2435_v29 = vpop.xlane.xlu1 %2434  ;;  %v4126_v62 = vrot.slane %v2903_v3, %v7501_v39  ;;  %v3614_v3 = vrot.slane %v2487_v48, %v7501_v39 }
 0x34c   : > { %v4127_v27 = vsel %vm3278_vm4, %v4126_v62, %v4122_v51  ;;  %2918 = vadd.xlane.f32.xlu0 %v8949_v61  ;;  %v3609_v51 = vrot.slane %v2483_v22, %v7455_v16  ;;  %v3550_v62 = vrot.slane %v2435_v29, %v7501_v39  ;;  %v8957_v61 = vld [vmem:[#allocation11_spill] sm:$0xff] }
 0x34d   : > { %2866 = vadd.xlane.f32.xlu1 %v8950_v24  ;;  %v2439_v14 = vpop.xlane.xlu0 %2438 }
 0x34e   : > { %v2851_v38 = vpop.xlane.xlu1 %2850  ;;  %v3610_v22 = vsel %vm3271_vm3, %v3609_v51, %v7902_v30 }
 0x34f   : > { %v4062_v17 = vrot.slane %v2851_v38, %v7501_v39  ;;  %v3615_v29 = vsel %vm3278_vm4, %v3614_v3, %v3610_v22 }
 0x350   : > { %3018 = vadd.xlane.f32.xlu0 %v7599_v10  ;;  %v8953_v10 = vld [vmem:[#allocation84_spill] sm:$0xff] }
 0x351   : > { %v4063_v9 = vsel %vm3278_vm4, %v4062_v17, %v4058_v18  ;;  %2966 = vadd.xlane.f32.xlu1 %v7597_v41  ;;  %v2855_v44 = vpop.xlane.xlu0 %2854  ;;  %v8954_v41 = vld [vmem:[#allocation121_spill] sm:$0xff]  ;;  %v8955_v18 = vld [vmem:[#allocation103_spill] sm:$0xff] }
 0x352   : > { %v2491_v12 = vpop.xlane.xlu1 %2490  ;;  %v4067_v52 = vrot.slane %v2855_v44, %v7542_v13  ;;  %v8958_v17 = vld [vmem:[#allocation85_spill] sm:$0xff] }
 0x354   : > { %v7936_v47 = vsel %vm3285_vm5, %v4067_v52, %v4063_v9  ;;  %2770 = vadd.xlane.f32.xlu0 %v8951_v50  ;;  %v8959_v50 = vld [vmem:[#allocation141_spill] sm:$0xff] }
 0x355   : > { %2722 = vadd.xlane.f32.xlu1 %v8952_v43  ;;  %v2495_v15 = vpop.xlane.xlu0 %2494 }
 0x356   : > { %v2907_v2 = vpop.xlane.xlu1 %2906  ;;  %v3624_v24 = vrot.slane %v2495_v15, %v7578_v55 }
 0x357   : > { %v4131_v21 = vrot.slane %v2907_v2, %v7542_v13 }
 0x358   : > { %2870 = vadd.xlane.f32.xlu0 %v8953_v10 }
 0x359   : > { %v7943_v45 = vsel %vm3285_vm5, %v4131_v21, %v4127_v27  ;;  %2822 = vadd.xlane.f32.xlu1 %v8954_v41  ;;  %v2447_v59 = vpop.xlane.xlu0 %2446  ;;  %v3555_v27 = vrot.slane %v2439_v14, %v7542_v13  ;;  %v3551_v14 = vsel %vm3278_vm4, %v3550_v62, %v7913_v31  ;;  %v8960_v21 = vld [vmem:[#allocation132_spill] sm:$0xff] }
 0x35a   : > { %v2443_v28 = vpop.xlane.xlu1 %2442  ;;  %v3565_v52 = vrot.slane %v2447_v59, %v7614_v49 }
 0x35b   : > { %v3560_v38 = vrot.slane %v2443_v28, %v7578_v55  ;;  %v3556_v44 = vsel %vm3285_vm5, %v3555_v27, %v3551_v14  ;;  %v8964_v14 = vld [vmem:[#allocation134_spill] sm:$0xff] }
 0x35c   : > { %2970 = vadd.xlane.f32.xlu0 %v7606_v46  ;;  %v3619_v46 = vrot.slane %v2491_v12, %v7542_v13 }
 0x35d   : > { %2922 = vadd.xlane.f32.xlu1 %v8955_v18  ;;  %v2503_v54 = vpop.xlane.xlu0 %2502  ;;  %v3561_v30 = vsel %vm3292_vm6, %v3560_v38, %v3556_v44 }
 0x35e   : > { %v2499_v42 = vpop.xlane.xlu1 %2498  ;;  %v3620_v12 = vsel %vm3285_vm5, %v3619_v46, %v3615_v29  ;;  %v3634_v15 = vrot.slane %v2503_v54, %v7670_v11  ;;  %v3566_v59 = vsel %vm3299_vm7, %v3565_v52, %v3561_v30  ;;  %v8961_v46 = vld [vmem:[#allocation129_spill] sm:$0xff]  ;;  %v8963_v29 = vld [vmem:[#allocation142_spill] sm:$0xff] }
 0x35f   : > { %v3629_v48 = vrot.slane %v2499_v42, %v7614_v49  ;;  %v3625_v43 = vsel %vm3292_vm6, %v3624_v24, %v3620_v12 }
 0x360   : > { %2726 = vadd.xlane.f32.xlu0 %v8956_v33 }
 0x361   : > { %3022 = vadd.xlane.f32.xlu1 %v7608_v26  ;;  %v2455_v36 = vpop.xlane.xlu0 %2454  ;;  %v3630_v31 = vsel %vm3299_vm7, %v3629_v48, %v3625_v43 }
 0x362   : > { %v2451_v37 = vpop.xlane.xlu1 %2450  ;;  %v3575_v18 = vrot.slane %v2455_v36, %v7691_v7  ;;  %v3635_v42 = vsel %vm3306_vm8, %v3634_v15, %v3630_v31 }
 0x363   : > { %v3570_v2 = vrot.slane %v2451_v37, %v7670_v11 }
 0x364   : > { %2826 = vadd.xlane.f32.xlu0 %v8957_v61 }
 0x365   : > { %2774 = vadd.xlane.f32.xlu1 %v8958_v17  ;;  %v2511_v26 = vpop.xlane.xlu0 %2510  ;;  %v3571_v54 = vsel %vm3306_vm8, %v3570_v2, %v3566_v59  ;;  %v8962_v17 = vld [vmem:[#allocation42_spill] sm:$0xff] }
 0x366   : > { %v2507_v9 = vpop.xlane.xlu1 %2506  ;;  %v3644_v33 = vrot.slane %v2511_v26, %v7704_v35  ;;  %v3576_v36 = vsel %vm3313_vm10, %v3575_v18, %v3571_v54  ;;  %v8966_v18 = vld [vmem:[#allocation29_spill] sm:$0xff] }
 0x367   : > { %v3639_v41 = vrot.slane %v2507_v9, %v7691_v7 }
 0x368   : > { %2926 = vadd.xlane.f32.xlu0 %v8959_v50 }
 0x369   : > { %2874 = vadd.xlane.f32.xlu1 %v8960_v21  ;;  %v2463_v10 = vpop.xlane.xlu0 %2462  ;;  %v3640_v3 = vsel %vm3313_vm10, %v3639_v41, %v3635_v42 }
 0x36a   : > { %v2459_v28 = vpop.xlane.xlu1 %2458  ;;  %v3645_v61 = vsel %vm3320_vm9, %v3644_v33, %v3640_v3 }
 0x36b   : > { %v3580_v51 = vrot.slane %v2459_v28, %v7704_v35  ;;  %v8965_v28 = vld [vmem:[#allocation100_spill] sm:$0xff] }
 0x36c   : > { %3026 = vadd.xlane.f32.xlu0 %v7634_v1  ;;  %v3585_v1 = vrot.slane %v2463_v10, %v7719_v34 }
 0x36d   : > { %2974 = vadd.xlane.f32.xlu1 %v7632_v20  ;;  %v2519_v37 = vpop.xlane.xlu0 %2518  ;;  %v3581_v24 = vsel %vm3320_vm9, %v3580_v51, %v3576_v36 }
 0x36e   : > { %v2515_v62 = vpop.xlane.xlu1 %2514  ;;  %v3654_v38 = vrot.slane %v2519_v37, %v7730_v32  ;;  %v3586_v9 = vsel %vm3327_vm11, %v3585_v1, %v3581_v24  ;;  %v4317_v24 = vsel %vm4313_vm14, %v7879_v0, 0.0 }
 0x36f   : > { %v3649_v27 = vrot.slane %v2515_v62, %v7719_v34 }
 0x370   : > { %2830 = vadd.xlane.f32.xlu0 %v8961_v46 }
 0x371   : > { %2778 = vadd.xlane.f32.xlu1 %v8962_v17  ;;  %v2575_v20 = vpop.xlane.xlu0 %2574  ;;  %v3650_v26 = vsel %vm3327_vm11, %v3649_v27, %v3645_v61 }
 0x372   : > { %v2467_v22 = vpop.xlane.xlu1 %2466  ;;  %v3655_v52 = vsel %vm3334_vm12, %v3654_v38, %v3650_v26  ;;  %v3723_v62 = vrot.slane %v2575_v20, %v7393_v23 }
 0x373   : > { %v3590_v48 = vrot.slane %v2467_v22, %v7730_v32 }
 0x374   : > { %2930 = vadd.xlane.f32.xlu0 %v8963_v29 }
 0x375   : > { %2878 = vadd.xlane.f32.xlu1 %v8964_v14  ;;  %v2527_v44 = vpop.xlane.xlu0 %2526  ;;  %v3591_v12 = vsel %vm3334_vm12, %v3590_v48, %v3586_v9 }
 0x376   : > { %v2523_v50 = vpop.xlane.xlu1 %2522  ;;  %v3663_v43 = vrot.slane %v2527_v44, %v7398_v5  ;;  %v4299_v30 = vsel %vm4296_vm13, %v3655_v52, %v3591_v12 }
 0x377   : > { %v3659_v15 = vrot.slane %v2523_v50, %v7393_v23  ;;  %v4320_v48 = vsel %vm4313_vm14, %v4299_v30, 0.0 }
 0x378   : > { %3030 = vadd.xlane.f32.xlu0 %v7643_v19 }
 0x379   : > { %v3664_v2 = vsel %vm3257_vm2, %v3663_v43, %v3659_v15  ;;  %2978 = vadd.xlane.f32.xlu1 %v7641_v53  ;;  %v2943_v21 = vpop.xlane.xlu0 %2942 }
 0x37a   : > { %v2939_v10 = vpop.xlane.xlu1 %2938  ;;  %v4175_v31 = vrot.slane %v2943_v21, %v7398_v5 }
 0x37b   : > { %v4171_v41 = vrot.slane %v2939_v10, %v7393_v23 }
 0x37c   : > { %2934 = vadd.xlane.f32.xlu0 %v8965_v28 }
 0x37d   : > { %v4176_v59 = vsel %vm3257_vm2, %v4175_v31, %v4171_v41  ;;  %2882 = vadd.xlane.f32.xlu1 %v8966_v18  ;;  %v2995_v42 = vpop.xlane.xlu0 %2994 }
 0x37e   : > { %v2991_v54 = vpop.xlane.xlu1 %2990  ;;  %v4239_v19 = vrot.slane %v2995_v42, %v7398_v5 }
 0x37f   : > { %v4235_v33 = vrot.slane %v2991_v54, %v7393_v23 }
 0x380   : > { %3034 = vadd.xlane.f32.xlu0 %v7664_v25 }
 0x381   : > { %v4240_v53 = vsel %vm3257_vm2, %v4239_v19, %v4235_v33  ;;  %2982 = vadd.xlane.f32.xlu1 %v7662_v40  ;;  %v2583_v51 = vpop.xlane.xlu0 %2582 }
 0x382   : > { %v2579_v37 = vpop.xlane.xlu1 %2578  ;;  %v3732_v3 = vrot.slane %v2583_v51, %v7407_v58 }
 0x383   : > { %v3727_v27 = vrot.slane %v2579_v37, %v7398_v5 }
 0x384   : > { %3038 = vadd.xlane.f32.xlu0 %v7676_v63  ;;  %v4314_v63 = vsel %vm4313_vm14, %v7748_v56, 0.0 }
 0x385   : > { %v3728_v36 = vsel %vm3257_vm2, %v3727_v27, %v3723_v62  ;;  %2986 = vadd.xlane.f32.xlu1 %v7672_v60  ;;  %v2947_v1 = vpop.xlane.xlu0 %2946  ;;  %vm4425_vm2 = vcmask 1044484  }
 0x386   : > { %v3733_v25 = vsel %vm3264_vm1, %v3732_v3, %v3728_v36  ;;  %v2531_v46 = vpop.xlane.xlu1 %2530  ;;  %v4180_v40 = vrot.slane %v2947_v1, %v7407_v58 }
 0x387   : > { %v3668_v61 = vrot.slane %v2531_v46, %v7407_v58 }
 0x388   : > { %v4181_v5 = vsel %vm3264_vm1, %v4180_v40, %v4176_v59  ;;  %4318 = vadd.xlane.f32.xlu0 %v4317_v24 }
 0x389   : > { %v3669_v60 = vsel %vm3264_vm1, %v3668_v61, %v3664_v2  ;;  %4315 = vadd.xlane.f32.xlu1 %v4314_v63  ;;  %v2535_v38 = vpop.xlane.xlu0 %2534 }
 0x38a   : > { %v2999_v17 = vpop.xlane.xlu1 %2998  ;;  %v3673_v20 = vrot.slane %v2535_v38, %v7455_v16 }
 0x38b   : > { %v4244_v26 = vrot.slane %v2999_v17, %v7407_v58 }
 0x38c   : > { %v3674_v22 = vsel %vm3271_vm3, %v3673_v20, %v3669_v60 }
 0x38d   : > { %v4245_v0 = vsel %vm3264_vm1, %v4244_v26, %v4240_v53  ;;  %4321 = vadd.xlane.f32.xlu1 %v4320_v48  ;;  %v3003_v9 = vpop.xlane.xlu0 %3002  ;;  %vm4427_vm1 = vcmask 1045509  }
 0x38e   : > { %v2587_v29 = vpop.xlane.xlu1 %2586  ;;  %v4249_v56 = vrot.slane %v3003_v9, %v7455_v16 }
 0x38f   : > { %v3737_v14 = vrot.slane %v2587_v29, %v7455_v16 }
 0x390   : > { %v4250_v44 = vsel %vm3271_vm3, %v4249_v56, %v4245_v0 }
 0x391   : > { %v3738_v12 = vsel %vm3271_vm3, %v3737_v14, %v3733_v25  ;;  %v2591_v52 = vpop.xlane.xlu0 %2590 }
 0x392   : > { %v2951_v50 = vpop.xlane.xlu1 %2950  ;;  %v3742_v58 = vrot.slane %v2591_v52, %v7501_v39 }
 0x393   : > { %v4185_v43 = vrot.slane %v2951_v50, %v7455_v16 }
 0x394   : > { %v3743_v30 = vsel %vm3278_vm4, %v3742_v58, %v3738_v12 }
 0x395   : > { %v4186_v15 = vsel %vm3271_vm3, %v4185_v43, %v4181_v5  ;;  %v2955_v2 = vpop.xlane.xlu0 %2954  ;;  %vm4429_vm3 = vcmask 1046534  }
 0x396   : > { %v2539_v21 = vpop.xlane.xlu1 %2538  ;;  %v4190_v10 = vrot.slane %v2955_v2, %v7501_v39 }
 0x397   : > { %v3678_v31 = vrot.slane %v2539_v21, %v7501_v39 }
 0x398   : > { %v8047_v41 = vsel %vm3278_vm4, %v4190_v10, %v4186_v15 }
 0x399   : > { %v3679_v28 = vsel %vm3278_vm4, %v3678_v31, %v3674_v22  ;;  %v2543_v59 = vpop.xlane.xlu0 %2542 }
 0x39a   : > { %v3007_v18 = vpop.xlane.xlu1 %3006  ;;  %v3683_v42 = vrot.slane %v2543_v59, %v7542_v13 }
 0x39b   : > { %v4254_v16 = vrot.slane %v3007_v18, %v7501_v39 }
 0x39c   : > { %v3684_v54 = vsel %vm3285_vm5, %v3683_v42, %v3679_v28 }
 0x39d   : > { %v4255_v19 = vsel %vm3278_vm4, %v4254_v16, %v4250_v44  ;;  %v2599_v33 = vpop.xlane.xlu0 %2598  ;;  %vm4431_vm4 = vcmask 1047559  }
 0x39e   : > { %v2595_v53 = vpop.xlane.xlu1 %2594  ;;  %v3752_v51 = vrot.slane %v2599_v33, %v7578_v55 }
 0x39f   : > { %v3747_v37 = vrot.slane %v2595_v53, %v7542_v13 }
 0x3a1   : > { %v3748_v3 = vsel %vm3285_vm5, %v3747_v37, %v3743_v30  ;;  %v2551_v62 = vpop.xlane.xlu0 %2550 }
 0x3a2   : > { %v3753_v27 = vsel %vm3292_vm6, %v3752_v51, %v3748_v3  ;;  %v2547_v36 = vpop.xlane.xlu1 %2546  ;;  %v3693_v1 = vrot.slane %v2551_v62, %v7614_v49 }
 0x3a3   : > { %v3688_v39 = vrot.slane %v2547_v36, %v7578_v55 }
 0x3a5   : > { %v3689_v25 = vsel %vm3292_vm6, %v3688_v39, %v3684_v54  ;;  %v2607_v46 = vpop.xlane.xlu0 %2606 }
 0x3a6   : > { %v3694_v40 = vsel %vm3299_vm7, %v3693_v1, %v3689_v25  ;;  %v2603_v61 = vpop.xlane.xlu1 %2602  ;;  %v3762_v24 = vrot.slane %v2607_v46, %v7670_v11 }
 0x3a7   : > { %v3757_v5 = vrot.slane %v2603_v61, %v7614_v49 }
 0x3a9   : > { %v3758_v63 = vsel %vm3299_vm7, %v3757_v5, %v3753_v27  ;;  %v2559_v60 = vpop.xlane.xlu0 %2558 }
 0x3aa   : > { %v3763_v38 = vsel %vm3306_vm8, %v3762_v24, %v3758_v63  ;;  %v2555_v17 = vpop.xlane.xlu1 %2554  ;;  %v3703_v20 = vrot.slane %v2559_v60, %v7691_v7 }
 0x3ab   : > { %v3698_v26 = vrot.slane %v2555_v17, %v7670_v11 }
 0x3ad   : > { %v3699_v22 = vsel %vm3306_vm8, %v3698_v26, %v3694_v40  ;;  %v2615_v48 = vpop.xlane.xlu0 %2614 }
 0x3ae   : > { %v3704_v0 = vsel %vm3313_vm10, %v3703_v20, %v3699_v22  ;;  %v2611_v9 = vpop.xlane.xlu1 %2610  ;;  %v3772_v29 = vrot.slane %v2615_v48, %v7704_v35 }
 0x3af   : > { %v3767_v56 = vrot.slane %v2611_v9, %v7691_v7 }
 0x3b1   : > { %v3768_v14 = vsel %vm3313_vm10, %v3767_v56, %v3763_v38  ;;  %v2567_v44 = vpop.xlane.xlu0 %2566 }
 0x3b2   : > { %v3773_v12 = vsel %vm3320_vm9, %v3772_v29, %v3768_v14  ;;  %v2563_v52 = vpop.xlane.xlu1 %2562  ;;  %v3713_v50 = vrot.slane %v2567_v44, %v7719_v34 }
 0x3b3   : > { %v3708_v58 = vrot.slane %v2563_v52, %v7704_v35 }
 0x3b5   : > { %v3709_v43 = vsel %vm3320_vm9, %v3708_v58, %v3704_v0  ;;  %v2623_v30 = vpop.xlane.xlu0 %2622 }
 0x3b6   : > { %v3714_v15 = vsel %vm3327_vm11, %v3713_v50, %v3709_v43  ;;  %v2619_v2 = vpop.xlane.xlu1 %2618  ;;  %v3782_v21 = vrot.slane %v2623_v30, %v7730_v32 }
 0x3b7   : > { %v3777_v10 = vrot.slane %v2619_v2, %v7719_v34 }
 0x3b9   : > { %v3778_v31 = vsel %vm3327_vm11, %v3777_v10, %v3773_v12  ;;  %v2811_v28 = vpop.xlane.xlu0 %2810 }
 0x3ba   : > { %v2571_v59 = vpop.xlane.xlu1 %2570  ;;  %v4013_v18 = vrot.slane %v2811_v28, %v7614_v49  ;;  %v3783_v42 = vsel %vm3334_vm12, %v3782_v21, %v3778_v31 }
 0x3bb   : > { %v3718_v16 = vrot.slane %v2571_v59, %v7730_v32 }
 0x3bc   : > { %v4014_v54 = vsel %vm3299_vm7, %v4013_v18, %v7832_v4 }
 0x3bd   : > { %v2911_v33 = vpop.xlane.xlu0 %2910  ;;  %v3719_v53 = vsel %vm3334_vm12, %v3718_v16, %v3714_v15 }
 0x3be   : > { %v2859_v51 = vpop.xlane.xlu1 %2858  ;;  %v4136_v37 = vrot.slane %v2911_v33, %v7578_v55  ;;  %v8089_v3 = vsel %vm4296_vm13, %v3783_v42, %v3719_v53 }
 0x3bf   : > { %v4072_v62 = vrot.slane %v2859_v51, %v7578_v55 }
 0x3c0   : > { %v8094_v27 = vsel %vm3292_vm6, %v4136_v37, %v7943_v45 }
 0x3c1   : > { %v8098_v36 = vsel %vm3292_vm6, %v4072_v62, %v7936_v47  ;;  %v3011_v4 = vpop.xlane.xlu0 %3010 }
 0x3c2   : > { %v2959_v1 = vpop.xlane.xlu1 %2958  ;;  %v4259_v39 = vrot.slane %v3011_v4, %v7542_v13 }
 0x3c3   : > { %v4195_v25 = vrot.slane %v2959_v1, %v7542_v13 }
 0x3c4   : > { %v8103_v46 = vsel %vm3285_vm5, %v4259_v39, %v4255_v19 }
 0x3c5   : > { %v8107_v40 = vsel %vm3285_vm5, %v4195_v25, %v8047_v41  ;;  %v2763_v61 = vpop.xlane.xlu0 %2762  ;;  %vm4434_vm5 = vcmask 15360  }
 0x3c6   : > { %v2715_v45 = vpop.xlane.xlu1 %2714  ;;  %v3954_v42 = vrot.slane %v2763_v61, %v7670_v11 }
 0x3c7   : > { %v3895_v29 = vrot.slane %v2715_v45, %v7691_v7 }
 0x3c8   : > { %v3955_v39 = vsel %vm3306_vm8, %v3954_v42, %v7846_v8 }
 0x3c9   : > { %v8109_v24 = vpop.xlane.xlu0 %2862  ;;  %v3896_v52 = vsel %vm3313_vm10, %v3895_v29, %v7696_v6 }
 0x3ca   : > { %v2815_v5 = vpop.xlane.xlu1 %2814 }
 0x3cb   : > { %v4018_v18 = vrot.slane %v2815_v5, %v7670_v11 }
 0x3cd   : > { %v8111_v47 = vpop.xlane.xlu0 %2962  ;;  %v4019_v4 = vsel %vm3306_vm8, %v4018_v18, %v4014_v54 }
 0x3ce   : > { %v8113_v63 = vpop.xlane.xlu1 %2914 }
 0x3d1   : > { %v2719_v60 = vpop.xlane.xlu0 %2718 }
 0x3d2   : > { %v8115_v38 = vpop.xlane.xlu1 %3014  ;;  %v3900_v14 = vrot.slane %v2719_v60, %v7704_v35 }
 0x3d4   : > { %v3901_v58 = vsel %vm3320_vm9, %v3900_v14, %v3896_v52  ;;  %v4141_v52 = vrot.slane %v8113_v63, %v7614_v49 }
 0x3d5   : > { %v2819_v13 = vpop.xlane.xlu0 %2818 }
 0x3d6   : > { %v2767_v17 = vpop.xlane.xlu1 %2766  ;;  %v4023_v16 = vrot.slane %v2819_v13, %v7691_v7 }
 0x3d7   : > { %v3959_v53 = vrot.slane %v2767_v17, %v7691_v7 }
 0x3d8   : > { %v4024_v25 = vsel %vm3313_vm10, %v4023_v16, %v4019_v4  ;;  %v4264_v16 = vrot.slane %v8115_v38, %v7578_v55 }
 0x3d9   : > { %v8117_v19 = vpop.xlane.xlu0 %2918  ;;  %v3960_v45 = vsel %vm3313_vm10, %v3959_v53, %v3955_v39 }
 0x3da   : > { %v8119_v20 = vpop.xlane.xlu1 %2866 }
 0x3dd   : > { %v8121_v41 = vpop.xlane.xlu0 %3018 }
 0x3de   : > { %v8123_v26 = vpop.xlane.xlu1 %2966 }
 0x3e1   : > { %v2771_v22 = vpop.xlane.xlu0 %2770 }
 0x3e2   : > { %v2723_v48 = vpop.xlane.xlu1 %2722 }
 0x3e3   : > { %v3905_v12 = vrot.slane %v2723_v48, %v7719_v34 }
 0x3e5   : > { %v8125_v0 = vpop.xlane.xlu0 %2870  ;;  %v3906_v15 = vsel %vm3327_vm11, %v3905_v12, %v3901_v58  ;;  %v4077_v58 = vrot.slane %v8109_v24, %v7614_v49  ;;  %v4142_v24 = vsel %vm3299_vm7, %v4141_v52, %v8094_v27 }
 0x3e6   : > { %v2823_v9 = vpop.xlane.xlu1 %2822 }
 0x3e7   : > { %v4028_v51 = vrot.slane %v2823_v9, %v7704_v35 }
 0x3e9   : > { %v8128_v56 = vpop.xlane.xlu0 %2970  ;;  %v4029_v5 = vsel %vm3320_vm9, %v4028_v51, %v4024_v25 }
 0x3ea   : > { %v8131_v44 = vpop.xlane.xlu1 %2922 }
 0x3ed   : > { %v2727_v50 = vpop.xlane.xlu0 %2726 }
 0x3ee   : > { %v8137_v43 = vpop.xlane.xlu1 %3022  ;;  %v3910_v30 = vrot.slane %v2727_v50, %v7730_v32 }
 0x3f0   : > { %v3911_v2 = vsel %vm3334_vm12, %v3910_v30, %v3906_v15  ;;  %v4146_v30 = vrot.slane %v8117_v19, %v7670_v11  ;;  %v4082_v15 = vrot.slane %v8119_v20, %v7670_v11  ;;  %v4323_v20 = vsel %vm4313_vm14, %v8089_v3, 0.0 }
 0x3f1   : > { %v2827_v21 = vpop.xlane.xlu0 %2826  ;;  %v4301_v10 = vsel %vm4296_vm13, %v3911_v2, %v7751_v57  ;;  %v3964_v57 = vrot.slane %v2771_v22, %v7704_v35  ;;  %v4151_v2 = vrot.slane %v8131_v44, %v7691_v7  ;;  %v4078_v44 = vsel %vm3299_vm7, %v4077_v58, %v8098_v36 }
 0x3f2   : > { %v2775_v31 = vpop.xlane.xlu1 %2774  ;;  %v4326_v28 = vsel %vm4313_vm14, %v4301_v10, 0.0  ;;  %v4033_v62 = vrot.slane %v2827_v21, %v7719_v34  ;;  %v4087_v10 = vrot.slane %v8125_v0, %v7691_v7  ;;  %v4147_v18 = vsel %vm3306_vm8, %v4146_v30, %v4142_v24 }
 0x3f3   : > { %4327 = vadd.xlane.f32.xlu1 %v4326_v28  ;;  %v3969_v1 = vrot.slane %v2775_v31, %v7719_v34  ;;  %v3965_v17 = vsel %vm3320_vm9, %v3964_v57, %v3960_v45  ;;  %v4083_v27 = vsel %vm3306_vm8, %v4082_v15, %v4078_v44  ;;  %v4269_v57 = vrot.slane %v8121_v41, %v7614_v49  ;;  %v4660_v15 = vld [vmem:[%s8271_s3] ss:$0 sm:$0xff] }
 0x3f4   : > { %v4034_v22 = vsel %vm3327_vm11, %v4033_v62, %v4029_v5  ;;  %v4088_v3 = vsel %vm3313_vm10, %v4087_v10, %v4083_v27  ;;  %v4210_v41 = vrot.slane %v8128_v56, %v7670_v11 }
 0x3f5   : > { %v2927_v6 = vpop.xlane.xlu0 %2926  ;;  %v3970_v48 = vsel %vm3327_vm11, %v3969_v1, %v3965_v17  ;;  %v4205_v1 = vrot.slane %v8123_v26, %v7614_v49  ;;  %v4265_v49 = vsel %vm3292_vm6, %v4264_v16, %v8103_v46 }
 0x3f6   : > { %v2875_v59 = vpop.xlane.xlu1 %2874  ;;  %v4156_v63 = vrot.slane %v2927_v6, %v7704_v35  ;;  %v4200_v6 = vrot.slane %v8111_v47, %v7578_v55  ;;  %v4274_v55 = vrot.slane %v8137_v43, %v7670_v11 }
 0x3f7   : > { %v4092_v28 = vrot.slane %v2875_v59, %v7704_v35  ;;  %v4152_v59 = vsel %vm3313_vm10, %v4151_v2, %v4147_v18 }
 0x3f8   : > { %v4157_v36 = vsel %vm3320_vm9, %v4156_v63, %v4152_v59  ;;  %v4201_v25 = vsel %vm3292_vm6, %v4200_v6, %v8107_v40 }
 0x3f9   : > { %v8148_v33 = vpop.xlane.xlu0 %3026  ;;  %v4093_v47 = vsel %vm3320_vm9, %v4092_v28, %v4088_v3  ;;  %v4206_v17 = vsel %vm3299_vm7, %v4205_v1, %v4201_v25 }
 0x3fa   : > { %v8152_v37 = vpop.xlane.xlu1 %2974 }
 0x3fb   : > { %v4215_v26 = vrot.slane %v8152_v37, %v7691_v7 }
 0x3fd   : > { %v2831_v61 = vpop.xlane.xlu0 %2830 }
 0x3fe   : > { %v2779_v60 = vpop.xlane.xlu1 %2778  ;;  %v4038_v13 = vrot.slane %v2831_v61, %v7730_v32  ;;  %v4279_v61 = vrot.slane %v8148_v33, %v7691_v7  ;;  %v4211_v7 = vsel %vm3306_vm8, %v4210_v41, %v4206_v17 }
 0x3ff   : > { %v3974_v54 = vrot.slane %v2779_v60, %v7730_v32 }
 0x400   : > { %v4039_v8 = vsel %vm3334_vm12, %v4038_v13, %v4034_v22  ;;  %v4270_v13 = vsel %vm3299_vm7, %v4269_v57, %v4265_v49 }
 0x401   : > { %v2931_v9 = vpop.xlane.xlu0 %2930  ;;  %v3975_v29 = vsel %vm3334_vm12, %v3974_v54, %v3970_v48  ;;  %v4275_v46 = vsel %vm3306_vm8, %v4274_v55, %v4270_v13  ;;  %v4216_v48 = vsel %vm3313_vm10, %v4215_v26, %v4211_v7 }
 0x402   : > { %v2879_v14 = vpop.xlane.xlu1 %2878  ;;  %v4302_v12 = vsel %vm4296_vm13, %v4039_v8, %v3975_v29  ;;  %v4161_v19 = vrot.slane %v2931_v9, %v7719_v34  ;;  %v4280_v37 = vsel %vm3313_vm10, %v4279_v61, %v4275_v46 }
 0x403   : > { %v4329_v50 = vsel %vm4313_vm14, %v4302_v12, 0.0  ;;  %v4097_v0 = vrot.slane %v2879_v14, %v7719_v34 }
 0x404   : > { %4330 = vadd.xlane.f32.xlu0 %v4329_v50  ;;  %v4162_v62 = vsel %vm3327_vm11, %v4161_v19, %v4157_v36 }
 0x405   : > { %v3031_v21 = vpop.xlane.xlu0 %3030  ;;  %v4098_v38 = vsel %vm3327_vm11, %v4097_v0, %v4093_v47 }
 0x406   : > { %v2979_v31 = vpop.xlane.xlu1 %2978  ;;  %v4284_v43 = vrot.slane %v3031_v21, %v7704_v35 }
 0x407   : > { %v4220_v11 = vrot.slane %v2979_v31, %v7704_v35 }
 0x408   : > { %4324 = vadd.xlane.f32.xlu0 %v4323_v20  ;;  %v4285_v35 = vsel %vm3320_vm9, %v4284_v43, %v4280_v37 }
 0x409   : > { %v2935_v42 = vpop.xlane.xlu0 %2934  ;;  %v4221_v29 = vsel %vm3320_vm9, %v4220_v11, %v4216_v48 }
 0x40a   : > { %v2883_v53 = vpop.xlane.xlu1 %2882  ;;  %v4166_v51 = vrot.slane %v2935_v42, %v7730_v32 }
 0x40b   : > { %v4102_v4 = vrot.slane %v2883_v53, %v7730_v32 }
 0x40c   : > { %v4167_v39 = vsel %vm3334_vm12, %v4166_v51, %v4162_v62 }
 0x40d   : > { %v3035_v45 = vpop.xlane.xlu0 %3034  ;;  %v4103_v5 = vsel %vm3334_vm12, %v4102_v4, %v4098_v38 }
 0x40e   : > { %v2983_v60 = vpop.xlane.xlu1 %2982  ;;  %v4303_v40 = vsel %vm4296_vm13, %v4167_v39, %v4103_v5  ;;  %v4289_v56 = vrot.slane %v3035_v45, %v7719_v34 }
 0x40f   : > { %v4332_v33 = vsel %vm4313_vm14, %v4303_v40, 0.0  ;;  %v4225_v22 = vrot.slane %v2983_v60, %v7719_v34 }
 0x410   : > { %4333 = vadd.xlane.f32.xlu1 %v4332_v33  ;;  %v4290_v14 = vsel %vm3327_vm11, %v4289_v56, %v4285_v35 }
 0x411   : > { %v3039_v54 = vpop.xlane.xlu0 %3038  ;;  %v4226_v34 = vsel %vm3327_vm11, %v4225_v22, %v4221_v29 }
 0x412   : > { %v2987_v8 = vpop.xlane.xlu1 %2986  ;;  %v4294_v9 = vrot.slane %v3039_v54, %v7730_v32 }
 0x413   : > { %v4230_v12 = vrot.slane %v2987_v8, %v7730_v32 }
 0x414   : > { %v4295_v52 = vsel %vm3334_vm12, %v4294_v9, %v4290_v14 }
 0x415   : > { %v4231_v50 = vsel %vm3334_vm12, %v4230_v12, %v4226_v34  ;;  %v4319_v32 = vpop.xlane.xlu0 %4318 }
 0x416   : > { %v4304_v58 = vsel %vm4296_vm13, %v4295_v52, %v4231_v50  ;;  %v4316_v2 = vpop.xlane.xlu1 %4315 }
 0x417   : > { %v4335_v30 = vsel %vm4313_vm14, %v4304_v58, 0.0 }
 0x418   : > { %4336 = vadd.xlane.f32.xlu0 %v4335_v30 }
 0x41a   : > { %v4322_v21 = vpop.xlane.xlu1 %4321 }
 0x421   : > { %4345 = vbcast.lane.b32.xlu1 %v4660_v15, 256 }
 0x480   : > { %v4328_v10 = vpop.xlane.xlu1 %4327 }
 0x491   : > { %v4331_v31 = vpop.xlane.xlu0 %4330 }
 0x495   : > { %v4325_v18 = vpop.xlane.xlu0 %4324 }
 0x49d   : > { %v4334_v63 = vpop.xlane.xlu1 %4333 }
 0x4a1   : > { %v4346_v24 = vpop.permute.xlu1 %4345 }
 0x4a2   : > { %v4352_v28 = vadd.f32 %v4346_v24, %v4328_v10  ;;  %v4348_v19 = vadd.f32 %v4346_v24, %v4316_v2  ;;  %v4349_v20 = vadd.f32 %v4346_v24, %v4319_v32  ;;  %v4353_v44 = vadd.f32 %v4346_v24, %v4331_v31 }
 0x4a3   : > { %v4350_v0 = vadd.f32 %v4346_v24, %v4322_v21  ;;  %v4351_v6 = vadd.f32 %v4346_v24, %v4325_v18  ;;  %v4354_v42 = vadd.f32 %v4346_v24, %v4334_v63 }
 0x4a4   : > { %4377 = vperm.xlu1 %4682, %v4352_v28   ;;  %4365 = vperm.xlu0 %4681, %v4348_v19  }
 0x4a5   : > { %v4337_v27 = vpop.xlane.xlu0 %4336 }
 0x4a6   : > { %v4355_v59 = vadd.f32 %v4346_v24, %v4337_v27 }
 0x4a8   : > { %4368 = vperm.xlu1 %4682, %v4349_v20   ;;  %4380 = vperm.xlu0 %4681, %v4353_v44  }
 0x4ac   : > { %4371 = vperm.xlu1 %4682, %v4350_v0   ;;  %4374 = vperm.xlu0 %4681, %v4351_v6  }
 0x4b0   : > { %4383 = vperm.xlu1 %4682, %v4354_v42   ;;  %4386 = vperm.xlu0 %4681, %v4355_v59  }
 0x523   : > { %v4378_v16 = vpop.permute.xlu1 %4377  ;;  %v4366_v3 = vpop.permute.xlu0 %4365 }
 0x524   : > { %v4391_v57 = vrot.slane %v4366_v3, %v7393_v23  ;;  %v4407_v38 = vrot.slane %v4378_v16, %v7393_v23 }
 0x527   : > { %v4369_v36 = vpop.permute.xlu1 %4368  ;;  %v4381_v53 = vpop.permute.xlu0 %4380 }
 0x528   : > { %v4395_v51 = vrot.slane %v4369_v36, %v7393_v23  ;;  %v4411_v25 = vrot.slane %v4381_v53, %v7393_v23 }
 0x52a   : > { %v4420_v55 = vsel %vm4296_vm13, %v4395_v51, %v4391_v57 }
 0x52b   : > { %v4372_v47 = vpop.permute.xlu1 %4371  ;;  %v4375_v62 = vpop.permute.xlu0 %4374 }
 0x52c   : > { %v4399_v4 = vrot.slane %v4372_v47, %v7393_v23  ;;  %v4403_v1 = vrot.slane %v4375_v62, %v7393_v23 }
 0x52e   : > { %v4422_v39 = vsel %vm4421_vm15, %v4399_v4, %v4420_v55 }
 0x52f   : > { %v4424_v41 = vsel %vm4423_vm0, %v4403_v1, %v4422_v39  ;;  %v4384_v61 = vpop.permute.xlu1 %4383  ;;  %v4387_v45 = vpop.permute.xlu0 %4386 }
 0x530   : > { %v4426_v5 = vsel %vm4425_vm2, %v4407_v38, %v4424_v41  ;;  %v4415_v49 = vrot.slane %v4384_v61, %v7393_v23  ;;  %v4419_v26 = vrot.slane %v4387_v45, %v7393_v23 }
 0x531   : > { %v4428_v43 = vsel %vm4427_vm1, %v4411_v25, %v4426_v5 }
 0x532   : > { %v4430_v60 = vsel %vm4429_vm3, %v4415_v49, %v4428_v43 }
 0x533   : > { %v4432_v40 = vsel %vm4431_vm4, %v4419_v26, %v4430_v60 }
 0x534   : > { %4435 = vst.msk [vmem:[%s197_s23] sm:$0xff] %vm4434_vm5, %v4432_v40 }
 0x535 PF: > { %s14_s15 = sadd.s32 1, %s4759_s15  }
 0x536   : > { %p11_p5 = scmp.ge.s32.totalorder %s14_s15, 5  }
 0x538   :  { %13 = sbr.rel (!%p11_p5) target bundleno = 1 (0x1), region = 66 }

</bundles_post_ra>
